<compile_context>
chip_gen: v7x
topology: tpu7x:2x2x1
jax: 0.10.0
libtpu: 0.0.40
codegen_flags: <defaults>
</compile_context>

<pallas_src>
import functools

import jax
import jax.numpy as jnp
from jax.experimental import pallas as pl
from jax.experimental.pallas import tpu as pltpu

# ---- small, TPU-friendly shapes consistent with the module ----
D_MODEL = 32          # d_model
NHEAD = 4             # nhead
HEAD_DIM = D_MODEL // NHEAD
DFF = 64              # dim_feedforward
NUM_QUERIES = 8
NUM_TOKENS = 16
BATCH = 2
LN_EPS = 1e-5

# ---------------------------------------------------------------------------
# Packed-parameter layout (all weights stored pre-transposed: x @ W.T == x @ wT)
#   weight slab: (64, 352) bf16 — columns laid out so no slice crosses a 128-lane boundary
#   vector slab: (16, 128) f32  — one bias / LayerNorm vector per row (lane-padded)
# ---------------------------------------------------------------------------
def _col_offsets():
    widths = [("sa_qkv", 3 * D_MODEL), ("sa_o", D_MODEL), ("ca_q", D_MODEL),
              ("ca_kv", 2 * D_MODEL), ("ca_o", D_MODEL), ("l1", DFF), ("l2", D_MODEL)]
    off, o = {}, 0
    for name, w in widths:
        off[name] = (o, o + w)
        o += w
    return off, o


_WOFF, _WCOLS = _col_offsets()          # total cols = 352
_WROWS = max(D_MODEL, DFF)              # 64 (only l2_wT uses all 64 rows)

_VROW = {"sa_qkv_b": 0, "sa_o_b": 1, "ca_q_b": 2, "ca_kv_b": 3, "ca_o_b": 4,
         "l1_b": 5, "l2_b": 6, "n1_w": 7, "n1_b": 8, "n2_w": 9, "n2_b": 10,
         "n3_w": 11, "n3_b": 12}
_VWIDTH = {"sa_qkv_b": 3 * D_MODEL, "sa_o_b": D_MODEL, "ca_q_b": D_MODEL,
           "ca_kv_b": 2 * D_MODEL, "ca_o_b": D_MODEL, "l1_b": DFF, "l2_b": D_MODEL,
           "n1_w": D_MODEL, "n1_b": D_MODEL, "n2_w": D_MODEL, "n2_b": D_MODEL,
           "n3_w": D_MODEL, "n3_b": D_MODEL}
_VPAD = 128
_VROWS = 16


def _wslice(w_ref, name, rows=D_MODEL):
    a, b = _WOFF[name]
    return w_ref[0:rows, a:b]


def _vrow(v_ref, name):
    r = _VROW[name]
    return v_ref[r:r + 1, 0:_VWIDTH[name]]


def _layernorm(x, w, b):
    # var = E[x^2] - E[x]^2 -> the two cross-lane reductions are independent (better XLU ILP)
    mu = jnp.mean(x, axis=-1, keepdims=True)
    ex2 = jnp.mean(x * x, axis=-1, keepdims=True)
    var = ex2 - mu * mu
    return (x - mu) * jax.lax.rsqrt(var + LN_EPS) * w + b


def _split_groups(x2d, groups, use_einshape):
    """(L, groups*HEAD_DIM) -> (groups, L, HEAD_DIM); columns are group-major."""
    L = x2d.shape[0]
    if use_einshape:
        # Single head-major relayout instead of `groups` lane slices interleaved with matmuls.
        return pltpu.einshape("lgd->gld", x2d.reshape(L, groups, HEAD_DIM))
    # Fallback: explicit lane slices + stack (always lowers; same math).
    return jnp.stack([x2d[:, g * HEAD_DIM:(g + 1) * HEAD_DIM] for g in range(groups)],
                     axis=0)


def _mha(q3, k3, v3, out_wT, out_b, bias):
    """Attention core on head-major tensors.

    q3: (H, Lq, D), k3/v3: (H, Lk, D), f32; 1/sqrt(D) is already folded into the Q
    projection. `bias` is an additive (1, Lk) key-padding bias or None (added once,
    broadcast over all heads). Scores / softmax / PV are batched over heads; the head
    concat + output projection is a single (Lq, C) x (C, C) matmul.
    """
    bf16 = jnp.bfloat16
    s = jnp.einsum("hqd,hkd->hqk", q3.astype(bf16), k3.astype(bf16),
                   preferred_element_type=jnp.float32)             # (H, Lq, Lk), f32 acc
    if bias is not None:
        s = s + bias                                               # one broadcast for all heads
    s = s - jnp.max(s, axis=-1, keepdims=True)
    p = jnp.exp(s)
    p = p * pl.reciprocal(jnp.sum(p, axis=-1, keepdims=True), approx=True)
    pv = jnp.einsum("hqk,hkd->hqd", p.astype(bf16), v3.astype(bf16),
                    preferred_element_type=jnp.float32)            # (H, Lq, D)
    o = jnp.concatenate([pv[h] for h in range(NHEAD)], axis=-1)    # (Lq, C), head-major cols
    return jnp.dot(o.astype(bf16), out_wT, preferred_element_type=jnp.float32) + out_b


def qformer_decoder_kernel(qe_ref, mem_ref, maskb_ref, w_ref, v_ref, out_ref,
                           *, use_einshape: bool):
    f32, bf16 = jnp.float32, jnp.bfloat16
    B = maskb_ref.shape[0]
    N = maskb_ref.shape[2]

    # ---- unpack fused parameter slabs (static ref slices; none crossing 128-lane tiles) ----
    sa_qkv_wT = _wslice(w_ref, "sa_qkv")           # (C, 3C) bf16, q-scale folded
    sa_owT = _wslice(w_ref, "sa_o")                # (C, C)  bf16
    ca_q_wT = _wslice(w_ref, "ca_q")               # (C, C)  bf16, scale folded
    ca_kv_wT = _wslice(w_ref, "ca_kv")             # (C, 2C) bf16
    ca_owT = _wslice(w_ref, "ca_o")                # (C, C)  bf16
    l1_wT = _wslice(w_ref, "l1")                   # (C, DFF) bf16
    l2_wT = _wslice(w_ref, "l2", rows=DFF)         # (DFF, C) bf16

    sa_qkv_b = _vrow(v_ref, "sa_qkv_b"); sa_ob = _vrow(v_ref, "sa_o_b")
    ca_q_b = _vrow(v_ref, "ca_q_b"); ca_kv_b = _vrow(v_ref, "ca_kv_b")
    ca_ob = _vrow(v_ref, "ca_o_b")
    l1_b = _vrow(v_ref, "l1_b"); l2_b = _vrow(v_ref, "l2_b")
    n1_w = _vrow(v_ref, "n1_w"); n1_b = _vrow(v_ref, "n1_b")
    n2_w = _vrow(v_ref, "n2_w"); n2_b = _vrow(v_ref, "n2_b")
    n3_w = _vrow(v_ref, "n3_w"); n3_b = _vrow(v_ref, "n3_b")

    qe = qe_ref[...]                               # (Q, C) f32 learnable queries (tgt)

    # TODO(synk): dropout layers are identity (eval-mode semantics).
    # ---- batch-invariant work (tgt == query_embed for every batch element):
    #      whole self-attention block + cross-attn query projection computed once.
    qkv = jnp.dot(qe.astype(bf16), sa_qkv_wT, preferred_element_type=f32) + sa_qkv_b  # (Q,3C)
    qkv3 = _split_groups(qkv, 3 * NHEAD, use_einshape)                                # (3H,Q,D)
    sa = _mha(qkv3[0:NHEAD], qkv3[NHEAD:2 * NHEAD], qkv3[2 * NHEAD:3 * NHEAD],
              sa_owT, sa_ob, None)
    x1 = _layernorm(qe + sa, n1_w, n1_b)                       # norm1(tgt + SA(tgt)), (Q, C)
    qx = jnp.dot(x1.astype(bf16), ca_q_wT, preferred_element_type=f32) + ca_q_b       # (Q, C)
    qx3 = _split_groups(qx, NHEAD, use_einshape)               # (H, Q, D)

    # ---- batch-stacked cross-attn KV projection: ONE matmul for all batch elements ----
    mem = mem_ref[...]                                         # (B*N, C) f32
    kv = jnp.dot(mem.astype(bf16), ca_kv_wT, preferred_element_type=f32) + ca_kv_b    # (B*N,2C)
    kv3 = _split_groups(kv, 2 * NHEAD, use_einshape)           # (2H, B*N, D)

    # ---- per-batch: only the mask-dependent score/softmax/PV + output projection ----
    rows = []
    for bi in range(B):                                        # static loop, B == 2
        k3 = kv3[0:NHEAD, bi * N:(bi + 1) * N, :]
        v3 = kv3[NHEAD:2 * NHEAD, bi * N:(bi + 1) * N, :]
        ca = _mha(qx3, k3, v3, ca_owT, ca_ob, maskb_ref[bi])   # (Q, C)
        rows.append(x1 + ca)

    # ---- batch-stacked norm2 + FFN + norm3, one combined (sublane-dense) store ----
    xs = jnp.concatenate(rows, axis=0)                         # (B*Q, C)
    x2 = _layernorm(xs, n2_w, n2_b)                            # norm2(x + CA(x, mem))
    h = jnp.maximum(jnp.dot(x2.astype(bf16), l1_wT, preferred_element_type=f32) + l1_b, 0.0)
    ff = jnp.dot(h.astype(bf16), l2_wT, preferred_element_type=f32) + l2_b
    x3 = _layernorm(x2 + ff, n3_w, n3_b)                       # norm3(x + FFN(x))
    out_ref[...] = x3.astype(out_ref.dtype)


def qformer_forward(src, mask, query_embed_weight, w_slab, v_slab):
    """Returns (hs [B, Q, C], memory == src [B, N, C])."""
    B, N, C = src.shape
    Q = query_embed_weight.shape[0]

    if mask is None:
        mask_bias = jnp.zeros((B, 1, N), jnp.float32)
    else:
        mask_bias = jnp.where(mask, -1e9, 0.0).astype(jnp.float32).reshape(B, 1, N)

    args = (query_embed_weight.astype(jnp.float32),
            src.astype(jnp.float32).reshape(B * N, C),          # batch-stacked memory
            mask_bias, w_slab, v_slab)

    def build(use_einshape):
        # Single grid step: the whole problem (<150 KB) is VMEM-resident and the kernel is
        # instruction-count bound, so one step beats a per-batch grid on single-TC chips.
        # TODO(synk): on v7x, benchmark a CORE_PARALLEL batch grid vs this single-step layout.
        return pl.pallas_call(
            functools.partial(qformer_decoder_kernel, use_einshape=use_einshape),
            grid=(1,),
            out_shape=jax.ShapeDtypeStruct((B * Q, C), jnp.float32),
            in_specs=[
                pl.BlockSpec((Q, C), lambda g: (0, 0)),         # query_embed (resident)
                pl.BlockSpec((B * N, C), lambda g: (0, 0)),     # memory, batch-stacked
                pl.BlockSpec((B, 1, N), lambda g: (0, 0, 0)),   # additive key-padding bias
                pl.BlockSpec(w_slab.shape, lambda g: (0, 0)),   # packed bf16 weights (resident)
                pl.BlockSpec(v_slab.shape, lambda g: (0, 0)),   # packed f32 biases / LN vectors
            ],
            out_specs=pl.BlockSpec((B * Q, C), lambda g: (0, 0)),
            compiler_params=pltpu.CompilerParams(dimension_semantics=("arbitrary",)),
        )

    try:
        hs_flat = jax.block_until_ready(build(True)(*args))
    except Exception:
        # Graceful fallback if the head-major reshape/einshape relayout is rejected by the
        # installed Mosaic version; identical math, lane-slice + stack head split instead.
        hs_flat = jax.block_until_ready(build(False)(*args))
    return hs_flat.reshape(B, Q, C), src


def init_params(key, d_model=D_MODEL, dff=DFF):
    """Deterministic xavier-uniform init for dim>1 params (matches _reset_parameters);
    biases zero, LayerNorm weight=1 bias=0. PyTorch (out, in) layout."""
    def xavier(k, shape):  # shape = (out, in)
        limit = (6.0 / (shape[0] + shape[1])) ** 0.5
        return jax.random.uniform(k, shape, jnp.float32, -limit, limit)

    ks = jax.random.split(key, 6)
    C = d_model
    p = {}
    p["sa_in_w"] = xavier(ks[0], (3 * C, C)); p["sa_in_b"] = jnp.zeros((3 * C,), jnp.float32)
    p["sa_out_w"] = xavier(ks[1], (C, C));    p["sa_out_b"] = jnp.zeros((C,), jnp.float32)
    p["ca_in_w"] = xavier(ks[2], (3 * C, C)); p["ca_in_b"] = jnp.zeros((3 * C,), jnp.float32)
    p["ca_out_w"] = xavier(ks[3], (C, C));    p["ca_out_b"] = jnp.zeros((C,), jnp.float32)
    p["l1_w"] = xavier(ks[4], (dff, C));      p["l1_b"] = jnp.zeros((dff,), jnp.float32)
    p["l2_w"] = xavier(ks[5], (C, dff));      p["l2_b"] = jnp.zeros((C,), jnp.float32)
    for i in (1, 2, 3):
        p[f"n{i}_w"] = jnp.ones((C,), jnp.float32)
        p[f"n{i}_b"] = jnp.zeros((C,), jnp.float32)
    return p


def pack_params(p, d_model=D_MODEL, dff=DFF):
    """Pack all parameters into two resident slabs:
         w_slab (64, 352) bf16 — pre-transposed weights, 1/sqrt(head_dim) folded into Q proj
         v_slab (16, 128) f32  — biases + LayerNorm vectors (Q-proj biases scaled too)
    """
    C = d_model
    rows = max(C, dff)
    scale = 1.0 / (HEAD_DIM ** 0.5)

    # fold the attention scale into the Q projections (weights AND biases)
    sa_in_w = jnp.concatenate([p["sa_in_w"][:C] * scale, p["sa_in_w"][C:]], axis=0)
    sa_in_b = jnp.concatenate([p["sa_in_b"][:C] * scale, p["sa_in_b"][C:]], axis=0)
    ca_q_w = p["ca_in_w"][:C] * scale
    ca_q_b = p["ca_in_b"][:C] * scale

    def pad_rows(w):
        r = w.shape[0]
        if r < rows:
            w = jnp.concatenate([w, jnp.zeros((rows - r, w.shape[1]), w.dtype)], axis=0)
        return w

    # pre-transposed weights in the fused layout used by the kernel
    weights = [
        sa_in_w.T,                 # sa_qkv_wT (C, 3C)
        p["sa_out_w"].T,           # sa_owT    (C, C)
        ca_q_w.T,                  # ca_q_wT   (C, C)
        p["ca_in_w"][C:].T,        # ca_kv_wT  (C, 2C)
        p["ca_out_w"].T,           # ca_owT    (C, C)
        p["l1_w"].T,               # l1_wT     (C, DFF)
        p["l2_w"].T,               # l2_wT     (DFF, C)
    ]
    w_slab = jnp.concatenate([pad_rows(w) for w in weights], axis=1).astype(jnp.bfloat16)

    vec_list = [sa_in_b, p["sa_out_b"], ca_q_b, p["ca_in_b"][C:],
                p["ca_out_b"], p["l1_b"], p["l2_b"],
                p["n1_w"], p["n1_b"], p["n2_w"], p["n2_b"], p["n3_w"], p["n3_b"]]
    rows_v = [jnp.pad(v.astype(jnp.float32), (0, _VPAD - v.shape[0])) for v in vec_list]
    while len(rows_v) < _VROWS:
        rows_v.append(jnp.zeros((_VPAD,), jnp.float32))
    v_slab = jnp.stack(rows_v, axis=0)  # (16, 128) f32
    return w_slab, v_slab


if __name__ == "__main__":
    root = jax.random.PRNGKey(0)
    k_src, k_query, k_params = jax.random.split(root, 3)

    src = jax.random.normal(k_src, (BATCH, NUM_TOKENS, D_MODEL), jnp.float32)
    query_embed_weight = jax.random.normal(k_query, (NUM_QUERIES, D_MODEL), jnp.float32)
    # key-padding mask: batch 0 keeps all tokens, batch 1 masks the last 5
    lengths = jnp.array([NUM_TOKENS, NUM_TOKENS - 5])
    mask = jnp.arange(NUM_TOKENS)[None, :] >= lengths[:, None]   # [B, N] bool, True = masked

    params = init_params(k_params)
    w_slab, v_slab = pack_params(params)

    hs, memory = qformer_forward(src, mask, query_embed_weight, w_slab, v_slab)
    hs = jax.block_until_ready(hs)
    memory = jax.block_until_ready(memory)

    assert hs.shape == (BATCH, NUM_QUERIES, D_MODEL)
    assert memory.shape == (BATCH, NUM_TOKENS, D_MODEL)
    assert bool(jnp.all(jnp.isfinite(hs)))
    print("KERNEL_OK")
</pallas_src>

<mosaic_0001>
module attributes {stable_mosaic.version = 11 : i64} {
  func.func @qformer_decoder_kernel(%arg0: i32, %arg1: memref<8x32xf32, #tpu.memory_space<vmem>>, %arg2: memref<32x32xf32, #tpu.memory_space<vmem>>, %arg3: memref<2x1x16xf32, #tpu.memory_space<vmem>>, %arg4: memref<64x352xbf16, #tpu.memory_space<vmem>>, %arg5: memref<16x128xf32, #tpu.memory_space<vmem>>, %arg6: memref<16x32xf32, #tpu.memory_space<vmem>>) attributes {dimension_semantics = [#tpu.dimension_semantics<arbitrary>], iteration_bounds = array<i64: 1>, scalar_prefetch = 0 : i64, scratch_operands = 0 : i64, tpu.core_type = #tpu.core_type<tc>, window_params = [{pipeline_mode = #tpu.pipeline_mode<synchronous>, transform_indices = @transform_0, window_bounds = array<i64: 8, 32>}, {pipeline_mode = #tpu.pipeline_mode<synchronous>, transform_indices = @transform_1, window_bounds = array<i64: 32, 32>}, {pipeline_mode = #tpu.pipeline_mode<synchronous>, transform_indices = @transform_2, window_bounds = array<i64: 2, 1, 16>}, {pipeline_mode = #tpu.pipeline_mode<synchronous>, transform_indices = @transform_3, window_bounds = array<i64: 64, 352>}, {pipeline_mode = #tpu.pipeline_mode<synchronous>, transform_indices = @transform_4, window_bounds = array<i64: 16, 128>}, {pipeline_mode = #tpu.pipeline_mode<synchronous>, transform_indices = @transform_5, window_bounds = array<i64: 16, 32>}]} {
    %c0 = arith.constant 0 : index
    %c0_0 = arith.constant 0 : index
    %0 = vector.load %arg4[%c0, %c0_0] : memref<64x352xbf16, #tpu.memory_space<vmem>>, vector<32x96xbf16>
    %c0_1 = arith.constant 0 : index
    %c96 = arith.constant 96 : index
    %1 = vector.load %arg4[%c0_1, %c96] : memref<64x352xbf16, #tpu.memory_space<vmem>>, vector<32x32xbf16>
    %c0_2 = arith.constant 0 : index
    %c128 = arith.constant 128 : index
    %2 = vector.load %arg4[%c0_2, %c128] : memref<64x352xbf16, #tpu.memory_space<vmem>>, vector<32x32xbf16>
    %c0_3 = arith.constant 0 : index
    %c160 = arith.constant 160 : index
    %3 = vector.load %arg4[%c0_3, %c160] : memref<64x352xbf16, #tpu.memory_space<vmem>>, vector<32x64xbf16>
    %c0_4 = arith.constant 0 : index
    %c224 = arith.constant 224 : index
    %4 = vector.load %arg4[%c0_4, %c224] : memref<64x352xbf16, #tpu.memory_space<vmem>>, vector<32x32xbf16>
    %c0_5 = arith.constant 0 : index
    %c256 = arith.constant 256 : index
    %5 = vector.load %arg4[%c0_5, %c256] : memref<64x352xbf16, #tpu.memory_space<vmem>>, vector<32x64xbf16>
    %c0_6 = arith.constant 0 : index
    %c320 = arith.constant 320 : index
    %6 = vector.load %arg4[%c0_6, %c320] : memref<64x352xbf16, #tpu.memory_space<vmem>>, vector<64x32xbf16>
    %c0_7 = arith.constant 0 : index
    %c0_8 = arith.constant 0 : index
    %7 = vector.load %arg5[%c0_7, %c0_8] : memref<16x128xf32, #tpu.memory_space<vmem>>, vector<1x96xf32>
    %c1 = arith.constant 1 : index
    %c0_9 = arith.constant 0 : index
    %8 = vector.load %arg5[%c1, %c0_9] : memref<16x128xf32, #tpu.memory_space<vmem>>, vector<1x32xf32>
    %c2 = arith.constant 2 : index
    %c0_10 = arith.constant 0 : index
    %9 = vector.load %arg5[%c2, %c0_10] : memref<16x128xf32, #tpu.memory_space<vmem>>, vector<1x32xf32>
    %c3 = arith.constant 3 : index
    %c0_11 = arith.constant 0 : index
    %10 = vector.load %arg5[%c3, %c0_11] : memref<16x128xf32, #tpu.memory_space<vmem>>, vector<1x64xf32>
    %c4 = arith.constant 4 : index
    %c0_12 = arith.constant 0 : index
    %11 = vector.load %arg5[%c4, %c0_12] : memref<16x128xf32, #tpu.memory_space<vmem>>, vector<1x32xf32>
    %c5 = arith.constant 5 : index
    %c0_13 = arith.constant 0 : index
    %12 = vector.load %arg5[%c5, %c0_13] : memref<16x128xf32, #tpu.memory_space<vmem>>, vector<1x64xf32>
    %c6 = arith.constant 6 : index
    %c0_14 = arith.constant 0 : index
    %13 = vector.load %arg5[%c6, %c0_14] : memref<16x128xf32, #tpu.memory_space<vmem>>, vector<1x32xf32>
    %c7 = arith.constant 7 : index
    %c0_15 = arith.constant 0 : index
    %14 = vector.load %arg5[%c7, %c0_15] : memref<16x128xf32, #tpu.memory_space<vmem>>, vector<1x32xf32>
    %c8 = arith.constant 8 : index
    %c0_16 = arith.constant 0 : index
    %15 = vector.load %arg5[%c8, %c0_16] : memref<16x128xf32, #tpu.memory_space<vmem>>, vector<1x32xf32>
    %c9 = arith.constant 9 : index
    %c0_17 = arith.constant 0 : index
    %16 = vector.load %arg5[%c9, %c0_17] : memref<16x128xf32, #tpu.memory_space<vmem>>, vector<1x32xf32>
    %c10 = arith.constant 10 : index
    %c0_18 = arith.constant 0 : index
    %17 = vector.load %arg5[%c10, %c0_18] : memref<16x128xf32, #tpu.memory_space<vmem>>, vector<1x32xf32>
    %c11 = arith.constant 11 : index
    %c0_19 = arith.constant 0 : index
    %18 = vector.load %arg5[%c11, %c0_19] : memref<16x128xf32, #tpu.memory_space<vmem>>, vector<1x32xf32>
    %c12 = arith.constant 12 : index
    %c0_20 = arith.constant 0 : index
    %19 = vector.load %arg5[%c12, %c0_20] : memref<16x128xf32, #tpu.memory_space<vmem>>, vector<1x32xf32>
    %c0_21 = arith.constant 0 : index
    %c0_22 = arith.constant 0 : index
    %20 = vector.load %arg1[%c0_21, %c0_22] : memref<8x32xf32, #tpu.memory_space<vmem>>, vector<8x32xf32>
    %21 = arith.truncf %20 : vector<8x32xf32> to vector<8x32xbf16>
    %cst = arith.constant dense<0.000000e+00> : vector<8x96xf32>
    %22 = tpu.matmul %21, %0, %cst {dimension_numbers = #tpu.dot_dimension_numbers<[1], [0], [0], [1], [0, 0, 1, 1], [], []>} : vector<8x32xbf16>, vector<32x96xbf16>, vector<8x96xf32> -> vector<8x96xf32>
    %23 = vector.broadcast %7 : vector<1x96xf32> to vector<8x96xf32>
    %24 = arith.addf %22, %23 : vector<8x96xf32>
    %25 = vector.shape_cast %24 : vector<8x96xf32> to vector<8x12x8xf32>
    %26 = tpu.transpose %25, [1, 0, 2] : vector<8x12x8xf32> -> vector<12x8x8xf32>
    %27 = vector.extract_strided_slice %26 {offsets = [0, 0, 0], sizes = [4, 8, 8], strides = [1, 1, 1]} : vector<12x8x8xf32> to vector<4x8x8xf32>
    %28 = vector.extract_strided_slice %26 {offsets = [4, 0, 0], sizes = [4, 8, 8], strides = [1, 1, 1]} : vector<12x8x8xf32> to vector<4x8x8xf32>
    %29 = vector.extract_strided_slice %26 {offsets = [8, 0, 0], sizes = [4, 8, 8], strides = [1, 1, 1]} : vector<12x8x8xf32> to vector<4x8x8xf32>
    %30 = arith.truncf %27 : vector<4x8x8xf32> to vector<4x8x8xbf16>
    %31 = arith.truncf %28 : vector<4x8x8xf32> to vector<4x8x8xbf16>
    "tpu.trace_start"() <{level = 10 : i32, message = "hqd,hkd->hqk"}> : () -> ()
    %cst_23 = arith.constant dense<0.000000e+00> : vector<4x8x8xf32>
    %32 = tpu.matmul %30, %31, %cst_23 {dimension_numbers = #tpu.dot_dimension_numbers<[2], [2], [1], [1], [0, 0, 0, 1, 1, 1], [0], [0]>} : vector<4x8x8xbf16>, vector<4x8x8xbf16>, vector<4x8x8xf32> -> vector<4x8x8xf32>
    "tpu.trace_stop"() : () -> ()
    %cst_24 = arith.constant dense<0xFF800000> : vector<4x8xf32>
    %33 = vector.multi_reduction <maximumf>, %32, %cst_24 [2] : vector<4x8x8xf32> to vector<4x8xf32>
    %34 = vector.shape_cast %33 : vector<4x8xf32> to vector<4x8x1xf32>
    %35 = vector.broadcast %34 : vector<4x8x1xf32> to vector<4x8x8xf32>
    %36 = arith.subf %32, %35 : vector<4x8x8xf32>
    %37 = math.exp %36 : vector<4x8x8xf32>
    %cst_25 = arith.constant dense<0.000000e+00> : vector<4x8xf32>
    %38 = vector.multi_reduction <add>, %37, %cst_25 [2] : vector<4x8x8xf32> to vector<4x8xf32>
    %39 = vector.shape_cast %38 : vector<4x8xf32> to vector<4x8x1xf32>
    %40 = tpu.reciprocal %39 {approx = true} : vector<4x8x1xf32> -> vector<4x8x1xf32>
    %41 = vector.broadcast %40 : vector<4x8x1xf32> to vector<4x8x8xf32>
    %42 = arith.mulf %37, %41 : vector<4x8x8xf32>
    %43 = arith.truncf %42 : vector<4x8x8xf32> to vector<4x8x8xbf16>
    %44 = arith.truncf %29 : vector<4x8x8xf32> to vector<4x8x8xbf16>
    "tpu.trace_start"() <{level = 10 : i32, message = "hqk,hkd->hqd"}> : () -> ()
    %cst_26 = arith.constant dense<0.000000e+00> : vector<4x8x8xf32>
    %45 = tpu.matmul %43, %44, %cst_26 {dimension_numbers = #tpu.dot_dimension_numbers<[2], [1], [1], [2], [0, 0, 0, 1, 1, 2], [0], [0]>} : vector<4x8x8xbf16>, vector<4x8x8xbf16>, vector<4x8x8xf32> -> vector<4x8x8xf32>
    "tpu.trace_stop"() : () -> ()
    %46 = vector.extract_strided_slice %45 {offsets = [0, 0, 0], sizes = [1, 8, 8], strides = [1, 1, 1]} : vector<4x8x8xf32> to vector<1x8x8xf32>
    %47 = vector.shape_cast %46 : vector<1x8x8xf32> to vector<8x8xf32>
    %48 = vector.extract_strided_slice %45 {offsets = [1, 0, 0], sizes = [1, 8, 8], strides = [1, 1, 1]} : vector<4x8x8xf32> to vector<1x8x8xf32>
    %49 = vector.shape_cast %48 : vector<1x8x8xf32> to vector<8x8xf32>
    %50 = vector.extract_strided_slice %45 {offsets = [2, 0, 0], sizes = [1, 8, 8], strides = [1, 1, 1]} : vector<4x8x8xf32> to vector<1x8x8xf32>
    %51 = vector.shape_cast %50 : vector<1x8x8xf32> to vector<8x8xf32>
    %52 = vector.extract_strided_slice %45 {offsets = [3, 0, 0], sizes = [1, 8, 8], strides = [1, 1, 1]} : vector<4x8x8xf32> to vector<1x8x8xf32>
    %53 = vector.shape_cast %52 : vector<1x8x8xf32> to vector<8x8xf32>
    %54 = tpu.concatenate %47, %49, %51, %53 in 1 : vector<8x8xf32>, vector<8x8xf32>, vector<8x8xf32>, vector<8x8xf32> -> vector<8x32xf32>
    %55 = arith.truncf %54 : vector<8x32xf32> to vector<8x32xbf16>
    %cst_27 = arith.constant dense<0.000000e+00> : vector<8x32xf32>
    %56 = tpu.matmul %55, %1, %cst_27 {dimension_numbers = #tpu.dot_dimension_numbers<[1], [0], [0], [1], [0, 0, 1, 1], [], []>} : vector<8x32xbf16>, vector<32x32xbf16>, vector<8x32xf32> -> vector<8x32xf32>
    %57 = vector.broadcast %8 : vector<1x32xf32> to vector<8x32xf32>
    %58 = arith.addf %56, %57 : vector<8x32xf32>
    %59 = arith.addf %20, %58 : vector<8x32xf32>
    %cst_28 = arith.constant dense<0.000000e+00> : vector<8xf32>
    %60 = vector.multi_reduction <add>, %59, %cst_28 [1] : vector<8x32xf32> to vector<8xf32>
    %61 = vector.shape_cast %60 : vector<8xf32> to vector<8x1xf32>
    %cst_29 = arith.constant 3.200000e+01 : f32
    %62 = vector.broadcast %cst_29 : f32 to vector<8x1xf32>
    %63 = arith.divf %61, %62 : vector<8x1xf32>
    %64 = arith.mulf %59, %59 : vector<8x32xf32>
    %cst_30 = arith.constant dense<0.000000e+00> : vector<8xf32>
    %65 = vector.multi_reduction <add>, %64, %cst_30 [1] : vector<8x32xf32> to vector<8xf32>
    %66 = vector.shape_cast %65 : vector<8xf32> to vector<8x1xf32>
    %cst_31 = arith.constant 3.200000e+01 : f32
    %67 = vector.broadcast %cst_31 : f32 to vector<8x1xf32>
    %68 = arith.divf %66, %67 : vector<8x1xf32>
    %69 = arith.mulf %63, %63 : vector<8x1xf32>
    %70 = arith.subf %68, %69 : vector<8x1xf32>
    %71 = vector.broadcast %63 : vector<8x1xf32> to vector<8x32xf32>
    %72 = arith.subf %59, %71 : vector<8x32xf32>
    %cst_32 = arith.constant 9.99999974E-6 : f32
    %73 = vector.broadcast %cst_32 : f32 to vector<8x1xf32>
    %74 = arith.addf %70, %73 : vector<8x1xf32>
    %75 = math.rsqrt %74 : vector<8x1xf32>
    %76 = vector.broadcast %75 : vector<8x1xf32> to vector<8x32xf32>
    %77 = arith.mulf %72, %76 : vector<8x32xf32>
    %78 = vector.broadcast %14 : vector<1x32xf32> to vector<8x32xf32>
    %79 = arith.mulf %77, %78 : vector<8x32xf32>
    %80 = vector.broadcast %15 : vector<1x32xf32> to vector<8x32xf32>
    %81 = arith.addf %79, %80 : vector<8x32xf32>
    %82 = arith.truncf %81 : vector<8x32xf32> to vector<8x32xbf16>
    %cst_33 = arith.constant dense<0.000000e+00> : vector<8x32xf32>
    %83 = tpu.matmul %82, %2, %cst_33 {dimension_numbers = #tpu.dot_dimension_numbers<[1], [0], [0], [1], [0, 0, 1, 1], [], []>} : vector<8x32xbf16>, vector<32x32xbf16>, vector<8x32xf32> -> vector<8x32xf32>
    %84 = vector.broadcast %9 : vector<1x32xf32> to vector<8x32xf32>
    %85 = arith.addf %83, %84 : vector<8x32xf32>
    %86 = vector.shape_cast %85 : vector<8x32xf32> to vector<8x4x8xf32>
    %87 = tpu.transpose %86, [1, 0, 2] : vector<8x4x8xf32> -> vector<4x8x8xf32>
    %c0_34 = arith.constant 0 : index
    %c0_35 = arith.constant 0 : index
    %88 = vector.load %arg2[%c0_34, %c0_35] : memref<32x32xf32, #tpu.memory_space<vmem>>, vector<32x32xf32>
    %89 = arith.truncf %88 : vector<32x32xf32> to vector<32x32xbf16>
    %cst_36 = arith.constant dense<0.000000e+00> : vector<32x64xf32>
    %90 = tpu.matmul %89, %3, %cst_36 {dimension_numbers = #tpu.dot_dimension_numbers<[1], [0], [0], [1], [0, 0, 1, 1], [], []>} : vector<32x32xbf16>, vector<32x64xbf16>, vector<32x64xf32> -> vector<32x64xf32>
    %91 = vector.broadcast %10 : vector<1x64xf32> to vector<32x64xf32>
    %92 = arith.addf %90, %91 : vector<32x64xf32>
    %93 = vector.shape_cast %92 : vector<32x64xf32> to vector<32x8x8xf32>
    %94 = tpu.transpose %93, [1, 0, 2] : vector<32x8x8xf32> -> vector<8x32x8xf32>
    %95 = vector.extract_strided_slice %94 {offsets = [0, 0, 0], sizes = [4, 16, 8], strides = [1, 1, 1]} : vector<8x32x8xf32> to vector<4x16x8xf32>
    %96 = vector.extract_strided_slice %94 {offsets = [4, 0, 0], sizes = [4, 16, 8], strides = [1, 1, 1]} : vector<8x32x8xf32> to vector<4x16x8xf32>
    %c0_37 = arith.constant 0 : index
    %c0_38 = arith.constant 0 : index
    %c0_39 = arith.constant 0 : index
    %97 = vector.load %arg3[%c0_37, %c0_38, %c0_39] : memref<2x1x16xf32, #tpu.memory_space<vmem>>, vector<1x1x16xf32>
    %98 = vector.shape_cast %97 : vector<1x1x16xf32> to vector<1x16xf32>
    %99 = arith.truncf %87 : vector<4x8x8xf32> to vector<4x8x8xbf16>
    %100 = arith.truncf %95 : vector<4x16x8xf32> to vector<4x16x8xbf16>
    "tpu.trace_start"() <{level = 10 : i32, message = "hqd,hkd->hqk"}> : () -> ()
    %cst_40 = arith.constant dense<0.000000e+00> : vector<4x8x16xf32>
    %101 = tpu.matmul %99, %100, %cst_40 {dimension_numbers = #tpu.dot_dimension_numbers<[2], [2], [1], [1], [0, 0, 0, 1, 1, 1], [0], [0]>} : vector<4x8x8xbf16>, vector<4x16x8xbf16>, vector<4x8x16xf32> -> vector<4x8x16xf32>
    "tpu.trace_stop"() : () -> ()
    %102 = vector.shape_cast %98 : vector<1x16xf32> to vector<1x1x16xf32>
    %103 = vector.broadcast %102 : vector<1x1x16xf32> to vector<4x8x16xf32>
    %104 = arith.addf %101, %103 : vector<4x8x16xf32>
    %cst_41 = arith.constant dense<0xFF800000> : vector<4x8xf32>
    %105 = vector.multi_reduction <maximumf>, %104, %cst_41 [2] : vector<4x8x16xf32> to vector<4x8xf32>
    %106 = vector.shape_cast %105 : vector<4x8xf32> to vector<4x8x1xf32>
    %107 = vector.broadcast %106 : vector<4x8x1xf32> to vector<4x8x16xf32>
    %108 = arith.subf %104, %107 : vector<4x8x16xf32>
    %109 = math.exp %108 : vector<4x8x16xf32>
    %cst_42 = arith.constant dense<0.000000e+00> : vector<4x8xf32>
    %110 = vector.multi_reduction <add>, %109, %cst_42 [2] : vector<4x8x16xf32> to vector<4x8xf32>
    %111 = vector.shape_cast %110 : vector<4x8xf32> to vector<4x8x1xf32>
    %112 = tpu.reciprocal %111 {approx = true} : vector<4x8x1xf32> -> vector<4x8x1xf32>
    %113 = vector.broadcast %112 : vector<4x8x1xf32> to vector<4x8x16xf32>
    %114 = arith.mulf %109, %113 : vector<4x8x16xf32>
    %115 = arith.truncf %114 : vector<4x8x16xf32> to vector<4x8x16xbf16>
    %116 = arith.truncf %96 : vector<4x16x8xf32> to vector<4x16x8xbf16>
    "tpu.trace_start"() <{level = 10 : i32, message = "hqk,hkd->hqd"}> : () -> ()
    %cst_43 = arith.constant dense<0.000000e+00> : vector<4x8x8xf32>
    %117 = tpu.matmul %115, %116, %cst_43 {dimension_numbers = #tpu.dot_dimension_numbers<[2], [1], [1], [2], [0, 0, 0, 1, 1, 2], [0], [0]>} : vector<4x8x16xbf16>, vector<4x16x8xbf16>, vector<4x8x8xf32> -> vector<4x8x8xf32>
    "tpu.trace_stop"() : () -> ()
    %118 = vector.extract_strided_slice %117 {offsets = [0, 0, 0], sizes = [1, 8, 8], strides = [1, 1, 1]} : vector<4x8x8xf32> to vector<1x8x8xf32>
    %119 = vector.shape_cast %118 : vector<1x8x8xf32> to vector<8x8xf32>
    %120 = vector.extract_strided_slice %117 {offsets = [1, 0, 0], sizes = [1, 8, 8], strides = [1, 1, 1]} : vector<4x8x8xf32> to vector<1x8x8xf32>
    %121 = vector.shape_cast %120 : vector<1x8x8xf32> to vector<8x8xf32>
    %122 = vector.extract_strided_slice %117 {offsets = [2, 0, 0], sizes = [1, 8, 8], strides = [1, 1, 1]} : vector<4x8x8xf32> to vector<1x8x8xf32>
    %123 = vector.shape_cast %122 : vector<1x8x8xf32> to vector<8x8xf32>
    %124 = vector.extract_strided_slice %117 {offsets = [3, 0, 0], sizes = [1, 8, 8], strides = [1, 1, 1]} : vector<4x8x8xf32> to vector<1x8x8xf32>
    %125 = vector.shape_cast %124 : vector<1x8x8xf32> to vector<8x8xf32>
    %126 = tpu.concatenate %119, %121, %123, %125 in 1 : vector<8x8xf32>, vector<8x8xf32>, vector<8x8xf32>, vector<8x8xf32> -> vector<8x32xf32>
    %127 = arith.truncf %126 : vector<8x32xf32> to vector<8x32xbf16>
    %cst_44 = arith.constant dense<0.000000e+00> : vector<8x32xf32>
    %128 = tpu.matmul %127, %4, %cst_44 {dimension_numbers = #tpu.dot_dimension_numbers<[1], [0], [0], [1], [0, 0, 1, 1], [], []>} : vector<8x32xbf16>, vector<32x32xbf16>, vector<8x32xf32> -> vector<8x32xf32>
    %129 = vector.broadcast %11 : vector<1x32xf32> to vector<8x32xf32>
    %130 = arith.addf %128, %129 : vector<8x32xf32>
    %131 = arith.addf %81, %130 : vector<8x32xf32>
    %132 = vector.extract_strided_slice %94 {offsets = [0, 16, 0], sizes = [4, 16, 8], strides = [1, 1, 1]} : vector<8x32x8xf32> to vector<4x16x8xf32>
    %133 = vector.extract_strided_slice %94 {offsets = [4, 16, 0], sizes = [4, 16, 8], strides = [1, 1, 1]} : vector<8x32x8xf32> to vector<4x16x8xf32>
    %c1_45 = arith.constant 1 : index
    %c0_46 = arith.constant 0 : index
    %c0_47 = arith.constant 0 : index
    %134 = vector.load %arg3[%c1_45, %c0_46, %c0_47] : memref<2x1x16xf32, #tpu.memory_space<vmem>>, vector<1x1x16xf32>
    %135 = vector.shape_cast %134 : vector<1x1x16xf32> to vector<1x16xf32>
    %136 = arith.truncf %87 : vector<4x8x8xf32> to vector<4x8x8xbf16>
    %137 = arith.truncf %132 : vector<4x16x8xf32> to vector<4x16x8xbf16>
    "tpu.trace_start"() <{level = 10 : i32, message = "hqd,hkd->hqk"}> : () -> ()
    %cst_48 = arith.constant dense<0.000000e+00> : vector<4x8x16xf32>
    %138 = tpu.matmul %136, %137, %cst_48 {dimension_numbers = #tpu.dot_dimension_numbers<[2], [2], [1], [1], [0, 0, 0, 1, 1, 1], [0], [0]>} : vector<4x8x8xbf16>, vector<4x16x8xbf16>, vector<4x8x16xf32> -> vector<4x8x16xf32>
    "tpu.trace_stop"() : () -> ()
    %139 = vector.shape_cast %135 : vector<1x16xf32> to vector<1x1x16xf32>
    %140 = vector.broadcast %139 : vector<1x1x16xf32> to vector<4x8x16xf32>
    %141 = arith.addf %138, %140 : vector<4x8x16xf32>
    %cst_49 = arith.constant dense<0xFF800000> : vector<4x8xf32>
    %142 = vector.multi_reduction <maximumf>, %141, %cst_49 [2] : vector<4x8x16xf32> to vector<4x8xf32>
    %143 = vector.shape_cast %142 : vector<4x8xf32> to vector<4x8x1xf32>
    %144 = vector.broadcast %143 : vector<4x8x1xf32> to vector<4x8x16xf32>
    %145 = arith.subf %141, %144 : vector<4x8x16xf32>
    %146 = math.exp %145 : vector<4x8x16xf32>
    %cst_50 = arith.constant dense<0.000000e+00> : vector<4x8xf32>
    %147 = vector.multi_reduction <add>, %146, %cst_50 [2] : vector<4x8x16xf32> to vector<4x8xf32>
    %148 = vector.shape_cast %147 : vector<4x8xf32> to vector<4x8x1xf32>
    %149 = tpu.reciprocal %148 {approx = true} : vector<4x8x1xf32> -> vector<4x8x1xf32>
    %150 = vector.broadcast %149 : vector<4x8x1xf32> to vector<4x8x16xf32>
    %151 = arith.mulf %146, %150 : vector<4x8x16xf32>
    %152 = arith.truncf %151 : vector<4x8x16xf32> to vector<4x8x16xbf16>
    %153 = arith.truncf %133 : vector<4x16x8xf32> to vector<4x16x8xbf16>
    "tpu.trace_start"() <{level = 10 : i32, message = "hqk,hkd->hqd"}> : () -> ()
    %cst_51 = arith.constant dense<0.000000e+00> : vector<4x8x8xf32>
    %154 = tpu.matmul %152, %153, %cst_51 {dimension_numbers = #tpu.dot_dimension_numbers<[2], [1], [1], [2], [0, 0, 0, 1, 1, 2], [0], [0]>} : vector<4x8x16xbf16>, vector<4x16x8xbf16>, vector<4x8x8xf32> -> vector<4x8x8xf32>
    "tpu.trace_stop"() : () -> ()
    %155 = vector.extract_strided_slice %154 {offsets = [0, 0, 0], sizes = [1, 8, 8], strides = [1, 1, 1]} : vector<4x8x8xf32> to vector<1x8x8xf32>
    %156 = vector.shape_cast %155 : vector<1x8x8xf32> to vector<8x8xf32>
    %157 = vector.extract_strided_slice %154 {offsets = [1, 0, 0], sizes = [1, 8, 8], strides = [1, 1, 1]} : vector<4x8x8xf32> to vector<1x8x8xf32>
    %158 = vector.shape_cast %157 : vector<1x8x8xf32> to vector<8x8xf32>
    %159 = vector.extract_strided_slice %154 {offsets = [2, 0, 0], sizes = [1, 8, 8], strides = [1, 1, 1]} : vector<4x8x8xf32> to vector<1x8x8xf32>
    %160 = vector.shape_cast %159 : vector<1x8x8xf32> to vector<8x8xf32>
    %161 = vector.extract_strided_slice %154 {offsets = [3, 0, 0], sizes = [1, 8, 8], strides = [1, 1, 1]} : vector<4x8x8xf32> to vector<1x8x8xf32>
    %162 = vector.shape_cast %161 : vector<1x8x8xf32> to vector<8x8xf32>
    %163 = tpu.concatenate %156, %158, %160, %162 in 1 : vector<8x8xf32>, vector<8x8xf32>, vector<8x8xf32>, vector<8x8xf32> -> vector<8x32xf32>
    %164 = arith.truncf %163 : vector<8x32xf32> to vector<8x32xbf16>
    %cst_52 = arith.constant dense<0.000000e+00> : vector<8x32xf32>
    %165 = tpu.matmul %164, %4, %cst_52 {dimension_numbers = #tpu.dot_dimension_numbers<[1], [0], [0], [1], [0, 0, 1, 1], [], []>} : vector<8x32xbf16>, vector<32x32xbf16>, vector<8x32xf32> -> vector<8x32xf32>
    %166 = vector.broadcast %11 : vector<1x32xf32> to vector<8x32xf32>
    %167 = arith.addf %165, %166 : vector<8x32xf32>
    %168 = arith.addf %81, %167 : vector<8x32xf32>
    %169 = tpu.concatenate %131, %168 in 0 : vector<8x32xf32>, vector<8x32xf32> -> vector<16x32xf32>
    %cst_53 = arith.constant dense<0.000000e+00> : vector<16xf32>
    %170 = vector.multi_reduction <add>, %169, %cst_53 [1] : vector<16x32xf32> to vector<16xf32>
    %171 = vector.shape_cast %170 : vector<16xf32> to vector<16x1xf32>
    %cst_54 = arith.constant 3.200000e+01 : f32
    %172 = vector.broadcast %cst_54 : f32 to vector<16x1xf32>
    %173 = arith.divf %171, %172 : vector<16x1xf32>
    %174 = arith.mulf %169, %169 : vector<16x32xf32>
    %cst_55 = arith.constant dense<0.000000e+00> : vector<16xf32>
    %175 = vector.multi_reduction <add>, %174, %cst_55 [1] : vector<16x32xf32> to vector<16xf32>
    %176 = vector.shape_cast %175 : vector<16xf32> to vector<16x1xf32>
    %cst_56 = arith.constant 3.200000e+01 : f32
    %177 = vector.broadcast %cst_56 : f32 to vector<16x1xf32>
    %178 = arith.divf %176, %177 : vector<16x1xf32>
    %179 = arith.mulf %173, %173 : vector<16x1xf32>
    %180 = arith.subf %178, %179 : vector<16x1xf32>
    %181 = vector.broadcast %173 : vector<16x1xf32> to vector<16x32xf32>
    %182 = arith.subf %169, %181 : vector<16x32xf32>
    %cst_57 = arith.constant 9.99999974E-6 : f32
    %183 = vector.broadcast %cst_57 : f32 to vector<16x1xf32>
    %184 = arith.addf %180, %183 : vector<16x1xf32>
    %185 = math.rsqrt %184 : vector<16x1xf32>
    %186 = vector.broadcast %185 : vector<16x1xf32> to vector<16x32xf32>
    %187 = arith.mulf %182, %186 : vector<16x32xf32>
    %188 = vector.broadcast %16 : vector<1x32xf32> to vector<16x32xf32>
    %189 = arith.mulf %187, %188 : vector<16x32xf32>
    %190 = vector.broadcast %17 : vector<1x32xf32> to vector<16x32xf32>
    %191 = arith.addf %189, %190 : vector<16x32xf32>
    %192 = arith.truncf %191 : vector<16x32xf32> to vector<16x32xbf16>
    %cst_58 = arith.constant dense<0.000000e+00> : vector<16x64xf32>
    %193 = tpu.matmul %192, %5, %cst_58 {dimension_numbers = #tpu.dot_dimension_numbers<[1], [0], [0], [1], [0, 0, 1, 1], [], []>} : vector<16x32xbf16>, vector<32x64xbf16>, vector<16x64xf32> -> vector<16x64xf32>
    %194 = vector.broadcast %12 : vector<1x64xf32> to vector<16x64xf32>
    %195 = arith.addf %193, %194 : vector<16x64xf32>
    %cst_59 = arith.constant 0.000000e+00 : f32
    %196 = vector.broadcast %cst_59 : f32 to vector<16x64xf32>
    %197 = arith.maximumf %195, %196 : vector<16x64xf32>
    %198 = arith.truncf %197 : vector<16x64xf32> to vector<16x64xbf16>
    %cst_60 = arith.constant dense<0.000000e+00> : vector<16x32xf32>
    %199 = tpu.matmul %198, %6, %cst_60 {dimension_numbers = #tpu.dot_dimension_numbers<[1], [0], [0], [1], [0, 0, 1, 1], [], []>} : vector<16x64xbf16>, vector<64x32xbf16>, vector<16x32xf32> -> vector<16x32xf32>
    %200 = vector.broadcast %13 : vector<1x32xf32> to vector<16x32xf32>
    %201 = arith.addf %199, %200 : vector<16x32xf32>
    %202 = arith.addf %191, %201 : vector<16x32xf32>
    %cst_61 = arith.constant dense<0.000000e+00> : vector<16xf32>
    %203 = vector.multi_reduction <add>, %202, %cst_61 [1] : vector<16x32xf32> to vector<16xf32>
    %204 = vector.shape_cast %203 : vector<16xf32> to vector<16x1xf32>
    %cst_62 = arith.constant 3.200000e+01 : f32
    %205 = vector.broadcast %cst_62 : f32 to vector<16x1xf32>
    %206 = arith.divf %204, %205 : vector<16x1xf32>
    %207 = arith.mulf %202, %202 : vector<16x32xf32>
    %cst_63 = arith.constant dense<0.000000e+00> : vector<16xf32>
    %208 = vector.multi_reduction <add>, %207, %cst_63 [1] : vector<16x32xf32> to vector<16xf32>
    %209 = vector.shape_cast %208 : vector<16xf32> to vector<16x1xf32>
    %cst_64 = arith.constant 3.200000e+01 : f32
    %210 = vector.broadcast %cst_64 : f32 to vector<16x1xf32>
    %211 = arith.divf %209, %210 : vector<16x1xf32>
    %212 = arith.mulf %206, %206 : vector<16x1xf32>
    %213 = arith.subf %211, %212 : vector<16x1xf32>
    %214 = vector.broadcast %206 : vector<16x1xf32> to vector<16x32xf32>
    %215 = arith.subf %202, %214 : vector<16x32xf32>
    %cst_65 = arith.constant 9.99999974E-6 : f32
    %216 = vector.broadcast %cst_65 : f32 to vector<16x1xf32>
    %217 = arith.addf %213, %216 : vector<16x1xf32>
    %218 = math.rsqrt %217 : vector<16x1xf32>
    %219 = vector.broadcast %218 : vector<16x1xf32> to vector<16x32xf32>
    %220 = arith.mulf %215, %219 : vector<16x32xf32>
    %221 = vector.broadcast %18 : vector<1x32xf32> to vector<16x32xf32>
    %222 = arith.mulf %220, %221 : vector<16x32xf32>
    %223 = vector.broadcast %19 : vector<1x32xf32> to vector<16x32xf32>
    %224 = arith.addf %222, %223 : vector<16x32xf32>
    %c0_66 = arith.constant 0 : index
    %c0_67 = arith.constant 0 : index
    %225 = vector.load %arg6[%c0_66, %c0_67] : memref<16x32xf32, #tpu.memory_space<vmem>>, vector<16x32xf32>
    tpu.vector_store %arg6[%c0_66, %c0_67], %224 {strides = array<i32>} : memref<16x32xf32, #tpu.memory_space<vmem>>, vector<16x32xf32>,
    return
  }
  func.func @transform_0(%arg0: i32) -> (i32, i32) {
    %c0_i32 = arith.constant 0 : i32
    %c0_i32_0 = arith.constant 0 : i32
    %c0_i32_1 = arith.constant 0 : i32
    return %c0_i32, %c0_i32_0 : i32, i32
  }
  func.func @transform_1(%arg0: i32) -> (i32, i32) {
    %c0_i32 = arith.constant 0 : i32
    %c0_i32_0 = arith.constant 0 : i32
    %c0_i32_1 = arith.constant 0 : i32
    return %c0_i32, %c0_i32_0 : i32, i32
  }
  func.func @transform_2(%arg0: i32) -> (i32, i32, i32) {
    %c0_i32 = arith.constant 0 : i32
    %c0_i32_0 = arith.constant 0 : i32
    %c0_i32_1 = arith.constant 0 : i32
    %c0_i32_2 = arith.constant 0 : i32
    return %c0_i32, %c0_i32_0, %c0_i32_1 : i32, i32, i32
  }
  func.func @transform_3(%arg0: i32) -> (i32, i32) {
    %c0_i32 = arith.constant 0 : i32
    %c0_i32_0 = arith.constant 0 : i32
    %c0_i32_1 = arith.constant 0 : i32
    return %c0_i32, %c0_i32_0 : i32, i32
  }
  func.func @transform_4(%arg0: i32) -> (i32, i32) {
    %c0_i32 = arith.constant 0 : i32
    %c0_i32_0 = arith.constant 0 : i32
    %c0_i32_1 = arith.constant 0 : i32
    return %c0_i32, %c0_i32_0 : i32, i32
  }
  func.func @transform_5(%arg0: i32) -> (i32, i32) {
    %c0_i32 = arith.constant 0 : i32
    %c0_i32_0 = arith.constant 0 : i32
    %c0_i32_1 = arith.constant 0 : i32
    return %c0_i32, %c0_i32_0 : i32, i32
  }
}

module attributes {stable_mosaic.version = 11 : i64} {
  func.func @qformer_decoder_kernel(%arg0: i32, %arg1: memref<8x32xf32, #tpu.memory_space<vmem>>, %arg2: memref<32x32xf32, #tpu.memory_space<vmem>>, %arg3: memref<2x1x16xf32, #tpu.memory_space<vmem>>, %arg4: memref<64x352xbf16, #tpu.memory_space<vmem>>, %arg5: memref<16x128xf32, #tpu.memory_space<vmem>>, %arg6: memref<16x32xf32, #tpu.memory_space<vmem>>) attributes {dimension_semantics = [#tpu.dimension_semantics<arbitrary>], iteration_bounds = array<i64: 1>, scalar_prefetch = 0 : i64, scratch_operands = 0 : i64, tpu.core_type = #tpu.core_type<tc>, window_params = [{pipeline_mode = #tpu.pipeline_mode<synchronous>, transform_indices = @transform_0, window_bounds = array<i64: 8, 32>}, {pipeline_mode = #tpu.pipeline_mode<synchronous>, transform_indices = @transform_1, window_bounds = array<i64: 32, 32>}, {pipeline_mode = #tpu.pipeline_mode<synchronous>, transform_indices = @transform_2, window_bounds = array<i64: 2, 1, 16>}, {pipeline_mode = #tpu.pipeline_mode<synchronous>, transform_indices = @transform_3, window_bounds = array<i64: 64, 352>}, {pipeline_mode = #tpu.pipeline_mode<synchronous>, transform_indices = @transform_4, window_bounds = array<i64: 16, 128>}, {pipeline_mode = #tpu.pipeline_mode<synchronous>, transform_indices = @transform_5, window_bounds = array<i64: 16, 32>}]} {
    %c0 = arith.constant 0 : index
    %c0_0 = arith.constant 0 : index
    %0 = vector.load %arg4[%c0, %c0_0] : memref<64x352xbf16, #tpu.memory_space<vmem>>, vector<32x96xbf16>
    %c0_1 = arith.constant 0 : index
    %c96 = arith.constant 96 : index
    %1 = vector.load %arg4[%c0_1, %c96] : memref<64x352xbf16, #tpu.memory_space<vmem>>, vector<32x32xbf16>
    %c0_2 = arith.constant 0 : index
    %c128 = arith.constant 128 : index
    %2 = vector.load %arg4[%c0_2, %c128] : memref<64x352xbf16, #tpu.memory_space<vmem>>, vector<32x32xbf16>
    %c0_3 = arith.constant 0 : index
    %c160 = arith.constant 160 : index
    %3 = vector.load %arg4[%c0_3, %c160] : memref<64x352xbf16, #tpu.memory_space<vmem>>, vector<32x64xbf16>
    %c0_4 = arith.constant 0 : index
    %c224 = arith.constant 224 : index
    %4 = vector.load %arg4[%c0_4, %c224] : memref<64x352xbf16, #tpu.memory_space<vmem>>, vector<32x32xbf16>
    %c0_5 = arith.constant 0 : index
    %c256 = arith.constant 256 : index
    %5 = vector.load %arg4[%c0_5, %c256] : memref<64x352xbf16, #tpu.memory_space<vmem>>, vector<32x64xbf16>
    %c0_6 = arith.constant 0 : index
    %c320 = arith.constant 320 : index
    %6 = vector.load %arg4[%c0_6, %c320] : memref<64x352xbf16, #tpu.memory_space<vmem>>, vector<64x32xbf16>
    %c0_7 = arith.constant 0 : index
    %c0_8 = arith.constant 0 : index
    %7 = vector.load %arg5[%c0_7, %c0_8] : memref<16x128xf32, #tpu.memory_space<vmem>>, vector<1x96xf32>
    %c1 = arith.constant 1 : index
    %c0_9 = arith.constant 0 : index
    %8 = vector.load %arg5[%c1, %c0_9] : memref<16x128xf32, #tpu.memory_space<vmem>>, vector<1x32xf32>
    %c2 = arith.constant 2 : index
    %c0_10 = arith.constant 0 : index
    %9 = vector.load %arg5[%c2, %c0_10] : memref<16x128xf32, #tpu.memory_space<vmem>>, vector<1x32xf32>
    %c3 = arith.constant 3 : index
    %c0_11 = arith.constant 0 : index
    %10 = vector.load %arg5[%c3, %c0_11] : memref<16x128xf32, #tpu.memory_space<vmem>>, vector<1x64xf32>
    %c4 = arith.constant 4 : index
    %c0_12 = arith.constant 0 : index
    %11 = vector.load %arg5[%c4, %c0_12] : memref<16x128xf32, #tpu.memory_space<vmem>>, vector<1x32xf32>
    %c5 = arith.constant 5 : index
    %c0_13 = arith.constant 0 : index
    %12 = vector.load %arg5[%c5, %c0_13] : memref<16x128xf32, #tpu.memory_space<vmem>>, vector<1x64xf32>
    %c6 = arith.constant 6 : index
    %c0_14 = arith.constant 0 : index
    %13 = vector.load %arg5[%c6, %c0_14] : memref<16x128xf32, #tpu.memory_space<vmem>>, vector<1x32xf32>
    %c7 = arith.constant 7 : index
    %c0_15 = arith.constant 0 : index
    %14 = vector.load %arg5[%c7, %c0_15] : memref<16x128xf32, #tpu.memory_space<vmem>>, vector<1x32xf32>
    %c8 = arith.constant 8 : index
    %c0_16 = arith.constant 0 : index
    %15 = vector.load %arg5[%c8, %c0_16] : memref<16x128xf32, #tpu.memory_space<vmem>>, vector<1x32xf32>
    %c9 = arith.constant 9 : index
    %c0_17 = arith.constant 0 : index
    %16 = vector.load %arg5[%c9, %c0_17] : memref<16x128xf32, #tpu.memory_space<vmem>>, vector<1x32xf32>
    %c10 = arith.constant 10 : index
    %c0_18 = arith.constant 0 : index
    %17 = vector.load %arg5[%c10, %c0_18] : memref<16x128xf32, #tpu.memory_space<vmem>>, vector<1x32xf32>
    %c11 = arith.constant 11 : index
    %c0_19 = arith.constant 0 : index
    %18 = vector.load %arg5[%c11, %c0_19] : memref<16x128xf32, #tpu.memory_space<vmem>>, vector<1x32xf32>
    %c12 = arith.constant 12 : index
    %c0_20 = arith.constant 0 : index
    %19 = vector.load %arg5[%c12, %c0_20] : memref<16x128xf32, #tpu.memory_space<vmem>>, vector<1x32xf32>
    %c0_21 = arith.constant 0 : index
    %c0_22 = arith.constant 0 : index
    %20 = vector.load %arg1[%c0_21, %c0_22] : memref<8x32xf32, #tpu.memory_space<vmem>>, vector<8x32xf32>
    %21 = arith.truncf %20 : vector<8x32xf32> to vector<8x32xbf16>
    %cst = arith.constant dense<0.000000e+00> : vector<8x96xf32>
    %22 = tpu.matmul %21, %0, %cst {dimension_numbers = #tpu.dot_dimension_numbers<[1], [0], [0], [1], [0, 0, 1, 1], [], []>} : vector<8x32xbf16>, vector<32x96xbf16>, vector<8x96xf32> -> vector<8x96xf32>
    %23 = vector.broadcast %7 : vector<1x96xf32> to vector<8x96xf32>
    %24 = arith.addf %22, %23 : vector<8x96xf32>
    %25 = vector.extract_strided_slice %24 {offsets = [0, 0], sizes = [8, 8], strides = [1, 1]} : vector<8x96xf32> to vector<8x8xf32>
    %26 = vector.extract_strided_slice %24 {offsets = [0, 8], sizes = [8, 8], strides = [1, 1]} : vector<8x96xf32> to vector<8x8xf32>
    %27 = vector.extract_strided_slice %24 {offsets = [0, 16], sizes = [8, 8], strides = [1, 1]} : vector<8x96xf32> to vector<8x8xf32>
    %28 = vector.extract_strided_slice %24 {offsets = [0, 24], sizes = [8, 8], strides = [1, 1]} : vector<8x96xf32> to vector<8x8xf32>
    %29 = vector.extract_strided_slice %24 {offsets = [0, 32], sizes = [8, 8], strides = [1, 1]} : vector<8x96xf32> to vector<8x8xf32>
    %30 = vector.extract_strided_slice %24 {offsets = [0, 40], sizes = [8, 8], strides = [1, 1]} : vector<8x96xf32> to vector<8x8xf32>
    %31 = vector.extract_strided_slice %24 {offsets = [0, 48], sizes = [8, 8], strides = [1, 1]} : vector<8x96xf32> to vector<8x8xf32>
    %32 = vector.extract_strided_slice %24 {offsets = [0, 56], sizes = [8, 8], strides = [1, 1]} : vector<8x96xf32> to vector<8x8xf32>
    %33 = vector.extract_strided_slice %24 {offsets = [0, 64], sizes = [8, 8], strides = [1, 1]} : vector<8x96xf32> to vector<8x8xf32>
    %34 = vector.extract_strided_slice %24 {offsets = [0, 72], sizes = [8, 8], strides = [1, 1]} : vector<8x96xf32> to vector<8x8xf32>
    %35 = vector.extract_strided_slice %24 {offsets = [0, 80], sizes = [8, 8], strides = [1, 1]} : vector<8x96xf32> to vector<8x8xf32>
    %36 = vector.extract_strided_slice %24 {offsets = [0, 88], sizes = [8, 8], strides = [1, 1]} : vector<8x96xf32> to vector<8x8xf32>
    %37 = vector.shape_cast %25 : vector<8x8xf32> to vector<1x8x8xf32>
    %38 = vector.shape_cast %26 : vector<8x8xf32> to vector<1x8x8xf32>
    %39 = vector.shape_cast %27 : vector<8x8xf32> to vector<1x8x8xf32>
    %40 = vector.shape_cast %28 : vector<8x8xf32> to vector<1x8x8xf32>
    %41 = vector.shape_cast %29 : vector<8x8xf32> to vector<1x8x8xf32>
    %42 = vector.shape_cast %30 : vector<8x8xf32> to vector<1x8x8xf32>
    %43 = vector.shape_cast %31 : vector<8x8xf32> to vector<1x8x8xf32>
    %44 = vector.shape_cast %32 : vector<8x8xf32> to vector<1x8x8xf32>
    %45 = vector.shape_cast %33 : vector<8x8xf32> to vector<1x8x8xf32>
    %46 = vector.shape_cast %34 : vector<8x8xf32> to vector<1x8x8xf32>
    %47 = vector.shape_cast %35 : vector<8x8xf32> to vector<1x8x8xf32>
    %48 = vector.shape_cast %36 : vector<8x8xf32> to vector<1x8x8xf32>
    %49 = tpu.concatenate %37, %38, %39, %40, %41, %42, %43, %44, %45, %46, %47, %48 in 0 : vector<1x8x8xf32>, vector<1x8x8xf32>, vector<1x8x8xf32>, vector<1x8x8xf32>, vector<1x8x8xf32>, vector<1x8x8xf32>, vector<1x8x8xf32>, vector<1x8x8xf32>, vector<1x8x8xf32>, vector<1x8x8xf32>, vector<1x8x8xf32>, vector<1x8x8xf32> -> vector<12x8x8xf32>
    %50 = vector.extract_strided_slice %49 {offsets = [0, 0, 0], sizes = [4, 8, 8], strides = [1, 1, 1]} : vector<12x8x8xf32> to vector<4x8x8xf32>
    %51 = vector.extract_strided_slice %49 {offsets = [4, 0, 0], sizes = [4, 8, 8], strides = [1, 1, 1]} : vector<12x8x8xf32> to vector<4x8x8xf32>
    %52 = vector.extract_strided_slice %49 {offsets = [8, 0, 0], sizes = [4, 8, 8], strides = [1, 1, 1]} : vector<12x8x8xf32> to vector<4x8x8xf32>
    %53 = arith.truncf %50 : vector<4x8x8xf32> to vector<4x8x8xbf16>
    %54 = arith.truncf %51 : vector<4x8x8xf32> to vector<4x8x8xbf16>
    "tpu.trace_start"() <{level = 10 : i32, message = "hqd,hkd->hqk"}> : () -> ()
    %cst_23 = arith.constant dense<0.000000e+00> : vector<4x8x8xf32>
    %55 = tpu.matmul %53, %54, %cst_23 {dimension_numbers = #tpu.dot_dimension_numbers<[2], [2], [1], [1], [0, 0, 0, 1, 1, 1], [0], [0]>} : vector<4x8x8xbf16>, vector<4x8x8xbf16>, vector<4x8x8xf32> -> vector<4x8x8xf32>
    "tpu.trace_stop"() : () -> ()
    %cst_24 = arith.constant dense<0xFF800000> : vector<4x8xf32>
    %56 = vector.multi_reduction <maximumf>, %55, %cst_24 [2] : vector<4x8x8xf32> to vector<4x8xf32>
    %57 = vector.shape_cast %56 : vector<4x8xf32> to vector<4x8x1xf32>
    %58 = vector.broadcast %57 : vector<4x8x1xf32> to vector<4x8x8xf32>
    %59 = arith.subf %55, %58 : vector<4x8x8xf32>
    %60 = math.exp %59 : vector<4x8x8xf32>
    %cst_25 = arith.constant dense<0.000000e+00> : vector<4x8xf32>
    %61 = vector.multi_reduction <add>, %60, %cst_25 [2] : vector<4x8x8xf32> to vector<4x8xf32>
    %62 = vector.shape_cast %61 : vector<4x8xf32> to vector<4x8x1xf32>
    %63 = tpu.reciprocal %62 {approx = true} : vector<4x8x1xf32> -> vector<4x8x1xf32>
    %64 = vector.broadcast %63 : vector<4x8x1xf32> to vector<4x8x8xf32>
    %65 = arith.mulf %60, %64 : vector<4x8x8xf32>
    %66 = arith.truncf %65 : vector<4x8x8xf32> to vector<4x8x8xbf16>
    %67 = arith.truncf %52 : vector<4x8x8xf32> to vector<4x8x8xbf16>
    "tpu.trace_start"() <{level = 10 : i32, message = "hqk,hkd->hqd"}> : () -> ()
    %cst_26 = arith.constant dense<0.000000e+00> : vector<4x8x8xf32>
    %68 = tpu.matmul %66, %67, %cst_26 {dimension_numbers = #tpu.dot_dimension_numbers<[2], [1], [1], [2], [0, 0, 0, 1, 1, 2], [0], [0]>} : vector<4x8x8xbf16>, vector<4x8x8xbf16>, vector<4x8x8xf32> -> vector<4x8x8xf32>
    "tpu.trace_stop"() : () -> ()
    %69 = vector.extract_strided_slice %68 {offsets = [0, 0, 0], sizes = [1, 8, 8], strides = [1, 1, 1]} : vector<4x8x8xf32> to vector<1x8x8xf32>
    %70 = vector.shape_cast %69 : vector<1x8x8xf32> to vector<8x8xf32>
    %71 = vector.extract_strided_slice %68 {offsets = [1, 0, 0], sizes = [1, 8, 8], strides = [1, 1, 1]} : vector<4x8x8xf32> to vector<1x8x8xf32>
    %72 = vector.shape_cast %71 : vector<1x8x8xf32> to vector<8x8xf32>
    %73 = vector.extract_strided_slice %68 {offsets = [2, 0, 0], sizes = [1, 8, 8], strides = [1, 1, 1]} : vector<4x8x8xf32> to vector<1x8x8xf32>
    %74 = vector.shape_cast %73 : vector<1x8x8xf32> to vector<8x8xf32>
    %75 = vector.extract_strided_slice %68 {offsets = [3, 0, 0], sizes = [1, 8, 8], strides = [1, 1, 1]} : vector<4x8x8xf32> to vector<1x8x8xf32>
    %76 = vector.shape_cast %75 : vector<1x8x8xf32> to vector<8x8xf32>
    %77 = tpu.concatenate %70, %72, %74, %76 in 1 : vector<8x8xf32>, vector<8x8xf32>, vector<8x8xf32>, vector<8x8xf32> -> vector<8x32xf32>
    %78 = arith.truncf %77 : vector<8x32xf32> to vector<8x32xbf16>
    %cst_27 = arith.constant dense<0.000000e+00> : vector<8x32xf32>
    %79 = tpu.matmul %78, %1, %cst_27 {dimension_numbers = #tpu.dot_dimension_numbers<[1], [0], [0], [1], [0, 0, 1, 1], [], []>} : vector<8x32xbf16>, vector<32x32xbf16>, vector<8x32xf32> -> vector<8x32xf32>
    %80 = vector.broadcast %8 : vector<1x32xf32> to vector<8x32xf32>
    %81 = arith.addf %79, %80 : vector<8x32xf32>
    %82 = arith.addf %20, %81 : vector<8x32xf32>
    %cst_28 = arith.constant dense<0.000000e+00> : vector<8xf32>
    %83 = vector.multi_reduction <add>, %82, %cst_28 [1] : vector<8x32xf32> to vector<8xf32>
    %84 = vector.shape_cast %83 : vector<8xf32> to vector<8x1xf32>
    %cst_29 = arith.constant 3.200000e+01 : f32
    %85 = vector.broadcast %cst_29 : f32 to vector<8x1xf32>
    %86 = arith.divf %84, %85 : vector<8x1xf32>
    %87 = arith.mulf %82, %82 : vector<8x32xf32>
    %cst_30 = arith.constant dense<0.000000e+00> : vector<8xf32>
    %88 = vector.multi_reduction <add>, %87, %cst_30 [1] : vector<8x32xf32> to vector<8xf32>
    %89 = vector.shape_cast %88 : vector<8xf32> to vector<8x1xf32>
    %cst_31 = arith.constant 3.200000e+01 : f32
    %90 = vector.broadcast %cst_31 : f32 to vector<8x1xf32>
    %91 = arith.divf %89, %90 : vector<8x1xf32>
    %92 = arith.mulf %86, %86 : vector<8x1xf32>
    %93 = arith.subf %91, %92 : vector<8x1xf32>
    %94 = vector.broadcast %86 : vector<8x1xf32> to vector<8x32xf32>
    %95 = arith.subf %82, %94 : vector<8x32xf32>
    %cst_32 = arith.constant 9.99999974E-6 : f32
    %96 = vector.broadcast %cst_32 : f32 to vector<8x1xf32>
    %97 = arith.addf %93, %96 : vector<8x1xf32>
    %98 = math.rsqrt %97 : vector<8x1xf32>
    %99 = vector.broadcast %98 : vector<8x1xf32> to vector<8x32xf32>
    %100 = arith.mulf %95, %99 : vector<8x32xf32>
    %101 = vector.broadcast %14 : vector<1x32xf32> to vector<8x32xf32>
    %102 = arith.mulf %100, %101 : vector<8x32xf32>
    %103 = vector.broadcast %15 : vector<1x32xf32> to vector<8x32xf32>
    %104 = arith.addf %102, %103 : vector<8x32xf32>
    %105 = arith.truncf %104 : vector<8x32xf32> to vector<8x32xbf16>
    %cst_33 = arith.constant dense<0.000000e+00> : vector<8x32xf32>
    %106 = tpu.matmul %105, %2, %cst_33 {dimension_numbers = #tpu.dot_dimension_numbers<[1], [0], [0], [1], [0, 0, 1, 1], [], []>} : vector<8x32xbf16>, vector<32x32xbf16>, vector<8x32xf32> -> vector<8x32xf32>
    %107 = vector.broadcast %9 : vector<1x32xf32> to vector<8x32xf32>
    %108 = arith.addf %106, %107 : vector<8x32xf32>
    %109 = vector.extract_strided_slice %108 {offsets = [0, 0], sizes = [8, 8], strides = [1, 1]} : vector<8x32xf32> to vector<8x8xf32>
    %110 = vector.extract_strided_slice %108 {offsets = [0, 8], sizes = [8, 8], strides = [1, 1]} : vector<8x32xf32> to vector<8x8xf32>
    %111 = vector.extract_strided_slice %108 {offsets = [0, 16], sizes = [8, 8], strides = [1, 1]} : vector<8x32xf32> to vector<8x8xf32>
    %112 = vector.extract_strided_slice %108 {offsets = [0, 24], sizes = [8, 8], strides = [1, 1]} : vector<8x32xf32> to vector<8x8xf32>
    %113 = vector.shape_cast %109 : vector<8x8xf32> to vector<1x8x8xf32>
    %114 = vector.shape_cast %110 : vector<8x8xf32> to vector<1x8x8xf32>
    %115 = vector.shape_cast %111 : vector<8x8xf32> to vector<1x8x8xf32>
    %116 = vector.shape_cast %112 : vector<8x8xf32> to vector<1x8x8xf32>
    %117 = tpu.concatenate %113, %114, %115, %116 in 0 : vector<1x8x8xf32>, vector<1x8x8xf32>, vector<1x8x8xf32>, vector<1x8x8xf32> -> vector<4x8x8xf32>
    %c0_34 = arith.constant 0 : index
    %c0_35 = arith.constant 0 : index
    %118 = vector.load %arg2[%c0_34, %c0_35] : memref<32x32xf32, #tpu.memory_space<vmem>>, vector<32x32xf32>
    %119 = arith.truncf %118 : vector<32x32xf32> to vector<32x32xbf16>
    %cst_36 = arith.constant dense<0.000000e+00> : vector<32x64xf32>
    %120 = tpu.matmul %119, %3, %cst_36 {dimension_numbers = #tpu.dot_dimension_numbers<[1], [0], [0], [1], [0, 0, 1, 1], [], []>} : vector<32x32xbf16>, vector<32x64xbf16>, vector<32x64xf32> -> vector<32x64xf32>
    %121 = vector.broadcast %10 : vector<1x64xf32> to vector<32x64xf32>
    %122 = arith.addf %120, %121 : vector<32x64xf32>
    %123 = vector.extract_strided_slice %122 {offsets = [0, 0], sizes = [32, 8], strides = [1, 1]} : vector<32x64xf32> to vector<32x8xf32>
    %124 = vector.extract_strided_slice %122 {offsets = [0, 8], sizes = [32, 8], strides = [1, 1]} : vector<32x64xf32> to vector<32x8xf32>
    %125 = vector.extract_strided_slice %122 {offsets = [0, 16], sizes = [32, 8], strides = [1, 1]} : vector<32x64xf32> to vector<32x8xf32>
    %126 = vector.extract_strided_slice %122 {offsets = [0, 24], sizes = [32, 8], strides = [1, 1]} : vector<32x64xf32> to vector<32x8xf32>
    %127 = vector.extract_strided_slice %122 {offsets = [0, 32], sizes = [32, 8], strides = [1, 1]} : vector<32x64xf32> to vector<32x8xf32>
    %128 = vector.extract_strided_slice %122 {offsets = [0, 40], sizes = [32, 8], strides = [1, 1]} : vector<32x64xf32> to vector<32x8xf32>
    %129 = vector.extract_strided_slice %122 {offsets = [0, 48], sizes = [32, 8], strides = [1, 1]} : vector<32x64xf32> to vector<32x8xf32>
    %130 = vector.extract_strided_slice %122 {offsets = [0, 56], sizes = [32, 8], strides = [1, 1]} : vector<32x64xf32> to vector<32x8xf32>
    %131 = vector.shape_cast %123 : vector<32x8xf32> to vector<1x32x8xf32>
    %132 = vector.shape_cast %124 : vector<32x8xf32> to vector<1x32x8xf32>
    %133 = vector.shape_cast %125 : vector<32x8xf32> to vector<1x32x8xf32>
    %134 = vector.shape_cast %126 : vector<32x8xf32> to vector<1x32x8xf32>
    %135 = vector.shape_cast %127 : vector<32x8xf32> to vector<1x32x8xf32>
    %136 = vector.shape_cast %128 : vector<32x8xf32> to vector<1x32x8xf32>
    %137 = vector.shape_cast %129 : vector<32x8xf32> to vector<1x32x8xf32>
    %138 = vector.shape_cast %130 : vector<32x8xf32> to vector<1x32x8xf32>
    %139 = tpu.concatenate %131, %132, %133, %134, %135, %136, %137, %138 in 0 : vector<1x32x8xf32>, vector<1x32x8xf32>, vector<1x32x8xf32>, vector<1x32x8xf32>, vector<1x32x8xf32>, vector<1x32x8xf32>, vector<1x32x8xf32>, vector<1x32x8xf32> -> vector<8x32x8xf32>
    %140 = vector.extract_strided_slice %139 {offsets = [0, 0, 0], sizes = [4, 16, 8], strides = [1, 1, 1]} : vector<8x32x8xf32> to vector<4x16x8xf32>
    %141 = vector.extract_strided_slice %139 {offsets = [4, 0, 0], sizes = [4, 16, 8], strides = [1, 1, 1]} : vector<8x32x8xf32> to vector<4x16x8xf32>
    %c0_37 = arith.constant 0 : index
    %c0_38 = arith.constant 0 : index
    %c0_39 = arith.constant 0 : index
    %142 = vector.load %arg3[%c0_37, %c0_38, %c0_39] : memref<2x1x16xf32, #tpu.memory_space<vmem>>, vector<1x1x16xf32>
    %143 = vector.shape_cast %142 : vector<1x1x16xf32> to vector<1x16xf32>
    %144 = arith.truncf %117 : vector<4x8x8xf32> to vector<4x8x8xbf16>
    %145 = arith.truncf %140 : vector<4x16x8xf32> to vector<4x16x8xbf16>
    "tpu.trace_start"() <{level = 10 : i32, message = "hqd,hkd->hqk"}> : () -> ()
    %cst_40 = arith.constant dense<0.000000e+00> : vector<4x8x16xf32>
    %146 = tpu.matmul %144, %145, %cst_40 {dimension_numbers = #tpu.dot_dimension_numbers<[2], [2], [1], [1], [0, 0, 0, 1, 1, 1], [0], [0]>} : vector<4x8x8xbf16>, vector<4x16x8xbf16>, vector<4x8x16xf32> -> vector<4x8x16xf32>
    "tpu.trace_stop"() : () -> ()
    %147 = vector.shape_cast %143 : vector<1x16xf32> to vector<1x1x16xf32>
    %148 = vector.broadcast %147 : vector<1x1x16xf32> to vector<4x8x16xf32>
    %149 = arith.addf %146, %148 : vector<4x8x16xf32>
    %cst_41 = arith.constant dense<0xFF800000> : vector<4x8xf32>
    %150 = vector.multi_reduction <maximumf>, %149, %cst_41 [2] : vector<4x8x16xf32> to vector<4x8xf32>
    %151 = vector.shape_cast %150 : vector<4x8xf32> to vector<4x8x1xf32>
    %152 = vector.broadcast %151 : vector<4x8x1xf32> to vector<4x8x16xf32>
    %153 = arith.subf %149, %152 : vector<4x8x16xf32>
    %154 = math.exp %153 : vector<4x8x16xf32>
    %cst_42 = arith.constant dense<0.000000e+00> : vector<4x8xf32>
    %155 = vector.multi_reduction <add>, %154, %cst_42 [2] : vector<4x8x16xf32> to vector<4x8xf32>
    %156 = vector.shape_cast %155 : vector<4x8xf32> to vector<4x8x1xf32>
    %157 = tpu.reciprocal %156 {approx = true} : vector<4x8x1xf32> -> vector<4x8x1xf32>
    %158 = vector.broadcast %157 : vector<4x8x1xf32> to vector<4x8x16xf32>
    %159 = arith.mulf %154, %158 : vector<4x8x16xf32>
    %160 = arith.truncf %159 : vector<4x8x16xf32> to vector<4x8x16xbf16>
    %161 = arith.truncf %141 : vector<4x16x8xf32> to vector<4x16x8xbf16>
    "tpu.trace_start"() <{level = 10 : i32, message = "hqk,hkd->hqd"}> : () -> ()
    %cst_43 = arith.constant dense<0.000000e+00> : vector<4x8x8xf32>
    %162 = tpu.matmul %160, %161, %cst_43 {dimension_numbers = #tpu.dot_dimension_numbers<[2], [1], [1], [2], [0, 0, 0, 1, 1, 2], [0], [0]>} : vector<4x8x16xbf16>, vector<4x16x8xbf16>, vector<4x8x8xf32> -> vector<4x8x8xf32>
    "tpu.trace_stop"() : () -> ()
    %163 = vector.extract_strided_slice %162 {offsets = [0, 0, 0], sizes = [1, 8, 8], strides = [1, 1, 1]} : vector<4x8x8xf32> to vector<1x8x8xf32>
    %164 = vector.shape_cast %163 : vector<1x8x8xf32> to vector<8x8xf32>
    %165 = vector.extract_strided_slice %162 {offsets = [1, 0, 0], sizes = [1, 8, 8], strides = [1, 1, 1]} : vector<4x8x8xf32> to vector<1x8x8xf32>
    %166 = vector.shape_cast %165 : vector<1x8x8xf32> to vector<8x8xf32>
    %167 = vector.extract_strided_slice %162 {offsets = [2, 0, 0], sizes = [1, 8, 8], strides = [1, 1, 1]} : vector<4x8x8xf32> to vector<1x8x8xf32>
    %168 = vector.shape_cast %167 : vector<1x8x8xf32> to vector<8x8xf32>
    %169 = vector.extract_strided_slice %162 {offsets = [3, 0, 0], sizes = [1, 8, 8], strides = [1, 1, 1]} : vector<4x8x8xf32> to vector<1x8x8xf32>
    %170 = vector.shape_cast %169 : vector<1x8x8xf32> to vector<8x8xf32>
    %171 = tpu.concatenate %164, %166, %168, %170 in 1 : vector<8x8xf32>, vector<8x8xf32>, vector<8x8xf32>, vector<8x8xf32> -> vector<8x32xf32>
    %172 = arith.truncf %171 : vector<8x32xf32> to vector<8x32xbf16>
    %cst_44 = arith.constant dense<0.000000e+00> : vector<8x32xf32>
    %173 = tpu.matmul %172, %4, %cst_44 {dimension_numbers = #tpu.dot_dimension_numbers<[1], [0], [0], [1], [0, 0, 1, 1], [], []>} : vector<8x32xbf16>, vector<32x32xbf16>, vector<8x32xf32> -> vector<8x32xf32>
    %174 = vector.broadcast %11 : vector<1x32xf32> to vector<8x32xf32>
    %175 = arith.addf %173, %174 : vector<8x32xf32>
    %176 = arith.addf %104, %175 : vector<8x32xf32>
    %177 = vector.extract_strided_slice %139 {offsets = [0, 16, 0], sizes = [4, 16, 8], strides = [1, 1, 1]} : vector<8x32x8xf32> to vector<4x16x8xf32>
    %178 = vector.extract_strided_slice %139 {offsets = [4, 16, 0], sizes = [4, 16, 8], strides = [1, 1, 1]} : vector<8x32x8xf32> to vector<4x16x8xf32>
    %c1_45 = arith.constant 1 : index
    %c0_46 = arith.constant 0 : index
    %c0_47 = arith.constant 0 : index
    %179 = vector.load %arg3[%c1_45, %c0_46, %c0_47] : memref<2x1x16xf32, #tpu.memory_space<vmem>>, vector<1x1x16xf32>
    %180 = vector.shape_cast %179 : vector<1x1x16xf32> to vector<1x16xf32>
    %181 = arith.truncf %117 : vector<4x8x8xf32> to vector<4x8x8xbf16>
    %182 = arith.truncf %177 : vector<4x16x8xf32> to vector<4x16x8xbf16>
    "tpu.trace_start"() <{level = 10 : i32, message = "hqd,hkd->hqk"}> : () -> ()
    %cst_48 = arith.constant dense<0.000000e+00> : vector<4x8x16xf32>
    %183 = tpu.matmul %181, %182, %cst_48 {dimension_numbers = #tpu.dot_dimension_numbers<[2], [2], [1], [1], [0, 0, 0, 1, 1, 1], [0], [0]>} : vector<4x8x8xbf16>, vector<4x16x8xbf16>, vector<4x8x16xf32> -> vector<4x8x16xf32>
    "tpu.trace_stop"() : () -> ()
    %184 = vector.shape_cast %180 : vector<1x16xf32> to vector<1x1x16xf32>
    %185 = vector.broadcast %184 : vector<1x1x16xf32> to vector<4x8x16xf32>
    %186 = arith.addf %183, %185 : vector<4x8x16xf32>
    %cst_49 = arith.constant dense<0xFF800000> : vector<4x8xf32>
    %187 = vector.multi_reduction <maximumf>, %186, %cst_49 [2] : vector<4x8x16xf32> to vector<4x8xf32>
    %188 = vector.shape_cast %187 : vector<4x8xf32> to vector<4x8x1xf32>
    %189 = vector.broadcast %188 : vector<4x8x1xf32> to vector<4x8x16xf32>
    %190 = arith.subf %186, %189 : vector<4x8x16xf32>
    %191 = math.exp %190 : vector<4x8x16xf32>
    %cst_50 = arith.constant dense<0.000000e+00> : vector<4x8xf32>
    %192 = vector.multi_reduction <add>, %191, %cst_50 [2] : vector<4x8x16xf32> to vector<4x8xf32>
    %193 = vector.shape_cast %192 : vector<4x8xf32> to vector<4x8x1xf32>
    %194 = tpu.reciprocal %193 {approx = true} : vector<4x8x1xf32> -> vector<4x8x1xf32>
    %195 = vector.broadcast %194 : vector<4x8x1xf32> to vector<4x8x16xf32>
    %196 = arith.mulf %191, %195 : vector<4x8x16xf32>
    %197 = arith.truncf %196 : vector<4x8x16xf32> to vector<4x8x16xbf16>
    %198 = arith.truncf %178 : vector<4x16x8xf32> to vector<4x16x8xbf16>
    "tpu.trace_start"() <{level = 10 : i32, message = "hqk,hkd->hqd"}> : () -> ()
    %cst_51 = arith.constant dense<0.000000e+00> : vector<4x8x8xf32>
    %199 = tpu.matmul %197, %198, %cst_51 {dimension_numbers = #tpu.dot_dimension_numbers<[2], [1], [1], [2], [0, 0, 0, 1, 1, 2], [0], [0]>} : vector<4x8x16xbf16>, vector<4x16x8xbf16>, vector<4x8x8xf32> -> vector<4x8x8xf32>
    "tpu.trace_stop"() : () -> ()
    %200 = vector.extract_strided_slice %199 {offsets = [0, 0, 0], sizes = [1, 8, 8], strides = [1, 1, 1]} : vector<4x8x8xf32> to vector<1x8x8xf32>
    %201 = vector.shape_cast %200 : vector<1x8x8xf32> to vector<8x8xf32>
    %202 = vector.extract_strided_slice %199 {offsets = [1, 0, 0], sizes = [1, 8, 8], strides = [1, 1, 1]} : vector<4x8x8xf32> to vector<1x8x8xf32>
    %203 = vector.shape_cast %202 : vector<1x8x8xf32> to vector<8x8xf32>
    %204 = vector.extract_strided_slice %199 {offsets = [2, 0, 0], sizes = [1, 8, 8], strides = [1, 1, 1]} : vector<4x8x8xf32> to vector<1x8x8xf32>
    %205 = vector.shape_cast %204 : vector<1x8x8xf32> to vector<8x8xf32>
    %206 = vector.extract_strided_slice %199 {offsets = [3, 0, 0], sizes = [1, 8, 8], strides = [1, 1, 1]} : vector<4x8x8xf32> to vector<1x8x8xf32>
    %207 = vector.shape_cast %206 : vector<1x8x8xf32> to vector<8x8xf32>
    %208 = tpu.concatenate %201, %203, %205, %207 in 1 : vector<8x8xf32>, vector<8x8xf32>, vector<8x8xf32>, vector<8x8xf32> -> vector<8x32xf32>
    %209 = arith.truncf %208 : vector<8x32xf32> to vector<8x32xbf16>
    %cst_52 = arith.constant dense<0.000000e+00> : vector<8x32xf32>
    %210 = tpu.matmul %209, %4, %cst_52 {dimension_numbers = #tpu.dot_dimension_numbers<[1], [0], [0], [1], [0, 0, 1, 1], [], []>} : vector<8x32xbf16>, vector<32x32xbf16>, vector<8x32xf32> -> vector<8x32xf32>
    %211 = vector.broadcast %11 : vector<1x32xf32> to vector<8x32xf32>
    %212 = arith.addf %210, %211 : vector<8x32xf32>
    %213 = arith.addf %104, %212 : vector<8x32xf32>
    %214 = tpu.concatenate %176, %213 in 0 : vector<8x32xf32>, vector<8x32xf32> -> vector<16x32xf32>
    %cst_53 = arith.constant dense<0.000000e+00> : vector<16xf32>
    %215 = vector.multi_reduction <add>, %214, %cst_53 [1] : vector<16x32xf32> to vector<16xf32>
    %216 = vector.shape_cast %215 : vector<16xf32> to vector<16x1xf32>
    %cst_54 = arith.constant 3.200000e+01 : f32
    %217 = vector.broadcast %cst_54 : f32 to vector<16x1xf32>
    %218 = arith.divf %216, %217 : vector<16x1xf32>
    %219 = arith.mulf %214, %214 : vector<16x32xf32>
    %cst_55 = arith.constant dense<0.000000e+00> : vector<16xf32>
    %220 = vector.multi_reduction <add>, %219, %cst_55 [1] : vector<16x32xf32> to vector<16xf32>
    %221 = vector.shape_cast %220 : vector<16xf32> to vector<16x1xf32>
    %cst_56 = arith.constant 3.200000e+01 : f32
    %222 = vector.broadcast %cst_56 : f32 to vector<16x1xf32>
    %223 = arith.divf %221, %222 : vector<16x1xf32>
    %224 = arith.mulf %218, %218 : vector<16x1xf32>
    %225 = arith.subf %223, %224 : vector<16x1xf32>
    %226 = vector.broadcast %218 : vector<16x1xf32> to vector<16x32xf32>
    %227 = arith.subf %214, %226 : vector<16x32xf32>
    %cst_57 = arith.constant 9.99999974E-6 : f32
    %228 = vector.broadcast %cst_57 : f32 to vector<16x1xf32>
    %229 = arith.addf %225, %228 : vector<16x1xf32>
    %230 = math.rsqrt %229 : vector<16x1xf32>
    %231 = vector.broadcast %230 : vector<16x1xf32> to vector<16x32xf32>
    %232 = arith.mulf %227, %231 : vector<16x32xf32>
    %233 = vector.broadcast %16 : vector<1x32xf32> to vector<16x32xf32>
    %234 = arith.mulf %232, %233 : vector<16x32xf32>
    %235 = vector.broadcast %17 : vector<1x32xf32> to vector<16x32xf32>
    %236 = arith.addf %234, %235 : vector<16x32xf32>
    %237 = arith.truncf %236 : vector<16x32xf32> to vector<16x32xbf16>
    %cst_58 = arith.constant dense<0.000000e+00> : vector<16x64xf32>
    %238 = tpu.matmul %237, %5, %cst_58 {dimension_numbers = #tpu.dot_dimension_numbers<[1], [0], [0], [1], [0, 0, 1, 1], [], []>} : vector<16x32xbf16>, vector<32x64xbf16>, vector<16x64xf32> -> vector<16x64xf32>
    %239 = vector.broadcast %12 : vector<1x64xf32> to vector<16x64xf32>
    %240 = arith.addf %238, %239 : vector<16x64xf32>
    %cst_59 = arith.constant 0.000000e+00 : f32
    %241 = vector.broadcast %cst_59 : f32 to vector<16x64xf32>
    %242 = arith.maximumf %240, %241 : vector<16x64xf32>
    %243 = arith.truncf %242 : vector<16x64xf32> to vector<16x64xbf16>
    %cst_60 = arith.constant dense<0.000000e+00> : vector<16x32xf32>
    %244 = tpu.matmul %243, %6, %cst_60 {dimension_numbers = #tpu.dot_dimension_numbers<[1], [0], [0], [1], [0, 0, 1, 1], [], []>} : vector<16x64xbf16>, vector<64x32xbf16>, vector<16x32xf32> -> vector<16x32xf32>
    %245 = vector.broadcast %13 : vector<1x32xf32> to vector<16x32xf32>
    %246 = arith.addf %244, %245 : vector<16x32xf32>
    %247 = arith.addf %236, %246 : vector<16x32xf32>
    %cst_61 = arith.constant dense<0.000000e+00> : vector<16xf32>
    %248 = vector.multi_reduction <add>, %247, %cst_61 [1] : vector<16x32xf32> to vector<16xf32>
    %249 = vector.shape_cast %248 : vector<16xf32> to vector<16x1xf32>
    %cst_62 = arith.constant 3.200000e+01 : f32
    %250 = vector.broadcast %cst_62 : f32 to vector<16x1xf32>
    %251 = arith.divf %249, %250 : vector<16x1xf32>
    %252 = arith.mulf %247, %247 : vector<16x32xf32>
    %cst_63 = arith.constant dense<0.000000e+00> : vector<16xf32>
    %253 = vector.multi_reduction <add>, %252, %cst_63 [1] : vector<16x32xf32> to vector<16xf32>
    %254 = vector.shape_cast %253 : vector<16xf32> to vector<16x1xf32>
    %cst_64 = arith.constant 3.200000e+01 : f32
    %255 = vector.broadcast %cst_64 : f32 to vector<16x1xf32>
    %256 = arith.divf %254, %255 : vector<16x1xf32>
    %257 = arith.mulf %251, %251 : vector<16x1xf32>
    %258 = arith.subf %256, %257 : vector<16x1xf32>
    %259 = vector.broadcast %251 : vector<16x1xf32> to vector<16x32xf32>
    %260 = arith.subf %247, %259 : vector<16x32xf32>
    %cst_65 = arith.constant 9.99999974E-6 : f32
    %261 = vector.broadcast %cst_65 : f32 to vector<16x1xf32>
    %262 = arith.addf %258, %261 : vector<16x1xf32>
    %263 = math.rsqrt %262 : vector<16x1xf32>
    %264 = vector.broadcast %263 : vector<16x1xf32> to vector<16x32xf32>
    %265 = arith.mulf %260, %264 : vector<16x32xf32>
    %266 = vector.broadcast %18 : vector<1x32xf32> to vector<16x32xf32>
    %267 = arith.mulf %265, %266 : vector<16x32xf32>
    %268 = vector.broadcast %19 : vector<1x32xf32> to vector<16x32xf32>
    %269 = arith.addf %267, %268 : vector<16x32xf32>
    %c0_66 = arith.constant 0 : index
    %c0_67 = arith.constant 0 : index
    %270 = vector.load %arg6[%c0_66, %c0_67] : memref<16x32xf32, #tpu.memory_space<vmem>>, vector<16x32xf32>
    tpu.vector_store %arg6[%c0_66, %c0_67], %269 {strides = array<i32>} : memref<16x32xf32, #tpu.memory_space<vmem>>, vector<16x32xf32>,
    return
  }
  func.func @transform_0(%arg0: i32) -> (i32, i32) {
    %c0_i32 = arith.constant 0 : i32
    %c0_i32_0 = arith.constant 0 : i32
    %c0_i32_1 = arith.constant 0 : i32
    return %c0_i32, %c0_i32_0 : i32, i32
  }
  func.func @transform_1(%arg0: i32) -> (i32, i32) {
    %c0_i32 = arith.constant 0 : i32
    %c0_i32_0 = arith.constant 0 : i32
    %c0_i32_1 = arith.constant 0 : i32
    return %c0_i32, %c0_i32_0 : i32, i32
  }
  func.func @transform_2(%arg0: i32) -> (i32, i32, i32) {
    %c0_i32 = arith.constant 0 : i32
    %c0_i32_0 = arith.constant 0 : i32
    %c0_i32_1 = arith.constant 0 : i32
    %c0_i32_2 = arith.constant 0 : i32
    return %c0_i32, %c0_i32_0, %c0_i32_1 : i32, i32, i32
  }
  func.func @transform_3(%arg0: i32) -> (i32, i32) {
    %c0_i32 = arith.constant 0 : i32
    %c0_i32_0 = arith.constant 0 : i32
    %c0_i32_1 = arith.constant 0 : i32
    return %c0_i32, %c0_i32_0 : i32, i32
  }
  func.func @transform_4(%arg0: i32) -> (i32, i32) {
    %c0_i32 = arith.constant 0 : i32
    %c0_i32_0 = arith.constant 0 : i32
    %c0_i32_1 = arith.constant 0 : i32
    return %c0_i32, %c0_i32_0 : i32, i32
  }
  func.func @transform_5(%arg0: i32) -> (i32, i32) {
    %c0_i32 = arith.constant 0 : i32
    %c0_i32_0 = arith.constant 0 : i32
    %c0_i32_1 = arith.constant 0 : i32
    return %c0_i32, %c0_i32_0 : i32, i32
  }
}

</mosaic_0001>

<bundles_post_ra>
// kernel: tpu_custom_call.1
= control target key start
LH: loop header
LB: loop body
LE: loop exit
PB: predicated region body
PF: predicated region fallthrough
CT: control target
= control target key end

     0   :  { %10 = vsyncpa [#allocation3], 0  ;;  %s5158_s0 = inlined_call_operand.hbm [shape: f32[8,32], index: 0, kind: input, shape index: {}]   ;;  %s5159_s1 = inlined_call_operand.hbm [shape: f32[32,32], index: 1, kind: input, shape index: {}]   ;;  %s5160_s2 = inlined_call_operand.vmem [shape: f32[2,1,16], index: 2, kind: input, shape index: {}]   ;;  %s5161_s3 = inlined_call_operand.hbm [shape: bf16[64,352], index: 3, kind: input, shape index: {}]   ;;  %s5162_s4 = inlined_call_operand.hbm [shape: f32[16,128], index: 4, kind: input, shape index: {}]   ;;  %s5163_s5 = inlined_call_operand.hbm [shape: f32[16,32], index: 5, kind: output, shape index: {}]  }
   0x1   :  { %11 = vsyncpa [#allocation6], 0 }
   0x2   :  { %12 = vsyncpa [#allocation9], 0 }
   0x3   :  { %13 = vsyncpa [#allocation4], 0  ;;  %s4391_s18 = smov [#allocation5]   ;;  %s4273_s22 = scalar_lea.hbm %s5159_s1, 512 }
   0x4   :  { %s29_s19 = sshll.u32 %s4391_s18, 4  ;;  %p4274_p0 = scmp.ne.s32.totalorder %s5159_s1, %s4273_s22  ;;  %s30_s19 = int_to_ptr.vmem [resolvable:$true] %s29_s19 }
   0x5   :  { %p4277_p1 = scmp.lt.u32.totalorder %s4273_s22, %s5159_s1 }
   0x7   :  { %p4279_p2 = pnand %p4277_p1, %p4274_p0 }
   0x9   :  { %4282 = shalt.err (!%p4279_p2)
}
   0xa   :  { %s4283_s27 = scalar_lea.vmem %s30_s19, 512  ;;  %p4288_p4 = scmp.lt.s32.totalorder %s30_s19, %s30_s19 }
   0xb   :  { %p4284_p3 = scmp.ne.s32.totalorder %s30_s19, %s4283_s27  ;;  %p4289_p5 = scmp.lt.s32.totalorder %s4283_s27, %s4283_s27 }
   0xd   :  { %p4290_p6 = por %p4289_p5, %p4288_p4 }
   0xf   :  { %p4291_p7 = pnand %p4290_p6, %p4284_p3 }
  0x11   :  { %4294 = shalt.err (!%p4291_p7)
}
  0x12   :  { %s4392_s28 = smov 128   ;;  %s4393_s29 = smov 8  }
  0x13   :  { %35 = dma.hbm_to_vmem [thread:$0]  %s5159_s1, 512, %s30_s19, [#allocation6], %s4392_s28, %s4392_s28, %s4393_s29  }
  0x14   :  { %s4394_s7 = smov [#allocation2]   ;;  %s4395_s9 = smov [#allocation7]  }
  0x15   :  { %s20_s8 = sshll.u32 %s4394_s7, 4  ;;  %s43_s10 = sshll.u32 %s4395_s9, 4  ;;  %s21_s8 = int_to_ptr.vmem [resolvable:$true] %s20_s8  ;;  %s44_s10 = int_to_ptr.vmem [resolvable:$true] %s43_s10 }
  0x16   :  { %s4295_s13 = scalar_lea.hbm %s5158_s0, 128 }
  0x17   :  { %p4296_p8 = scmp.ne.s32.totalorder %s5158_s0, %s4295_s13  ;;  %p4299_p9 = scmp.lt.u32.totalorder %s4295_s13, %s5158_s0 }
  0x19   :  { %p4301_p10 = pnand %p4299_p9, %p4296_p8 }
  0x1b   :  { %4304 = shalt.err (!%p4301_p10)
}
  0x1c   :  { %s4305_s1 = scalar_lea.vmem %s21_s8, 128  ;;  %p4310_p12 = scmp.lt.s32.totalorder %s21_s8, %s21_s8 }
  0x1d   :  { %p4306_p11 = scmp.ne.s32.totalorder %s21_s8, %s4305_s1  ;;  %p4311_p13 = scmp.lt.s32.totalorder %s4305_s1, %s4305_s1 }
  0x1f   :  { %p4312_p0 = por %p4311_p13, %p4310_p12 }
  0x21   :  { %p4313_p1 = pnand %p4312_p0, %p4306_p11 }
  0x23   :  { %4316 = shalt.err (!%p4313_p1)
}
  0x24   :  { %23 = dma.hbm_to_vmem [thread:$0]  %s5158_s0, 128, %s21_s8, [#allocation3]  }
  0x25   :  { %s4317_s22 = scalar_lea.hbm %s5161_s3, 1536 }
  0x26   :  { %p4318_p2 = scmp.ne.s32.totalorder %s5161_s3, %s4317_s22  ;;  %p4321_p3 = scmp.lt.u32.totalorder %s4317_s22, %s5161_s3 }
  0x28   :  { %p4323_p4 = pnand %p4321_p3, %p4318_p2 }
  0x2a   :  { %4326 = shalt.err (!%p4323_p4)
}
  0x2b   :  { %s4327_s27 = scalar_lea.vmem %s44_s10, 1536  ;;  %p4332_p6 = scmp.lt.s32.totalorder %s44_s10, %s44_s10 }
  0x2c   :  { %p4328_p5 = scmp.ne.s32.totalorder %s44_s10, %s4327_s27  ;;  %p4333_p7 = scmp.lt.s32.totalorder %s4327_s27, %s4327_s27 }
  0x2e   :  { %p4334_p8 = por %p4333_p7, %p4332_p6 }
  0x30   :  { %p4335_p9 = pnand %p4334_p8, %p4328_p5 }
  0x32   :  { %4338 = shalt.err (!%p4335_p9)
}
  0x33   :  { %s4396_s0 = smov 192   ;;  %s4397_s30 = smov 12  }
  0x34   :  { %49 = dma.hbm_to_vmem [thread:$0]  %s5161_s3, 1536, %s44_s10, [#allocation6], %s4396_s0, %s4396_s0, %s4397_s30  }
  0x35   :  { %s4398_s8 = smov [#allocation8]   ;;  %s4339_s13 = scalar_lea.hbm %s5162_s4, 256 }
  0x36   :  { %s55_s9 = sshll.u32 %s4398_s8, 4  ;;  %p4340_p10 = scmp.ne.s32.totalorder %s5162_s4, %s4339_s13  ;;  %s56_s9 = int_to_ptr.vmem [resolvable:$true] %s55_s9 }
  0x37   :  { %p4343_p11 = scmp.lt.u32.totalorder %s4339_s13, %s5162_s4 }
  0x39   :  { %p4345_p12 = pnand %p4343_p11, %p4340_p10 }
  0x3b   :  { %4348 = shalt.err (!%p4345_p12)
}
  0x3c   :  { %s4349_s1 = scalar_lea.vmem %s56_s9, 256  ;;  %p4354_p0 = scmp.lt.s32.totalorder %s56_s9, %s56_s9 }
  0x3d   :  { %p4350_p13 = scmp.ne.s32.totalorder %s56_s9, %s4349_s1  ;;  %p4355_p1 = scmp.lt.s32.totalorder %s4349_s1, %s4349_s1 }
  0x3f   :  { %p4356_p2 = por %p4355_p1, %p4354_p0 }
  0x41   :  { %p4357_p3 = pnand %p4356_p2, %p4350_p13 }
  0x43   :  { %4360 = shalt.err (!%p4357_p3)
}
  0x44   :  { %61 = dma.hbm_to_vmem [thread:$0]  %s5162_s4, 256, %s56_s9, [#allocation9], %s4392_s28, %s4392_s28, %s4393_s29  }
  0x45   :  { %4383 = dma.done.wait [#allocation3], 128  }
  0x46   :  { %4384 = vsyncadd [#allocation3], 4294967168 }
  0x47   :  { %4385 = dma.done.wait [#allocation6], 2048  }
  0x48   :  { %4386 = vsyncadd [#allocation6], 4294965248 }
  0x49   :  { %4387 = dma.done.wait [#allocation9], 256  }
  0x4a   :  { %4388 = vsyncadd [#allocation9], 4294967040  ;;  %v4399_v0 = vmov 0.0   ;;  %vm4400_vm0 = vmmov 0   ;;  %v4508_v1 = vld [vmem:[#allocation7] ss:$12 sps:$4 sm:$0xff]   ;;  %v205_v13 = vlaneseq }
  0x4b   :  { %3968 = vmatprep.subr.bf16.mxu0 %v4399_v0  ;;  %3972 = vmatprep.mubr.msk.bf16.mxu0 %vm4400_vm0, %v4399_v0  ;;  %v4511_v2 = vld [vmem:[#allocation7 + $0x18] ss:$12 sps:$4 sm:$0xff]   ;;  %vm122_vm1 = vcmask 261120   ;;  %v3792_v5 = vld [vmem:[#allocation8] ss:$0 sm:$0xff]  ;;  %s4401_s4 = smov 80  }
  0x4c   :  { %3976 = vmatprep.subr.bf16.mxu1 %v4399_v0  ;;  %3978 = vmatprep.mubr.msk.bf16.mxu1 %vm4400_vm0, %v4399_v0  ;;  %v4513_v3 = vld [vmem:[#allocation2] sm:$0xff]  ;;  %s4402_s18 = smov 96   ;;  %s4403_s19 = smov 72   ;;  %v4408_v11 = vmov 1983009808   ;;  %v206_v17 = vshrl.u32 %v205_v13, 7 }
  0x4d   :  { %3969 = vmatpush3.bf16.msra.mxu0 %v4508_v1  ;;  %v105_v4 = vpack.c.bf16 %v4513_v3, %v4513_v3  ;;  %s4404_s20 = smov 88   ;;  %s4405_s21 = smov 112   ;;  %v203_v12 = vunpack.c.l.s4 %v4408_v11  ;;  %v4409_v14 = vmov 1934713408   ;;  %vm616_vm2 = vcmask 64512  }
  0x4e   :  { %3970 = vmatprep.subr.bf16.mxu0 %v4399_v0  ;;  %s4406_s22 = smov 120   ;;  %s4407_s23 = smov 104   ;;  %v267_v15 = vunpack.c.l.s4 %v4409_v14  ;;  %vm856_vm3 = vcmask 1043456   ;;  %vm1051_vm4 = vcmask 130048   ;;  %vm1053_vm5 = vcmask 195584  }
  0x4f   :  { %v204_v16 = vunpack.c.0.s8 %v203_v12  ;;  %s4410_s24 = smov 56   ;;  %s4411_s25 = smov 64   ;;  %vm3682_vm6 = vcmask 523264  }
  0x50   :  { %v268_v20 = vunpack.c.0.s8 %v267_v15  ;;  %s4412_s26 = smov 48   ;;  %s4413_s27 = smov 40  }
  0x51   :  { %3971 = vmatpush3.bf16.msra.mxu0 %v4511_v2  ;;  %v4539_v21 = vsub.s32 %v204_v16, %v206_v17  ;;  %s4414_s0 = smov 32   ;;  %s4415_s30 = smov 24  }
  0x52   :  { %3982 = vmatprep.subr.bf16.mxu0 %v4399_v0  ;;  %v4541_v28 = vsub.s32 %v268_v20, %v206_v17  ;;  %s4416_s6 = smov 16  }
  0x54   :  { %3973 = vmatmul.mubr.msk.bf16.vlgmr.msra.gmra.mrb[0].mxu0 %vm122_vm1, %v105_v4 }
  0x55   :  { %3984 = vmatprep.mubr.msk.bf16.mxu0 %vm4400_vm0, %v4399_v0 }
 0x127   :  { %v160_v6 = vpop.f32.mrb[0].mxu0 }
 0x128   :  { %v4523_v7 = vadd.f32 %v3792_v5, %v160_v6  ;;  %v3974_v8 = vpop.f32.mrb[1].mxu0 }
 0x129   :  { %v163_v9 = vpop.f32.mrb[2].mxu0 }
 0x12a   :  { %182 = vrot.lane.b32.xlu1 %v4523_v7, %s4401_s4  ;;  %176 = vrot.lane.b32.xlu0 %v4523_v7, %s4402_s18  ;;  %v3975_v10 = vpop.f32.mrb[3].mxu0 }
 0x12e   :  { %185 = vrot.lane.b32.xlu1 %v4523_v7, %s4403_s19  ;;  %179 = vrot.lane.b32.xlu0 %v4523_v7, %s4404_s20 }
 0x132   :  { %170 = vrot.lane.b32.xlu1 %v4523_v7, %s4405_s21  ;;  %167 = vrot.lane.b32.xlu0 %v4523_v7, %s4406_s22 }
 0x136   :  { %173 = vrot.lane.b32.xlu0 %v4523_v7, %s4407_s23 }
 0x19c   :  { %v183_v18 = vpop.permute.xlu1 %182  ;;  %v177_v19 = vpop.permute.xlu0 %176 }
 0x19d   :  { %v232_v22 = vcombine.low %v177_v19, %v183_v18  ;;  %v233_v23 = vcombine.high %v177_v19, %v183_v18 }
 0x19f   :  { %v240_v29 = vrot.slane %v232_v22, %v4539_v21  ;;  %v247_v30 = vrot.slane %v233_v23, %v4539_v21 }
 0x1a0   :  { %v186_v24 = vpop.permute.xlu1 %185  ;;  %v180_v25 = vpop.permute.xlu0 %179 }
 0x1a1   :  { %v248_v26 = vcombine.low %v180_v25, %v186_v24  ;;  %v249_v27 = vcombine.high %v180_v25, %v186_v24 }
 0x1a3   :  { %v256_v31 = vrot.slane %v248_v26, %v4539_v21  ;;  %v263_v32 = vrot.slane %v249_v27, %v4539_v21 }
 0x1a4   :  { %v168_v33 = vpop.permute.xlu0 %167  ;;  %v171_v38 = vpop.permute.xlu1 %170 }
 0x1a5   :  { %v296_v34 = vcombine.low %v240_v29, %v256_v31  ;;  %v297_v35 = vcombine.high %v240_v29, %v256_v31  ;;  %v312_v36 = vcombine.low %v247_v30, %v263_v32  ;;  %v313_v37 = vcombine.high %v247_v30, %v263_v32 }
 0x1a6   :  { %v200_v43 = vcombine.low %v4523_v7, %v171_v38  ;;  %v201_v44 = vcombine.high %v4523_v7, %v171_v38 }
 0x1a7   :  { %v304_v39 = vrot.slane %v296_v34, %v4541_v28  ;;  %v311_v40 = vrot.slane %v297_v35, %v4541_v28  ;;  %v320_v41 = vrot.slane %v312_v36, %v4541_v28  ;;  %v327_v42 = vrot.slane %v313_v37, %v4541_v28 }
 0x1a8   :  { %v174_v45 = vpop.permute.xlu0 %173  ;;  %v208_v56 = vrot.slane %v200_v43, %v4539_v21  ;;  %v215_v57 = vrot.slane %v201_v44, %v4539_v21 }
 0x1a9   :  { %v3797_v46 = vcombine.low %v304_v39, %v311_v40  ;;  %v3799_v47 = vcombine.high %v304_v39, %v311_v40  ;;  %v3801_v48 = vcombine.low %v320_v41, %v327_v42  ;;  %v3803_v49 = vcombine.high %v320_v41, %v327_v42 }
 0x1aa   :  { %v216_v50 = vcombine.low %v168_v33, %v174_v45  ;;  %v217_v51 = vcombine.high %v168_v33, %v174_v45 }
 0x1ab   :  { %v419_v52 = vrot.slane %v3797_v46, %v4539_v21  ;;  %v435_v53 = vrot.slane %v3799_v47, %v4539_v21  ;;  %v451_v54 = vrot.slane %v3801_v48, %v4539_v21  ;;  %v467_v55 = vrot.slane %v3803_v49, %v4539_v21 }
 0x1ac   :  { %v224_v58 = vrot.slane %v216_v50, %v4539_v21  ;;  %v231_v59 = vrot.slane %v217_v51, %v4539_v21 }
 0x1ad   :  { %v484_v60 = vcombine.low %v419_v52, %v435_v53  ;;  %v516_v61 = vcombine.low %v451_v54, %v467_v55  ;;  %v485_v9 = vcombine.high %v419_v52, %v435_v53  ;;  %v517_v10 = vcombine.high %v451_v54, %v467_v55 }
 0x1ae   :  { %v264_v62 = vcombine.low %v208_v56, %v224_v58  ;;  %v265_v63 = vcombine.high %v208_v56, %v224_v58  ;;  %v280_v4 = vcombine.low %v215_v57, %v231_v59  ;;  %v281_v5 = vcombine.high %v215_v57, %v231_v59 }
 0x1af   :  { %v492_v6 = vrot.slane %v484_v60, %v4541_v28  ;;  %v524_v8 = vrot.slane %v516_v61, %v4541_v28  ;;  %v499_v24 = vrot.slane %v485_v9, %v4541_v28  ;;  %v531_v25 = vrot.slane %v517_v10, %v4541_v28 }
 0x1b0   :  { %v272_v11 = vrot.slane %v264_v62, %v4541_v28  ;;  %v279_v12 = vrot.slane %v265_v63, %v4541_v28  ;;  %v288_v13 = vrot.slane %v280_v4, %v4541_v28  ;;  %v295_v14 = vrot.slane %v281_v5, %v4541_v28 }
 0x1b1   :  { %v536_v15 = vcombine.low %v492_v6, %v524_v8  ;;  %v537_v16 = vcombine.high %v492_v6, %v524_v8  ;;  %v538_v35 = vcombine.low %v499_v24, %v531_v25  ;;  %v539_v36 = vcombine.high %v499_v24, %v531_v25 }
 0x1b2   :  { %v3796_v17 = vcombine.low %v272_v11, %v279_v12  ;;  %v3798_v18 = vcombine.high %v272_v11, %v279_v12  ;;  %v3800_v19 = vcombine.low %v288_v13, %v295_v14  ;;  %v3802_v20 = vcombine.high %v288_v13, %v295_v14 }
 0x1b3   :  { %v612_v22 = vpack.c.bf16 %v536_v15, %v536_v15  ;;  %v613_v23 = vpack.c.bf16 %v537_v16, %v537_v16  ;;  %v614_v43 = vpack.c.bf16 %v538_v35, %v538_v35  ;;  %v615_v44 = vpack.c.bf16 %v539_v36, %v539_v36 }
 0x1b4   :  { %v412_v26 = vrot.slane %v3796_v17, %v4539_v21  ;;  %v428_v27 = vrot.slane %v3798_v18, %v4539_v21  ;;  %v444_v29 = vrot.slane %v3800_v19, %v4539_v21  ;;  %v460_v30 = vrot.slane %v3802_v20, %v4539_v21 }
 0x1b5   :  { %v621_v31 = vsel %vm616_vm2, %v612_v22, 0  ;;  %v667_v32 = vsel %vm616_vm2, %v613_v23, 0  ;;  %v713_v49 = vsel %vm616_vm2, %v614_v43, 0  ;;  %v759_v50 = vsel %vm616_vm2, %v615_v44, 0 }
 0x1b6   :  { %3977 = vmatpush3.bf16.xpose.msra.mxu1 %v621_v31  ;;  %3983 = vmatpush3.bf16.xpose.msra.mxu0 %v667_v32  ;;  %v468_v33 = vcombine.low %v412_v26, %v428_v27  ;;  %v500_v34 = vcombine.low %v444_v29, %v460_v30  ;;  %v469_v38 = vcombine.high %v412_v26, %v428_v27 }
 0x1b7   :  { %3988 = vmatprep.subr.bf16.mxu1 %v4399_v0  ;;  %3994 = vmatprep.subr.bf16.mxu0 %v4399_v0  ;;  %v501_v39 = vcombine.high %v444_v29, %v460_v30 }
 0x1b8   :  { %v476_v37 = vrot.slane %v468_v33, %v4541_v28  ;;  %v508_v40 = vrot.slane %v500_v34, %v4541_v28  ;;  %v483_v47 = vrot.slane %v469_v38, %v4541_v28 }
 0x1b9   :  { %v515_v48 = vrot.slane %v501_v39, %v4541_v28 }
 0x1ba   :  { %v532_v41 = vcombine.low %v476_v37, %v508_v40  ;;  %v533_v42 = vcombine.high %v476_v37, %v508_v40 }
 0x1bb   :  { %v534_v51 = vcombine.low %v483_v47, %v515_v48  ;;  %v535_v52 = vcombine.high %v483_v47, %v515_v48 }
 0x1bc   :  { %v608_v45 = vpack.c.bf16 %v532_v41, %v532_v41  ;;  %v609_v46 = vpack.c.bf16 %v533_v42, %v533_v42 }
 0x1bd   :  { %v610_v53 = vpack.c.bf16 %v534_v51, %v534_v51  ;;  %v611_v54 = vpack.c.bf16 %v535_v52, %v535_v52 }
 0x1be   :  { %3979 = vmatmul.mubr.msk.bf16.vlgmr.msra.gmra.mrb[0].mxu1 %vm616_vm2, %v608_v45  ;;  %3985 = vmatmul.mubr.msk.bf16.vlgmr.msra.gmra.mrb[4].mxu0 %vm616_vm2, %v609_v46 }
 0x1bf   :  { %3989 = vmatpush3.bf16.xpose.msra.mxu1 %v713_v49  ;;  %3995 = vmatpush3.bf16.xpose.msra.mxu0 %v759_v50 }
 0x1c0   :  { %3990 = vmatprep.mubr.msk.bf16.mxu1 %vm4400_vm0, %v4399_v0  ;;  %3996 = vmatprep.mubr.msk.bf16.mxu0 %vm4400_vm0, %v4399_v0 }
 0x1c1   :  { %4000 = vmatprep.subr.bf16.mxu1 %v4399_v0  ;;  %4006 = vmatprep.subr.bf16.mxu0 %v4399_v0 }
 0x1c6   :  { %3991 = vmatmul.mubr.msk.bf16.vlgmr.msra.gmra.mrb[4].mxu1 %vm616_vm2, %v610_v53  ;;  %3997 = vmatmul.mubr.msk.bf16.vlgmr.msra.gmra.mrb[8].mxu0 %vm616_vm2, %v611_v54 }
 0x1c7   :  { %4002 = vmatprep.mubr.msk.bf16.mxu1 %vm4400_vm0, %v4399_v0  ;;  %4008 = vmatprep.mubr.msk.bf16.mxu0 %vm4400_vm0, %v4399_v0 }
 0x291   :  { %v657_v55 = vpop.f32.mrb[0].mxu1  ;;  %v703_v56 = vpop.f32.mrb[4].mxu0 }
 0x292   :  { %v3980_v57 = vpop.f32.mrb[1].mxu1  ;;  %v3986_v58 = vpop.f32.mrb[5].mxu0  ;;  %v801_v59 = vsel %vm616_vm2, %v657_v55, -inf  ;;  %v804_v60 = vsel %vm616_vm2, %v703_v56, -inf }
 0x293   :  { %802 = vmax.xlane.f32.xlu1 %v801_v59  ;;  %v660_v61 = vpop.f32.mrb[2].mxu1  ;;  %805 = vmax.xlane.f32.xlu0 %v804_v60  ;;  %v706_v62 = vpop.f32.mrb[6].mxu0 }
 0x294   :  { %v3981_v63 = vpop.f32.mrb[3].mxu1  ;;  %v3987_v4 = vpop.f32.mrb[7].mxu0 }
 0x299   :  { %v749_v5 = vpop.f32.mrb[4].mxu1  ;;  %v795_v6 = vpop.f32.mrb[8].mxu0 }
 0x29a   :  { %v3992_v8 = vpop.f32.mrb[5].mxu1  ;;  %v3998_v9 = vpop.f32.mrb[9].mxu0  ;;  %v807_v10 = vsel %vm616_vm2, %v749_v5, -inf  ;;  %v810_v11 = vsel %vm616_vm2, %v795_v6, -inf }
 0x29b   :  { %v752_v12 = vpop.f32.mrb[6].mxu1  ;;  %808 = vmax.xlane.f32.xlu0 %v807_v10  ;;  %811 = vmax.xlane.f32.xlu1 %v810_v11  ;;  %v798_v13 = vpop.f32.mrb[10].mxu0 }
 0x29c   :  { %v3993_v14 = vpop.f32.mrb[7].mxu1  ;;  %v3999_v15 = vpop.f32.mrb[11].mxu0 }
 0x2ac   :  { %191 = vrot.lane.b32.xlu1 %v4523_v7, %s4410_s24 }
 0x2b1   :  { %188 = vrot.lane.b32.xlu0 %v4523_v7, %s4411_s25 }
 0x320   :  { %v803_v16 = vpop.xlane.xlu1 %802  ;;  %v806_v17 = vpop.xlane.xlu0 %805 }
 0x321   :  { %v813_v18 = vsub.f32 %v657_v55, %v803_v16  ;;  %v814_v19 = vsub.f32 %v703_v56, %v806_v17 }
 0x323   :  { %v817_v20 = vmul.f32 1.442695, %v813_v18  ;;  %v819_v22 = vmul.f32 1.442695, %v814_v19 }
 0x325   :  { %4215 = vpow2.f32 %v817_v20 }
 0x326   :  { %4217 = vpow2.f32 %v819_v22 }
 0x328   :  { %v812_v27 = vpop.xlane.xlu1 %811  ;;  %v809_v29 = vpop.xlane.xlu0 %808 }
 0x329   :  { %v816_v30 = vsub.f32 %v795_v6, %v812_v27  ;;  %v815_v31 = vsub.f32 %v749_v5, %v809_v29 }
 0x32b   :  { %v823_v32 = vmul.f32 1.442695, %v816_v30  ;;  %v821_v33 = vmul.f32 1.442695, %v815_v31 }
 0x32c   :  { %v192_v38 = vpop.permute.xlu1 %191 }
 0x32d   :  { %4219 = vpow2.f32 %v823_v32 }
 0x32e   :  { %4221 = vpow2.f32 %v821_v33 }
 0x32f   :  { %v4604_v23 = vpop.eup %4215 }
 0x330   :  { %v4606_v24 = vpop.eup %4217  ;;  %v825_v25 = vsel %vm616_vm2, %v4604_v23, 0.0 }
 0x331   :  { %826 = vadd.xlane.f32.xlu0 %v825_v25  ;;  %v828_v26 = vsel %vm616_vm2, %v4606_v24, 0.0 }
 0x332   :  { %829 = vadd.xlane.f32.xlu1 %v828_v26 }
 0x337   :  { %v4614_v34 = vpop.eup %4219 }
 0x338   :  { %v4616_v35 = vpop.eup %4221  ;;  %v834_v36 = vsel %vm616_vm2, %v4614_v34, 0.0 }
 0x339   :  { %v831_v37 = vsel %vm616_vm2, %v4616_v35, 0.0 }
 0x343   :  { %194 = vrot.lane.b32.xlu1 %v4523_v7, %s4412_s26 }
 0x347   :  { %197 = vrot.lane.b32.xlu0 %v4523_v7, %s4413_s27  ;;  %v189_v7 = vpop.permute.xlu0 %188 }
 0x366   :  { %835 = vadd.xlane.f32.xlu0 %v834_v36 }
 0x367   :  { %832 = vadd.xlane.f32.xlu1 %v831_v37 }
 0x37c   :  { %1060 = vrot.lane.b32.xlu0 %v4508_v1, %s4414_s0 }
 0x3be   :  { %v827_v39 = vpop.xlane.xlu0 %826 }
 0x3bf   :  { %v830_v40 = vpop.xlane.xlu1 %829  ;;  %4223 = vrcp.f32 %v827_v39 }
 0x3c0   :  { %4225 = vrcp.f32 %v830_v40 }
 0x3c2   :  { %v198_v41 = vpop.permute.xlu0 %197 }
 0x3c3   :  { %v352_v42 = vcombine.low %v192_v38, %v198_v41  ;;  %v353_v43 = vcombine.high %v192_v38, %v198_v41  ;;  %v195_v44 = vpop.permute.xlu1 %194 }
 0x3c4   :  { %v336_v45 = vcombine.low %v189_v7, %v195_v44  ;;  %v337_v46 = vcombine.high %v189_v7, %v195_v44 }
 0x3c5   :  { %v360_v47 = vrot.slane %v352_v42, %v4539_v21  ;;  %v367_v48 = vrot.slane %v353_v43, %v4539_v21 }
 0x3c6   :  { %v344_v49 = vrot.slane %v336_v45, %v4539_v21  ;;  %v351_v50 = vrot.slane %v337_v46, %v4539_v21 }
 0x3c8   :  { %v368_v51 = vcombine.low %v344_v49, %v360_v47  ;;  %v369_v52 = vcombine.high %v344_v49, %v360_v47  ;;  %v384_v53 = vcombine.low %v351_v50, %v367_v48  ;;  %v385_v54 = vcombine.high %v351_v50, %v367_v48 }
 0x3c9   :  { %v4224_v14 = vpop.eup %4223 }
 0x3ca   :  { %v376_v55 = vrot.slane %v368_v51, %v4541_v28  ;;  %v383_v56 = vrot.slane %v369_v52, %v4541_v28  ;;  %v392_v57 = vrot.slane %v384_v53, %v4541_v28  ;;  %v399_v58 = vrot.slane %v385_v54, %v4541_v28  ;;  %v4226_v17 = vpop.eup %4225 }
 0x3cb   :  { %v841_v25 = vmul.f32 %v4224_v14, %v4604_v23  ;;  %v842_v26 = vmul.f32 %v4226_v17, %v4606_v24 }
 0x3cc   :  { %v540_v59 = vcombine.low %v376_v55, %v383_v56  ;;  %v3804_v60 = vcombine.high %v376_v55, %v383_v56  ;;  %v556_v61 = vcombine.low %v392_v57, %v399_v58  ;;  %v3805_v62 = vcombine.high %v392_v57, %v399_v58 }
 0x3cd   :  { %v845_v36 = vpack.c.bf16 %v841_v25, %v841_v25  ;;  %v846_v37 = vpack.c.bf16 %v842_v26, %v842_v26 }
 0x3ce   :  { %v547_v63 = vrot.slane %v540_v59, %v4539_v21  ;;  %v555_v4 = vrot.slane %v3804_v60, %v4539_v21  ;;  %v563_v5 = vrot.slane %v556_v61, %v4539_v21  ;;  %v571_v6 = vrot.slane %v3805_v62, %v4539_v21 }
 0x3d0   :  { %v572_v8 = vcombine.low %v547_v63, %v555_v4  ;;  %v573_v9 = vcombine.high %v547_v63, %v555_v4  ;;  %v588_v10 = vcombine.low %v563_v5, %v571_v6  ;;  %v589_v11 = vcombine.high %v563_v5, %v571_v6 }
 0x3d2   :  { %v580_v12 = vrot.slane %v572_v8, %v4541_v28  ;;  %v587_v13 = vrot.slane %v573_v9, %v4541_v28  ;;  %v596_v15 = vrot.slane %v588_v10, %v4541_v28  ;;  %v603_v16 = vrot.slane %v589_v11, %v4541_v28  ;;  %v4674_v8 = vld [vmem:[#allocation7 + $0x4] ss:$12 sps:$4 sm:$0xff]   ;;  %v3814_v9 = vld [vmem:[#allocation8 + $0x1] ss:$0 sm:$0xff] }
 0x3d4   :  { %v604_v18 = vcombine.low %v580_v12, %v596_v15  ;;  %v605_v19 = vcombine.high %v580_v12, %v596_v15  ;;  %v606_v20 = vcombine.low %v587_v13, %v603_v16  ;;  %v607_v22 = vcombine.high %v587_v13, %v603_v16 }
 0x3d6   :  { %v849_v27 = vpack.c.bf16 %v604_v18, %v604_v18  ;;  %v850_v29 = vpack.c.bf16 %v605_v19, %v605_v19  ;;  %v851_v32 = vpack.c.bf16 %v606_v20, %v606_v20  ;;  %v852_v33 = vpack.c.bf16 %v607_v22, %v607_v22  ;;  %v1342_v19 = vld [vmem:[#allocation5] sm:$0xff]  ;;  %v1343_v20 = vld [vmem:[#allocation5 + $0x8] sm:$0xff] }
 0x3d7   :  { %v1346_v22 = vpack.c.bf16 %v1343_v20, %v1342_v19 }
 0x3d8   :  { %v858_v30 = vsel %vm856_vm3, %v849_v27, 0  ;;  %v904_v31 = vsel %vm856_vm3, %v850_v29, 0  ;;  %v950_v23 = vsel %vm856_vm3, %v851_v32, 0  ;;  %v996_v24 = vsel %vm856_vm3, %v852_v33, 0  ;;  %v1344_v33 = vld [vmem:[#allocation5 + $0x10] sm:$0xff] }
 0x3d9   :  { %4001 = vmatpush3.bf16.msra.mxu1 %v858_v30  ;;  %4007 = vmatpush3.bf16.msra.mxu0 %v904_v31 }
 0x3da   :  { %4012 = vmatprep.subr.bf16.mxu1 %v4399_v0  ;;  %4018 = vmatprep.subr.bf16.mxu0 %v4399_v0 }
 0x3dc   :  { %4003 = vmatmul.mubr.msk.bf16.vlgmr.msra.gmra.mrb[8].mxu1 %vm616_vm2, %v845_v36  ;;  %4009 = vmatmul.mubr.msk.bf16.vlgmr.msra.gmra.mrb[12].mxu0 %vm616_vm2, %v846_v37  ;;  %v1345_v36 = vld [vmem:[#allocation5 + $0x18] sm:$0xff] }
 0x3dd   :  { %4013 = vmatpush3.bf16.msra.mxu1 %v950_v23  ;;  %4019 = vmatpush3.bf16.msra.mxu0 %v996_v24  ;;  %v1347_v23 = vpack.c.bf16 %v1345_v36, %v1344_v33 }
 0x3de   :  { %4014 = vmatprep.mubr.msk.bf16.mxu1 %vm4400_vm0, %v4399_v0  ;;  %4020 = vmatprep.mubr.msk.bf16.mxu0 %vm4400_vm0, %v4399_v0 }
 0x3df   :  { %4024 = vmatprep.subr.bf16.mxu1 %v4399_v0  ;;  %4032 = vmatprep.subr.bf16.mxu0 %v4399_v0 }
 0x3f3   :  { %v836_v7 = vpop.xlane.xlu0 %835 }
 0x3f4   :  { %4227 = vrcp.f32 %v836_v7  ;;  %v833_v38 = vpop.xlane.xlu1 %832 }
 0x3f5   :  { %4229 = vrcp.f32 %v833_v38  ;;  %v3816_v38 = vld [vmem:[#allocation8 + $0x7] ss:$0 sm:$0xff] }
 0x3f7   :  { %v1061_v45 = vpop.permute.xlu0 %1060 }
 0x3fe   :  { %v4228_v39 = vpop.eup %4227 }
 0x3ff   :  { %v4230_v40 = vpop.eup %4229  ;;  %v844_v41 = vmul.f32 %v4228_v39, %v4614_v34 }
 0x400   :  { %v843_v42 = vmul.f32 %v4230_v40, %v4616_v35  ;;  %v3817_v40 = vld [vmem:[#allocation8 + $0x8] ss:$0 sm:$0xff] }
 0x401   :  { %v848_v43 = vpack.c.bf16 %v844_v41, %v844_v41 }
 0x402   :  { %v847_v44 = vpack.c.bf16 %v843_v42, %v843_v42 }
 0x403   :  { %4021 = vmatmul.mubr.msk.bf16.vlgmr.msra.gmra.mrb[16].mxu0 %vm616_vm2, %v848_v43 }
 0x404   :  { %4015 = vmatmul.mubr.msk.bf16.vlgmr.msra.gmra.mrb[12].mxu1 %vm616_vm2, %v847_v44  ;;  %4036 = vmatprep.mubr.msk.bf16.mxu0 %vm4400_vm0, %v4399_v0  ;;  %v3824_v44 = vld [vmem:[#allocation8 + $0x3] ss:$0 sm:$0xff] }
 0x405   :  { %4028 = vmatprep.mubr.msk.bf16.mxu1 %vm4400_vm0, %v4399_v0  ;;  %4025 = vmatpush3.bf16.msra.mxu1 %v1061_v45 }
 0x406   :  { %4026 = vmatprep.subr.bf16.mxu1 %v4399_v0  ;;  %4033 = vmatpush3.bf16.msra.mxu0 %v4674_v8 }
 0x407   :  { %4034 = vmatprep.subr.bf16.mxu0 %v4399_v0 }
 0x4af   :  { %v894_v34 = vpop.f32.mrb[8].mxu1  ;;  %v940_v35 = vpop.f32.mrb[12].mxu0 }
 0x4b0   :  { %v4004_v46 = vpop.f32.mrb[9].mxu1  ;;  %1039 = vrot.lane.b32.xlu1 %v940_v35, %s4393_s29  ;;  %v4010_v47 = vpop.f32.mrb[13].mxu0 }
 0x4b1   :  { %v897_v48 = vpop.f32.mrb[10].mxu1  ;;  %v943_v49 = vpop.f32.mrb[14].mxu0 }
 0x4b2   :  { %v4005_v50 = vpop.f32.mrb[11].mxu1  ;;  %v4011_v51 = vpop.f32.mrb[15].mxu0 }
 0x4b3   :  { %v3818_v51 = vld [vmem:[#allocation8 + $0x2] ss:$0 sm:$0xff] }
 0x4d6   :  { %v1032_v52 = vpop.f32.mrb[16].mxu0 }
 0x4d7   :  { %v986_v53 = vpop.f32.mrb[12].mxu1  ;;  %1047 = vrot.lane.b32.xlu0 %v1032_v52, %s4415_s30  ;;  %v4022_v1 = vpop.f32.mrb[17].mxu0 }
 0x4d8   :  { %v4016_v54 = vpop.f32.mrb[13].mxu1  ;;  %1043 = vrot.lane.b32.xlu1 %v986_v53, %s4416_s6  ;;  %v1035_v55 = vpop.f32.mrb[18].mxu0 }
 0x4d9   :  { %v989_v56 = vpop.f32.mrb[14].mxu1  ;;  %v4023_v57 = vpop.f32.mrb[19].mxu0 }
 0x4da   :  { %v4017_v58 = vpop.f32.mrb[15].mxu1 }
 0x4dc   :  { %1062 = vrot.lane.b32.xlu1 %v4511_v2, %s4414_s0  ;;  %v4678_v2 = vld [vmem:[#allocation7 + $0x1c] ss:$12 sps:$4 sm:$0xff]  }
 0x4dd   :  { %4035 = vmatpush3.bf16.msra.mxu0 %v4678_v2 }
 0x4de   :  { %4048 = vmatprep.subr.bf16.mxu0 %v4399_v0 }
 0x522   :  { %v1040_v59 = vpop.permute.xlu1 %1039 }
 0x523   :  { %v1050_v60 = vsel %vm616_vm2, %v894_v34, %v1040_v59 }
 0x549   :  { %v1048_v62 = vpop.permute.xlu0 %1047 }
 0x54a   :  { %v1044_v61 = vpop.permute.xlu1 %1043 }
 0x54b   :  { %v1052_v63 = vsel %vm1051_vm4, %v1050_v60, %v1044_v61 }
 0x54c   :  { %v1054_v4 = vsel %vm1053_vm5, %v1052_v63, %v1048_v62 }
 0x54d   :  { %v1055_v6 = vpack.c.bf16 %v1054_v4, %v1054_v4 }
 0x54e   :  { %v1063_v5 = vpop.permute.xlu1 %1062 }
 0x54f   :  { %4027 = vmatpush3.bf16.msra.mxu1 %v1063_v5 }
 0x552   :  { %4029 = vmatmul.mubr.msk.bf16.vlgmr.msra.gmra.mrb[16].mxu1 %vm122_vm1, %v1055_v6 }
 0x553   :  { %4044 = vmatprep.mubr.msk.bf16.mxu1 %vm122_vm1, %v1346_v22 }
 0x625   :  { %v1103_v10 = vpop.f32.mrb[16].mxu1 }
 0x626   :  { %v1104_v11 = vadd.f32 %v3814_v9, %v1103_v10  ;;  %v4030_v12 = vpop.f32.mrb[17].mxu1 }
 0x627   :  { %v1106_v13 = vpop.f32.mrb[18].mxu1 }
 0x628   :  { %v1109_v14 = vadd.f32 %v1104_v11, %v4513_v3  ;;  %v4031_v15 = vpop.f32.mrb[19].mxu1 }
 0x62a   :  { %v1110_v16 = vsel %vm122_vm1, %v1109_v14, 0.0  ;;  %v1115_v17 = vmul.f32 %v1109_v14, %v1109_v14 }
 0x62b   :  { %1111 = vadd.xlane.f32.xlu0 %v1110_v16 }
 0x62c   :  { %v1116_v18 = vsel %vm122_vm1, %v1115_v17, 0.0 }
 0x62d   :  { %1117 = vadd.xlane.f32.xlu1 %v1116_v18 }
 0x63e   :  { %1354 = vrot.lane.b32.xlu1 %v4678_v2, %s4402_s18 }
 0x641   :  { %1352 = vrot.lane.b32.xlu0 %v4674_v8, %s4402_s18 }
 0x6b8   :  { %v1112_v3 = vpop.xlane.xlu0 %1111 }
 0x6b9   :  { %v1114_v25 = vmul.f32 0.03125, %v1112_v3 }
 0x6ba   :  { %v1118_v26 = vpop.xlane.xlu1 %1117 }
 0x6bb   :  { %v1120_v27 = vmul.f32 %v1114_v25, %v1114_v25  ;;  %v1119_v29 = vmul.f32 0.03125, %v1118_v26  ;;  %v1122_v24 = vsub.f32 %v1109_v14, %v1114_v25 }
 0x6bc   :  { %v1353_v30 = vpop.permute.xlu0 %1352 }
 0x6bd   :  { %v1121_v31 = vsub.f32 %v1119_v29, %v1120_v27  ;;  %4040 = vmatprep.subr.bf16.mxu1 %v1353_v30 }
 0x6be   :  { %4041 = vmatpush3.bf16.msra.mxu1 %v1353_v30  ;;  %v1355_v32 = vpop.permute.xlu1 %1354 }
 0x6bf   :  { %v1123_v37 = vadd.f32 1e-05, %v1121_v31  ;;  %4042 = vmatprep.subr.bf16.mxu1 %v1355_v32 }
 0x6c1   :  { %4231 = vrsqrt.f32 %v1123_v37 }
 0x6c2   :  { %4043 = vmatpush3.bf16.msra.mxu1 %v1355_v32 }
 0x6c3   :  { %4054 = vmatprep.subr.bf16.mxu1 %v4399_v0 }
 0x6c5   :  { %4045 = vmatmul.mubr.msk.bf16.vlgmr.msra.gmra.mrb[20].mxu1 %vm122_vm1, %v1347_v23 }
 0x6c6   :  { %4056 = vmatprep.mubr.msk.bf16.mxu1 %vm4400_vm0, %v4399_v0 }
 0x6cb   :  { %v4232_v7 = vpop.eup %4231 }
 0x6cc   :  { %v1125_v39 = vmul.f32 %v4232_v7, %v1122_v24 }
 0x6ce   :  { %v1130_v41 = vmul.f32 %v3816_v38, %v1125_v39 }
 0x6d0   :  { %v4694_v42 = vadd.f32 %v3817_v40, %v1130_v41 }
 0x6d2   :  { %v1136_v43 = vpack.c.bf16 %v4694_v42, %v4694_v42 }
 0x6d4   :  { %4037 = vmatmul.mubr.msk.bf16.vlgmr.msra.gmra.mrb[20].mxu0 %vm122_vm1, %v1136_v43 }
 0x6d5   :  { %4050 = vmatprep.mubr.msk.bf16.mxu0 %vm4400_vm0, %v4399_v0 }
 0x798   :  { %v4046_v45 = vpop.f32.mrb[20].mxu1 }
 0x799   :  { %v4701_v34 = vadd.f32 %v4046_v45, %v3824_v44  ;;  %v1398_v35 = vpop.f32.mrb[21].mxu1 }
 0x79a   :  { %v4703_v46 = vadd.f32 %v3824_v44, %v1398_v35  ;;  %v4047_v47 = vpop.f32.mrb[22].mxu1 }
 0x79b   :  { %v4705_v48 = vadd.f32 %v4047_v47, %v3824_v44  ;;  %v1401_v49 = vpop.f32.mrb[23].mxu1 }
 0x79c   :  { %v4707_v50 = vadd.f32 %v3824_v44, %v1401_v49  ;;  %1417 = vrot.lane.b32.xlu0 %v4703_v46, %s4406_s22 }
 0x79e   :  { %1419 = vrot.lane.b32.xlu1 %v4707_v50, %s4406_s22 }
 0x7a0   :  { %1429 = vrot.lane.b32.xlu0 %v4703_v46, %s4405_s21 }
 0x7a2   :  { %1431 = vrot.lane.b32.xlu1 %v4707_v50, %s4405_s21 }
 0x7a4   :  { %1441 = vrot.lane.b32.xlu0 %v4703_v46, %s4407_s23 }
 0x7a6   :  { %1443 = vrot.lane.b32.xlu1 %v4707_v50, %s4407_s23 }
 0x7a7   :  { %v1190_v52 = vpop.f32.mrb[20].mxu0 }
 0x7a8   :  { %v4721_v53 = vadd.f32 %v3818_v51, %v1190_v52  ;;  %v4038_v1 = vpop.f32.mrb[21].mxu0 }
 0x7a9   :  { %v1193_v54 = vpop.f32.mrb[22].mxu0 }
 0x7aa   :  { %1200 = vrot.lane.b32.xlu1 %v4721_v53, %s4405_s21  ;;  %1197 = vrot.lane.b32.xlu0 %v4721_v53, %s4406_s22  ;;  %v4039_v55 = vpop.f32.mrb[23].mxu0 }
 0x7ae   :  { %1455 = vrot.lane.b32.xlu1 %v4707_v50, %s4402_s18  ;;  %1203 = vrot.lane.b32.xlu0 %v4721_v53, %s4407_s23 }
 0x7b2   :  { %1465 = vrot.lane.b32.xlu1 %v4703_v46, %s4404_s20  ;;  %1453 = vrot.lane.b32.xlu0 %v4703_v46, %s4402_s18 }
 0x7b6   :  { %1467 = vrot.lane.b32.xlu0 %v4707_v50, %s4404_s20 }
 0x80e   :  { %v1418_v56 = vpop.permute.xlu0 %1417 }
 0x810   :  { %v1420_v57 = vpop.permute.xlu1 %1419 }
 0x812   :  { %v1430_v58 = vpop.permute.xlu0 %1429 }
 0x813   :  { %v1501_v59 = vcombine.low %v4703_v46, %v1430_v58  ;;  %v1502_v60 = vcombine.high %v4703_v46, %v1430_v58 }
 0x814   :  { %v1432_v61 = vpop.permute.xlu1 %1431 }
 0x815   :  { %v1509_v5 = vrot.slane %v1501_v59, %v4539_v21  ;;  %v1516_v6 = vrot.slane %v1502_v60, %v4539_v21  ;;  %v1637_v9 = vcombine.low %v4707_v50, %v1432_v61  ;;  %v1638_v10 = vcombine.high %v4707_v50, %v1432_v61 }
 0x816   :  { %v1442_v62 = vpop.permute.xlu0 %1441 }
 0x817   :  { %v1517_v63 = vcombine.low %v1418_v56, %v1442_v62  ;;  %v1518_v4 = vcombine.high %v1418_v56, %v1442_v62  ;;  %v1645_v20 = vrot.slane %v1637_v9, %v4539_v21  ;;  %v1652_v22 = vrot.slane %v1638_v10, %v4539_v21 }
 0x818   :  { %v1444_v11 = vpop.permute.xlu1 %1443 }
 0x819   :  { %v1525_v12 = vrot.slane %v1517_v63, %v4539_v21  ;;  %v1532_v13 = vrot.slane %v1518_v4, %v4539_v21  ;;  %v1653_v14 = vcombine.low %v1420_v57, %v1444_v11  ;;  %v1654_v15 = vcombine.high %v1420_v57, %v1444_v11 }
 0x81b   :  { %v1565_v16 = vcombine.low %v1509_v5, %v1525_v12  ;;  %v1566_v17 = vcombine.high %v1509_v5, %v1525_v12  ;;  %v1581_v18 = vcombine.low %v1516_v6, %v1532_v13  ;;  %v1582_v19 = vcombine.high %v1516_v6, %v1532_v13 }
 0x81c   :  { %v1661_v3 = vrot.slane %v1653_v14, %v4539_v21  ;;  %v1668_v25 = vrot.slane %v1654_v15, %v4539_v21  ;;  %v1198_v26 = vpop.permute.xlu0 %1197  ;;  %v1201_v44 = vpop.permute.xlu1 %1200 }
 0x81d   :  { %v1573_v27 = vrot.slane %v1565_v16, %v4541_v28  ;;  %v1580_v29 = vrot.slane %v1566_v17, %v4541_v28  ;;  %v1589_v30 = vrot.slane %v1581_v18, %v4541_v28  ;;  %v1596_v31 = vrot.slane %v1582_v19, %v4541_v28 }
 0x81e   :  { %v1701_v32 = vcombine.low %v1645_v20, %v1661_v3  ;;  %v1702_v33 = vcombine.high %v1645_v20, %v1661_v3  ;;  %v1717_v36 = vcombine.low %v1652_v22, %v1668_v25  ;;  %v1718_v37 = vcombine.high %v1652_v22, %v1668_v25 }
 0x81f   :  { %v3827_v23 = vcombine.low %v1573_v27, %v1580_v29  ;;  %v3829_v24 = vcombine.high %v1573_v27, %v1580_v29  ;;  %v3831_v7 = vcombine.low %v1589_v30, %v1596_v31  ;;  %v3833_v38 = vcombine.high %v1589_v30, %v1596_v31 }
 0x820   :  { %v1709_v39 = vrot.slane %v1701_v32, %v4541_v28  ;;  %v1716_v40 = vrot.slane %v1702_v33, %v4541_v28  ;;  %v1725_v41 = vrot.slane %v1717_v36, %v4541_v28  ;;  %v1732_v43 = vrot.slane %v1718_v37, %v4541_v28  ;;  %v1204_v45 = vpop.permute.xlu0 %1203 }
 0x821   :  { %v2053_v35 = vrot.slane %v3827_v23, %v4539_v21  ;;  %v2069_v47 = vrot.slane %v3829_v24, %v4539_v21  ;;  %v2085_v49 = vrot.slane %v3831_v7, %v4539_v21  ;;  %v2101_v51 = vrot.slane %v3833_v38, %v4539_v21 }
 0x822   :  { %v3835_v52 = vcombine.low %v1709_v39, %v1716_v40  ;;  %v3837_v1 = vcombine.high %v1709_v39, %v1716_v40  ;;  %v3839_v54 = vcombine.low %v1725_v41, %v1732_v43  ;;  %v3841_v55 = vcombine.high %v1725_v41, %v1732_v43 }
 0x823   :  { %v1206_v56 = vcombine.low %v4721_v53, %v1201_v44  ;;  %v1207_v57 = vcombine.high %v4721_v53, %v1201_v44  ;;  %v1222_v58 = vcombine.low %v1198_v26, %v1204_v45  ;;  %v1223_v59 = vcombine.high %v1198_v26, %v1204_v45 }
 0x824   :  { %v2189_v60 = vrot.slane %v3835_v52, %v4539_v21  ;;  %v2205_v61 = vrot.slane %v3837_v1, %v4539_v21  ;;  %v2221_v62 = vrot.slane %v3839_v54, %v4539_v21  ;;  %v2237_v63 = vrot.slane %v3841_v55, %v4539_v21 }
 0x825   :  { %v1214_v4 = vrot.slane %v1206_v56, %v4539_v21  ;;  %v1221_v5 = vrot.slane %v1207_v57, %v4539_v21  ;;  %v1230_v6 = vrot.slane %v1222_v58, %v4539_v21  ;;  %v1237_v9 = vrot.slane %v1223_v59, %v4539_v21 }
 0x826   :  { %v2109_v10 = vcombine.low %v2053_v35, %v2069_v47  ;;  %v2141_v53 = vcombine.low %v2085_v49, %v2101_v51  ;;  %v2245_v11 = vcombine.low %v2189_v60, %v2205_v61  ;;  %v2277_v12 = vcombine.low %v2221_v62, %v2237_v63 }
 0x827   :  { %v1238_v13 = vcombine.low %v1214_v4, %v1230_v6  ;;  %v1239_v14 = vcombine.high %v1214_v4, %v1230_v6  ;;  %v1254_v15 = vcombine.low %v1221_v5, %v1237_v9  ;;  %v1255_v16 = vcombine.high %v1221_v5, %v1237_v9 }
 0x828   :  { %v2117_v17 = vrot.slane %v2109_v10, %v4541_v28  ;;  %v2149_v18 = vrot.slane %v2141_v53, %v4541_v28  ;;  %v2253_v19 = vrot.slane %v2245_v11, %v4541_v28  ;;  %v2285_v20 = vrot.slane %v2277_v12, %v4541_v28 }
 0x829   :  { %v1246_v22 = vrot.slane %v1238_v13, %v4541_v28  ;;  %v1253_v3 = vrot.slane %v1239_v14, %v4541_v28  ;;  %v1262_v25 = vrot.slane %v1254_v15, %v4541_v28  ;;  %v1269_v26 = vrot.slane %v1255_v16, %v4541_v28 }
 0x82a   :  { %v2173_v27 = vcombine.low %v2117_v17, %v2149_v18  ;;  %v2309_v29 = vcombine.low %v2253_v19, %v2285_v20  ;;  %v2174_v30 = vcombine.high %v2117_v17, %v2149_v18  ;;  %v2310_v31 = vcombine.high %v2253_v19, %v2285_v20  ;;  %v3859_v19 = vld [vmem:[%s5160_s2] ss:$0 sm:$0xff] }
 0x82b   :  { %v1274_v32 = vcombine.low %v1246_v22, %v1253_v3  ;;  %v3822_v33 = vcombine.high %v1246_v22, %v1253_v3  ;;  %v1290_v36 = vcombine.low %v1262_v25, %v1269_v26  ;;  %v3823_v37 = vcombine.high %v1262_v25, %v1269_v26 }
 0x82c   :  { %v2594_v23 = vpack.c.bf16 %v2309_v29, %v2173_v27  ;;  %v2595_v24 = vpack.c.bf16 %v2310_v31, %v2174_v30  ;;  %v2110_v7 = vcombine.high %v2053_v35, %v2069_v47  ;;  %v2142_v38 = vcombine.high %v2085_v49, %v2101_v51 }
 0x82d   :  { %v1281_v39 = vrot.slane %v1274_v32, %v4539_v21  ;;  %v1289_v40 = vrot.slane %v3822_v33, %v4539_v21  ;;  %v1297_v41 = vrot.slane %v1290_v36, %v4539_v21  ;;  %v1305_v43 = vrot.slane %v3823_v37, %v4539_v21 }
 0x82e   :  { %v2608_v44 = vsel %vm616_vm2, %v2594_v23, 0  ;;  %v2654_v45 = vsel %vm616_vm2, %v2595_v24, 0  ;;  %v2124_v54 = vrot.slane %v2110_v7, %v4541_v28  ;;  %v2156_v35 = vrot.slane %v2142_v38, %v4541_v28 }
 0x82f   :  { %v1306_v52 = vcombine.low %v1281_v39, %v1289_v40  ;;  %v1322_v1 = vcombine.low %v1297_v41, %v1305_v43  ;;  %4049 = vmatpush3.bf16.xpose.msra.mxu0 %v2608_v44  ;;  %4055 = vmatpush3.bf16.xpose.msra.mxu1 %v2654_v45  ;;  %v2246_v47 = vcombine.high %v2189_v60, %v2205_v61 }
 0x830   :  { %4060 = vmatprep.subr.bf16.mxu0 %v4399_v0  ;;  %v2278_v49 = vcombine.high %v2221_v62, %v2237_v63  ;;  %4066 = vmatprep.subr.bf16.mxu1 %v4399_v0  ;;  %v1307_v56 = vcombine.high %v1281_v39, %v1289_v40  ;;  %v1323_v57 = vcombine.high %v1297_v41, %v1305_v43 }
 0x831   :  { %v1314_v51 = vrot.slane %v1306_v52, %v4541_v28  ;;  %v1330_v55 = vrot.slane %v1322_v1, %v4541_v28  ;;  %v2260_v58 = vrot.slane %v2246_v47, %v4541_v28  ;;  %v2175_v6 = vcombine.low %v2124_v54, %v2156_v35  ;;  %v1456_v1 = vpop.permute.xlu1 %1455 }
 0x832   :  { %v2292_v59 = vrot.slane %v2278_v49, %v4541_v28  ;;  %v2176_v10 = vcombine.high %v2124_v54, %v2156_v35  ;;  %v1321_v11 = vrot.slane %v1307_v56, %v4541_v28  ;;  %v1337_v12 = vrot.slane %v1323_v57, %v4541_v28  ;;  %v1454_v54 = vpop.permute.xlu0 %1453 }
 0x833   :  { %v1338_v4 = vcombine.low %v1314_v51, %v1330_v55  ;;  %v1339_v5 = vcombine.high %v1314_v51, %v1330_v55 }
 0x834   :  { %v2311_v9 = vcombine.low %v2260_v58, %v2292_v59  ;;  %v2312_v53 = vcombine.high %v2260_v58, %v2292_v59  ;;  %v1340_v15 = vcombine.low %v1321_v11, %v1337_v12  ;;  %v1341_v16 = vcombine.high %v1321_v11, %v1337_v12 }
 0x835   :  { %v4793_v60 = vpack.c.bf16 %v1338_v4, %v1338_v4  ;;  %v4795_v61 = vpack.c.bf16 %v1339_v5, %v1339_v5  ;;  %v1466_v35 = vpop.permute.xlu1 %1465 }
 0x836   :  { %v2596_v62 = vpack.c.bf16 %v2311_v9, %v2175_v6  ;;  %v2597_v63 = vpack.c.bf16 %v2312_v53, %v2176_v10  ;;  %v4811_v17 = vpack.c.bf16 %v1340_v15, %v1340_v15  ;;  %v4813_v18 = vpack.c.bf16 %v1341_v16, %v1341_v16  ;;  %v1468_v47 = vpop.permute.xlu0 %1467 }
 0x837   :  { %4051 = vmatmul.mubr.msk.bf16.vlgmr.msra.gmra.mrb[24].mxu0 %vm616_vm2, %v4793_v60  ;;  %4057 = vmatmul.mubr.msk.bf16.vlgmr.msra.gmra.mrb[24].mxu1 %vm616_vm2, %v4795_v61 }
 0x838   :  { %v2700_v13 = vsel %vm616_vm2, %v2596_v62, 0  ;;  %v2746_v14 = vsel %vm616_vm2, %v2597_v63, 0  ;;  %4062 = vmatprep.mubr.msk.bf16.mxu0 %vm4400_vm0, %v4399_v0  ;;  %4068 = vmatprep.mubr.msk.bf16.mxu1 %vm4400_vm0, %v4399_v0 }
 0x839   :  { %4061 = vmatpush3.bf16.xpose.msra.mxu0 %v2700_v13  ;;  %4067 = vmatpush3.bf16.xpose.msra.mxu1 %v2746_v14 }
 0x83a   :  { %4072 = vmatprep.subr.bf16.mxu0 %v4399_v0  ;;  %4078 = vmatprep.subr.bf16.mxu1 %v4399_v0 }
 0x840   :  { %4063 = vmatmul.mubr.msk.bf16.vlgmr.msra.gmra.mrb[28].mxu0 %vm616_vm2, %v4811_v17  ;;  %4069 = vmatmul.mubr.msk.bf16.vlgmr.msra.gmra.mrb[28].mxu1 %vm616_vm2, %v4813_v18 }
 0x841   :  { %4074 = vmatprep.mubr.msk.bf16.mxu0 %vm4400_vm0, %v4399_v0  ;;  %4080 = vmatprep.mubr.msk.bf16.mxu1 %vm4400_vm0, %v4399_v0 }
 0x90a   :  { %v2644_v20 = vpop.f32.mrb[24].mxu0  ;;  %v2690_v22 = vpop.f32.mrb[24].mxu1 }
 0x90b   :  { %v2645_v3 = vadd.f32 %v3859_v19, %v2644_v20  ;;  %v2691_v25 = vadd.f32 %v3859_v19, %v2690_v22  ;;  %v4052_v26 = vpop.f32.mrb[25].mxu0  ;;  %v4058_v27 = vpop.f32.mrb[25].mxu1 }
 0x90c   :  { %v2647_v29 = vpop.f32.mrb[26].mxu0  ;;  %v2693_v30 = vpop.f32.mrb[26].mxu1 }
 0x90d   :  { %v4053_v31 = vpop.f32.mrb[27].mxu0  ;;  %v4059_v32 = vpop.f32.mrb[27].mxu1  ;;  %v2791_v33 = vsel %vm1051_vm4, %v2691_v25, -inf  ;;  %v2788_v36 = vsel %vm1051_vm4, %v2645_v3, -inf }
 0x90e   :  { %2792 = vmax.xlane.f32.xlu0 %v2791_v33  ;;  %2789 = vmax.xlane.f32.xlu1 %v2788_v36 }
 0x913   :  { %v2736_v37 = vpop.f32.mrb[28].mxu0  ;;  %v2782_v23 = vpop.f32.mrb[28].mxu1 }
 0x914   :  { %v2737_v24 = vadd.f32 %v3859_v19, %v2736_v37  ;;  %v2783_v7 = vadd.f32 %v3859_v19, %v2782_v23  ;;  %v4064_v38 = vpop.f32.mrb[29].mxu0  ;;  %v4070_v39 = vpop.f32.mrb[29].mxu1 }
 0x915   :  { %v2739_v40 = vpop.f32.mrb[30].mxu0  ;;  %v2785_v41 = vpop.f32.mrb[30].mxu1 }
 0x916   :  { %v4065_v43 = vpop.f32.mrb[31].mxu0  ;;  %v4071_v44 = vpop.f32.mrb[31].mxu1  ;;  %v2797_v45 = vsel %vm1051_vm4, %v2783_v7, -inf  ;;  %v2794_v52 = vsel %vm1051_vm4, %v2737_v24, -inf }
 0x917   :  { %2798 = vmax.xlane.f32.xlu1 %v2797_v45  ;;  %2795 = vmax.xlane.f32.xlu0 %v2794_v52 }
 0x928   :  { %1477 = vrot.lane.b32.xlu1 %v4703_v46, %s4401_s4 }
 0x92d   :  { %1479 = vrot.lane.b32.xlu0 %v4707_v50, %s4401_s4 }
 0x99b   :  { %v2793_v49 = vpop.xlane.xlu0 %2792  ;;  %v2790_v51 = vpop.xlane.xlu1 %2789 }
 0x99c   :  { %v2801_v55 = vsub.f32 %v2691_v25, %v2793_v49  ;;  %v2800_v56 = vsub.f32 %v2645_v3, %v2790_v51 }
 0x99e   :  { %v2806_v57 = vmul.f32 1.442695, %v2801_v55  ;;  %v2804_v58 = vmul.f32 1.442695, %v2800_v56 }
 0x9a0   :  { %4233 = vpow2.f32 %v2806_v57 }
 0x9a1   :  { %4235 = vpow2.f32 %v2804_v58 }
 0x9a4   :  { %v2796_v9 = vpop.xlane.xlu0 %2795  ;;  %v2799_v10 = vpop.xlane.xlu1 %2798 }
 0x9a5   :  { %v2802_v53 = vsub.f32 %v2737_v24, %v2796_v9  ;;  %v2803_v62 = vsub.f32 %v2783_v7, %v2799_v10 }
 0x9a7   :  { %v2808_v63 = vmul.f32 1.442695, %v2802_v53  ;;  %v2810_v11 = vmul.f32 1.442695, %v2803_v62 }
 0x9a8   :  { %v1480_v15 = vpop.permute.xlu0 %1479 }
 0x9a9   :  { %4237 = vpow2.f32 %v2808_v63  ;;  %v1669_v3 = vcombine.low %v1456_v1, %v1480_v15  ;;  %v1670_v25 = vcombine.high %v1456_v1, %v1480_v15 }
 0x9aa   :  { %v4834_v59 = vpop.eup %4233  ;;  %4239 = vpow2.f32 %v2810_v11 }
 0x9ab   :  { %v4836_v4 = vpop.eup %4235  ;;  %v2815_v5 = vsel %vm1051_vm4, %v4834_v59, 0.0  ;;  %v1677_v37 = vrot.slane %v1669_v3, %v4539_v21  ;;  %v1684_v23 = vrot.slane %v1670_v25, %v4539_v21 }
 0x9ac   :  { %2816 = vadd.xlane.f32.xlu1 %v2815_v5  ;;  %v2812_v6 = vsel %vm1051_vm4, %v4836_v4, 0.0 }
 0x9ad   :  { %2813 = vadd.xlane.f32.xlu0 %v2812_v6 }
 0x9b3   :  { %v4846_v12 = vpop.eup %4237 }
 0x9b4   :  { %v4848_v13 = vpop.eup %4239  ;;  %v2818_v14 = vsel %vm1051_vm4, %v4846_v12, 0.0 }
 0x9bd   :  { %1489 = vrot.lane.b32.xlu1 %v4703_v46, %s4403_s19  ;;  %v2821_v46 = vsel %vm1051_vm4, %v4848_v13, 0.0 }
 0x9c3   :  { %1491 = vrot.lane.b32.xlu0 %v4707_v50, %s4403_s19  ;;  %v1478_v50 = vpop.permute.xlu1 %1477 }
 0x9c4   :  { %v1533_v20 = vcombine.low %v1454_v54, %v1478_v50  ;;  %v1534_v22 = vcombine.high %v1454_v54, %v1478_v50 }
 0x9c6   :  { %v1541_v32 = vrot.slane %v1533_v20, %v4539_v21  ;;  %v1548_v33 = vrot.slane %v1534_v22, %v4539_v21 }
 0x9e1   :  { %2819 = vadd.xlane.f32.xlu1 %v2818_v14 }
 0x9e2   :  { %2822 = vadd.xlane.f32.xlu0 %v2821_v46 }
 0x9f2   :  { %1423 = vrot.lane.b32.xlu1 %v4705_v48, %s4406_s22 }
 0x9f6   :  { %1433 = vrot.lane.b32.xlu1 %v4701_v34, %s4405_s21 }
 0x9f8   :  { %1421 = vrot.lane.b32.xlu0 %v4701_v34, %s4406_s22 }
 0x9fa   :  { %1445 = vrot.lane.b32.xlu1 %v4701_v34, %s4407_s23 }
 0x9fc   :  { %1435 = vrot.lane.b32.xlu0 %v4705_v48, %s4405_s21 }
 0x9fe   :  { %3032 = vrot.lane.b32.xlu1 %v4674_v8, %s4414_s0 }
 0xa00   :  { %1447 = vrot.lane.b32.xlu0 %v4705_v48, %s4407_s23 }
 0xa04   :  { %3034 = vrot.lane.b32.xlu0 %v4678_v2, %s4414_s0 }
 0xa39   :  { %v2817_v16 = vpop.xlane.xlu1 %2816 }
 0xa3a   :  { %v2814_v19 = vpop.xlane.xlu0 %2813  ;;  %4241 = vrcp.f32 %v2817_v16 }
 0xa3b   :  { %4243 = vrcp.f32 %v2814_v19 }
 0xa3d   :  { %v1490_v26 = vpop.permute.xlu1 %1489 }
 0xa3e   :  { %v1549_v27 = vcombine.low %v1466_v35, %v1490_v26  ;;  %v1550_v29 = vcombine.high %v1466_v35, %v1490_v26  ;;  %v1492_v30 = vpop.permute.xlu0 %1491 }
 0xa3f   :  { %v1685_v31 = vcombine.low %v1468_v47, %v1492_v30  ;;  %v1686_v8 = vcombine.high %v1468_v47, %v1492_v30 }
 0xa40   :  { %v1557_v2 = vrot.slane %v1549_v27, %v4539_v21  ;;  %v1564_v36 = vrot.slane %v1550_v29, %v4539_v21 }
 0xa41   :  { %v1693_v24 = vrot.slane %v1685_v31, %v4539_v21  ;;  %v1700_v7 = vrot.slane %v1686_v8, %v4539_v21 }
 0xa42   :  { %v1597_v38 = vcombine.low %v1541_v32, %v1557_v2  ;;  %v1598_v39 = vcombine.high %v1541_v32, %v1557_v2  ;;  %v1613_v40 = vcombine.low %v1548_v33, %v1564_v36  ;;  %v1614_v41 = vcombine.high %v1548_v33, %v1564_v36 }
 0xa43   :  { %v1733_v43 = vcombine.low %v1677_v37, %v1693_v24  ;;  %v1734_v44 = vcombine.high %v1677_v37, %v1693_v24  ;;  %v1749_v45 = vcombine.low %v1684_v23, %v1700_v7  ;;  %v1750_v52 = vcombine.high %v1684_v23, %v1700_v7 }
 0xa44   :  { %v1605_v1 = vrot.slane %v1597_v38, %v4541_v28  ;;  %v1612_v54 = vrot.slane %v1598_v39, %v4541_v28  ;;  %v1621_v35 = vrot.slane %v1613_v40, %v4541_v28  ;;  %v1628_v47 = vrot.slane %v1614_v41, %v4541_v28  ;;  %v4242_v33 = vpop.eup %4241 }
 0xa45   :  { %v1741_v49 = vrot.slane %v1733_v43, %v4541_v28  ;;  %v1748_v51 = vrot.slane %v1734_v44, %v4541_v28  ;;  %v1757_v55 = vrot.slane %v1749_v45, %v4541_v28  ;;  %v1764_v6 = vrot.slane %v1750_v52, %v4541_v28  ;;  %v4244_v23 = vpop.eup %4243 }
 0xa46   :  { %v3828_v56 = vcombine.low %v1605_v1, %v1612_v54  ;;  %v3830_v57 = vcombine.high %v1605_v1, %v1612_v54  ;;  %v3832_v58 = vcombine.low %v1621_v35, %v1628_v47  ;;  %v3834_v5 = vcombine.high %v1621_v35, %v1628_v47 }
 0xa47   :  { %v3836_v9 = vcombine.low %v1741_v49, %v1748_v51  ;;  %v3838_v10 = vcombine.high %v1741_v49, %v1748_v51  ;;  %v3840_v50 = vcombine.low %v1757_v55, %v1764_v6  ;;  %v3842_v15 = vcombine.high %v1757_v55, %v1764_v6 }
 0xa48   :  { %v2060_v53 = vrot.slane %v3828_v56, %v4539_v21  ;;  %v2076_v62 = vrot.slane %v3830_v57, %v4539_v21  ;;  %v2092_v63 = vrot.slane %v3832_v58, %v4539_v21  ;;  %v2108_v11 = vrot.slane %v3834_v5, %v4539_v21 }
 0xa49   :  { %v2196_v14 = vrot.slane %v3836_v9, %v4539_v21  ;;  %v2212_v46 = vrot.slane %v3838_v10, %v4539_v21  ;;  %v2228_v20 = vrot.slane %v3840_v50, %v4539_v21  ;;  %v2244_v26 = vrot.slane %v3842_v15, %v4539_v21 }
 0xa4a   :  { %v2125_v16 = vcombine.low %v2060_v53, %v2076_v62  ;;  %v2126_v19 = vcombine.high %v2060_v53, %v2076_v62  ;;  %v2157_v22 = vcombine.low %v2092_v63, %v2108_v11  ;;  %v2158_v25 = vcombine.high %v2092_v63, %v2108_v11 }
 0xa4b   :  { %v2261_v3 = vcombine.low %v2196_v14, %v2212_v46  ;;  %v2262_v29 = vcombine.high %v2196_v14, %v2212_v46  ;;  %v2293_v8 = vcombine.low %v2228_v20, %v2244_v26  ;;  %v2294_v32 = vcombine.high %v2228_v20, %v2244_v26 }
 0xa4c   :  { %v2133_v27 = vrot.slane %v2125_v16, %v4541_v28  ;;  %v2165_v30 = vrot.slane %v2157_v22, %v4541_v28  ;;  %v2140_v2 = vrot.slane %v2126_v19, %v4541_v28  ;;  %v2172_v36 = vrot.slane %v2158_v25, %v4541_v28 }
 0xa4d   :  { %v2269_v31 = vrot.slane %v2261_v3, %v4541_v28  ;;  %v2276_v37 = vrot.slane %v2262_v29, %v4541_v28  ;;  %v2301_v7 = vrot.slane %v2293_v8, %v4541_v28  ;;  %v2308_v39 = vrot.slane %v2294_v32, %v4541_v28 }
 0xa4e   :  { %v2177_v24 = vcombine.low %v2133_v27, %v2165_v30  ;;  %v2178_v38 = vcombine.high %v2133_v27, %v2165_v30  ;;  %v2829_v43 = vmul.f32 %v4242_v33, %v4834_v59  ;;  %v2828_v44 = vmul.f32 %v4244_v23, %v4836_v4 }
 0xa4f   :  { %v2313_v40 = vcombine.low %v2269_v31, %v2301_v7  ;;  %v2314_v41 = vcombine.high %v2269_v31, %v2301_v7  ;;  %v2179_v45 = vcombine.low %v2140_v2, %v2172_v36  ;;  %v2180_v52 = vcombine.high %v2140_v2, %v2172_v36 }
 0xa50   :  { %v2315_v35 = vcombine.low %v2276_v37, %v2308_v39  ;;  %v2316_v47 = vcombine.high %v2276_v37, %v2308_v39  ;;  %v2832_v49 = vpack.c.bf16 %v2828_v44, %v2828_v44  ;;  %v2833_v51 = vpack.c.bf16 %v2829_v43, %v2829_v43 }
 0xa51   :  { %v2836_v1 = vpack.c.bf16 %v2313_v40, %v2177_v24  ;;  %v2837_v54 = vpack.c.bf16 %v2314_v41, %v2178_v38 }
 0xa52   :  { %v2838_v55 = vpack.c.bf16 %v2315_v35, %v2179_v45  ;;  %v2839_v56 = vpack.c.bf16 %v2316_v47, %v2180_v52 }
 0xa53   :  { %4073 = vmatpush3.bf16.msra.mxu0 %v2836_v1  ;;  %4079 = vmatpush3.bf16.msra.mxu1 %v2837_v54 }
 0xa54   :  { %4084 = vmatprep.subr.bf16.mxu0 %v4399_v0  ;;  %4090 = vmatprep.subr.bf16.mxu1 %v4399_v0 }
 0xa56   :  { %4075 = vmatmul.mubr.msk.bf16.vlgmr.msra.gmra.mrb[32].mxu0 %vm1051_vm4, %v2832_v49  ;;  %4081 = vmatmul.mubr.msk.bf16.vlgmr.msra.gmra.mrb[32].mxu1 %vm1051_vm4, %v2833_v51 }
 0xa57   :  { %4085 = vmatpush3.bf16.msra.mxu0 %v2838_v55  ;;  %4091 = vmatpush3.bf16.msra.mxu1 %v2839_v56 }
 0xa58   :  { %4086 = vmatprep.mubr.msk.bf16.mxu0 %vm4400_vm0, %v4399_v0  ;;  %4092 = vmatprep.mubr.msk.bf16.mxu1 %vm4400_vm0, %v4399_v0 }
 0xa59   :  { %4104 = vmatprep.subr.bf16.mxu1 %v4399_v0  ;;  %4096 = vmatprep.subr.bf16.mxu0 %v4399_v0 }
 0xa6e   :  { %v2820_v59 = vpop.xlane.xlu1 %2819 }
 0xa6f   :  { %4245 = vrcp.f32 %v2820_v59  ;;  %v2823_v4 = vpop.xlane.xlu0 %2822 }
 0xa70   :  { %4247 = vrcp.f32 %v2823_v4 }
 0xa72   :  { %v1424_v57 = vpop.permute.xlu1 %1423 }
 0xa73   :  { %v1422_v58 = vpop.permute.xlu0 %1421 }
 0xa76   :  { %v1434_v5 = vpop.permute.xlu1 %1433 }
 0xa77   :  { %v1436_v6 = vpop.permute.xlu0 %1435  ;;  %v1773_v9 = vcombine.low %v4701_v34, %v1434_v5  ;;  %v1774_v53 = vcombine.high %v4701_v34, %v1434_v5 }
 0xa78   :  { %v1909_v11 = vcombine.low %v4705_v48, %v1436_v6  ;;  %v1910_v14 = vcombine.high %v4705_v48, %v1436_v6 }
 0xa79   :  { %v4246_v10 = vpop.eup %4245  ;;  %v1781_v20 = vrot.slane %v1773_v9, %v4539_v21  ;;  %v1788_v26 = vrot.slane %v1774_v53, %v4539_v21 }
 0xa7a   :  { %v4248_v62 = vpop.eup %4247  ;;  %v2830_v63 = vmul.f32 %v4246_v10, %v4846_v12  ;;  %v1446_v46 = vpop.permute.xlu1 %1445  ;;  %v1917_v30 = vrot.slane %v1909_v11, %v4539_v21  ;;  %v1924_v31 = vrot.slane %v1910_v14, %v4539_v21 }
 0xa7b   :  { %v2831_v50 = vmul.f32 %v4248_v62, %v4848_v13  ;;  %v1789_v15 = vcombine.low %v1422_v58, %v1446_v46  ;;  %v1790_v16 = vcombine.high %v1422_v58, %v1446_v46  ;;  %v1448_v19 = vpop.permute.xlu0 %1447 }
 0xa7c   :  { %v1925_v22 = vcombine.low %v1424_v57, %v1448_v19  ;;  %v1926_v3 = vcombine.high %v1424_v57, %v1448_v19  ;;  %v2834_v25 = vpack.c.bf16 %v2830_v63, %v2830_v63 }
 0xa7d   :  { %v1797_v27 = vrot.slane %v1789_v15, %v4539_v21  ;;  %v1804_v12 = vrot.slane %v1790_v16, %v4539_v21  ;;  %v2835_v29 = vpack.c.bf16 %v2831_v50, %v2831_v50 }
 0xa7e   :  { %v1933_v13 = vrot.slane %v1925_v22, %v4539_v21  ;;  %v1940_v8 = vrot.slane %v1926_v3, %v4539_v21  ;;  %4087 = vmatmul.mubr.msk.bf16.vlgmr.msra.gmra.mrb[36].mxu0 %vm1051_vm4, %v2834_v25 }
 0xa7f   :  { %v1837_v32 = vcombine.low %v1781_v20, %v1797_v27  ;;  %v1838_v33 = vcombine.high %v1781_v20, %v1797_v27  ;;  %v1853_v2 = vcombine.low %v1788_v26, %v1804_v12  ;;  %v1854_v36 = vcombine.high %v1788_v26, %v1804_v12  ;;  %4093 = vmatmul.mubr.msk.bf16.vlgmr.msra.gmra.mrb[36].mxu1 %vm1051_vm4, %v2835_v29 }
 0xa80   :  { %v1973_v37 = vcombine.low %v1917_v30, %v1933_v13  ;;  %v1974_v23 = vcombine.high %v1917_v30, %v1933_v13  ;;  %v1989_v24 = vcombine.low %v1924_v31, %v1940_v8  ;;  %v1990_v7 = vcombine.high %v1924_v31, %v1940_v8  ;;  %4106 = vmatprep.mubr.msk.bf16.mxu1 %vm4400_vm0, %v4399_v0 }
 0xa81   :  { %v1845_v38 = vrot.slane %v1837_v32, %v4541_v28  ;;  %v1852_v39 = vrot.slane %v1838_v33, %v4541_v28  ;;  %v1861_v40 = vrot.slane %v1853_v2, %v4541_v28  ;;  %v1868_v41 = vrot.slane %v1854_v36, %v4541_v28  ;;  %4100 = vmatprep.mubr.msk.bf16.mxu0 %vm4400_vm0, %v4399_v0 }
 0xa82   :  { %v1981_v43 = vrot.slane %v1973_v37, %v4541_v28  ;;  %v1988_v44 = vrot.slane %v1974_v23, %v4541_v28  ;;  %v1997_v45 = vrot.slane %v1989_v24, %v4541_v28  ;;  %v2004_v52 = vrot.slane %v1990_v7, %v4541_v28 }
 0xa83   :  { %v3843_v1 = vcombine.low %v1845_v38, %v1852_v39  ;;  %v3845_v54 = vcombine.high %v1845_v38, %v1852_v39  ;;  %v3847_v35 = vcombine.low %v1861_v40, %v1868_v41  ;;  %v3849_v47 = vcombine.high %v1861_v40, %v1868_v41  ;;  %v4974_v38 = vpop.permute.xlu1 %3032 }
 0xa84   :  { %v3851_v49 = vcombine.low %v1981_v43, %v1988_v44  ;;  %v3853_v51 = vcombine.high %v1981_v43, %v1988_v44  ;;  %v3855_v55 = vcombine.low %v1997_v45, %v2004_v52  ;;  %v3857_v56 = vcombine.high %v1997_v45, %v2004_v52  ;;  %4097 = vmatpush3.bf16.msra.mxu0 %v4974_v38 }
 0xa85   :  { %v2325_v59 = vrot.slane %v3843_v1, %v4539_v21  ;;  %v2341_v4 = vrot.slane %v3845_v54, %v4539_v21  ;;  %v2357_v57 = vrot.slane %v3847_v35, %v4539_v21  ;;  %v2373_v58 = vrot.slane %v3849_v47, %v4539_v21  ;;  %4098 = vmatprep.subr.bf16.mxu0 %v4399_v0 }
 0xa86   :  { %v2461_v5 = vrot.slane %v3851_v49, %v4539_v21  ;;  %v2477_v6 = vrot.slane %v3853_v51, %v4539_v21  ;;  %v2493_v9 = vrot.slane %v3855_v55, %v4539_v21  ;;  %v2509_v10 = vrot.slane %v3857_v56, %v4539_v21 }
 0xa87   :  { %v2381_v53 = vcombine.low %v2325_v59, %v2341_v4  ;;  %v2413_v62 = vcombine.low %v2357_v57, %v2373_v58  ;;  %v2382_v63 = vcombine.high %v2325_v59, %v2341_v4  ;;  %v2414_v11 = vcombine.high %v2357_v57, %v2373_v58  ;;  %v3871_v59 = vld [vmem:[%s5160_s2 + $0x1] ss:$0 sm:$0xff]  ;;  %s4417_s2 = smov [#allocation10]  }
 0xa88   :  { %v2517_v14 = vcombine.low %v2461_v5, %v2477_v6  ;;  %v2549_v46 = vcombine.low %v2493_v9, %v2509_v10  ;;  %v2518_v50 = vcombine.high %v2461_v5, %v2477_v6  ;;  %v2550_v15 = vcombine.high %v2493_v9, %v2509_v10  ;;  %s3778_s12 = sshll.u32 %s4417_s2, 4  ;;  %s3779_s12 = int_to_ptr.vmem [resolvable:$true] %s3778_s12 }
 0xa89   :  { %v2389_v16 = vrot.slane %v2381_v53, %v4541_v28  ;;  %v2421_v19 = vrot.slane %v2413_v62, %v4541_v28  ;;  %v2396_v20 = vrot.slane %v2382_v63, %v4541_v28  ;;  %v2428_v22 = vrot.slane %v2414_v11, %v4541_v28  ;;  %s4361_s13 = scalar_lea.vmem %s3779_s12, 256  ;;  %p4366_p5 = scmp.lt.s32.totalorder %s3779_s12, %s3779_s12 }
 0xa8a   :  { %v2525_v3 = vrot.slane %v2517_v14, %v4541_v28  ;;  %v2557_v25 = vrot.slane %v2549_v46, %v4541_v28  ;;  %v2532_v26 = vrot.slane %v2518_v50, %v4541_v28  ;;  %v2564_v27 = vrot.slane %v2550_v15, %v4541_v28  ;;  %p4362_p4 = scmp.ne.s32.totalorder %s3779_s12, %s4361_s13  ;;  %p4367_p6 = scmp.lt.s32.totalorder %s4361_s13, %s4361_s13 }
 0xa8b   :  { %v2445_v12 = vcombine.low %v2389_v16, %v2421_v19  ;;  %v2446_v29 = vcombine.high %v2389_v16, %v2421_v19  ;;  %v2448_v30 = vcombine.high %v2396_v20, %v2428_v22  ;;  %v2447_v37 = vcombine.low %v2396_v20, %v2428_v22 }
 0xa8c   :  { %v2581_v31 = vcombine.low %v2525_v3, %v2557_v25  ;;  %v2582_v13 = vcombine.high %v2525_v3, %v2557_v25  ;;  %v2584_v8 = vcombine.high %v2532_v26, %v2564_v27  ;;  %v2583_v23 = vcombine.low %v2532_v26, %v2564_v27  ;;  %p4368_p7 = por %p4367_p6, %p4366_p5 }
 0xa8e   :  { %v3084_v32 = vpack.c.bf16 %v2581_v31, %v2445_v12  ;;  %v4958_v33 = vpack.c.bf16 %v2582_v13, %v2446_v29  ;;  %v4960_v2 = vpack.c.bf16 %v2584_v8, %v2448_v30  ;;  %v3086_v24 = vpack.c.bf16 %v2583_v23, %v2447_v37  ;;  %p4369_p8 = pnand %p4368_p7, %p4362_p4 }
 0xa90   :  { %v3095_v36 = vsel %vm616_vm2, %v3084_v32, 0  ;;  %v3181_v7 = vsel %vm616_vm2, %v3086_v24, 0  ;;  %v3138_v3 = vsel %vm616_vm2, %v4958_v33, 0  ;;  %v3224_v25 = vsel %vm616_vm2, %v4960_v2, 0 }
 0xa91   :  { %4105 = vmatpush3.bf16.xpose.msra.mxu1 %v3095_v36 }
 0xa92   :  { %4116 = vmatprep.subr.bf16.mxu1 %v4399_v0 }
 0xa98   :  { %4107 = vmatmul.mubr.msk.bf16.vlgmr.msra.gmra.mrb[40].mxu1 %vm616_vm2, %v4793_v60  ;;  %v4978_v60 = vpop.permute.xlu0 %3034 }
 0xa99   :  { %4117 = vmatpush3.bf16.xpose.msra.mxu1 %v3181_v7  ;;  %4118 = vmatprep.mubr.msk.bf16.mxu1 %vm4400_vm0, %v4399_v0 }
 0xa9a   :  { %4128 = vmatprep.subr.bf16.mxu1 %v4399_v0  ;;  %4099 = vmatpush3.bf16.msra.mxu0 %v4978_v60 }
 0xa9b   :  { %4110 = vmatprep.subr.bf16.mxu0 %v4399_v0 }
 0xaa0   :  { %4119 = vmatmul.mubr.msk.bf16.vlgmr.msra.gmra.mrb[44].mxu1 %vm616_vm2, %v4811_v17 }
 0xaa1   :  { %4130 = vmatprep.mubr.msk.bf16.mxu1 %vm4400_vm0, %v4399_v0 }
 0xb29   :  { %v2877_v39 = vpop.f32.mrb[32].mxu0  ;;  %v2920_v40 = vpop.f32.mrb[32].mxu1 }
 0xb2a   :  { %3013 = vrot.lane.b32.xlu1 %v2920_v40, %s4393_s29  ;;  %v4076_v17 = vpop.f32.mrb[33].mxu0  ;;  %v4082_v41 = vpop.f32.mrb[33].mxu1 }
 0xb2b   :  { %v2880_v43 = vpop.f32.mrb[34].mxu0  ;;  %v2923_v44 = vpop.f32.mrb[34].mxu1 }
 0xb2c   :  { %v4077_v45 = vpop.f32.mrb[35].mxu0  ;;  %v4083_v52 = vpop.f32.mrb[35].mxu1 }
 0xb51   :  { %v2963_v1 = vpop.f32.mrb[36].mxu0 }
 0xb52   :  { %v3006_v54 = vpop.f32.mrb[36].mxu1  ;;  %3017 = vrot.lane.b32.xlu0 %v2963_v1, %s4416_s6  ;;  %v4088_v35 = vpop.f32.mrb[37].mxu0 }
 0xb53   :  { %3021 = vrot.lane.b32.xlu1 %v3006_v54, %s4415_s30  ;;  %v4094_v47 = vpop.f32.mrb[37].mxu1  ;;  %v2966_v49 = vpop.f32.mrb[38].mxu0 }
 0xb54   :  { %v3009_v51 = vpop.f32.mrb[38].mxu1  ;;  %v4089_v55 = vpop.f32.mrb[39].mxu0 }
 0xb55   :  { %v4095_v56 = vpop.f32.mrb[39].mxu1 }
 0xb6b   :  { %v3131_v4 = vpop.f32.mrb[40].mxu1 }
 0xb6c   :  { %v3132_v57 = vadd.f32 %v3871_v59, %v3131_v4  ;;  %v4108_v58 = vpop.f32.mrb[41].mxu1 }
 0xb6d   :  { %v3134_v5 = vpop.f32.mrb[42].mxu1 }
 0xb6e   :  { %v4109_v6 = vpop.f32.mrb[43].mxu1  ;;  %v3266_v9 = vsel %vm1051_vm4, %v3132_v57, -inf }
 0xb71   :  { %3267 = vmax.xlane.f32.xlu0 %v3266_v9 }
 0xb73   :  { %v3217_v10 = vpop.f32.mrb[44].mxu1 }
 0xb74   :  { %v4989_v53 = vadd.f32 %v3871_v59, %v3217_v10  ;;  %v4120_v62 = vpop.f32.mrb[45].mxu1 }
 0xb75   :  { %v3220_v63 = vpop.f32.mrb[46].mxu1 }
 0xb76   :  { %v4121_v11 = vpop.f32.mrb[47].mxu1  ;;  %v3272_v14 = vsel %vm1051_vm4, %v4989_v53, -inf }
 0xb77   :  { %3273 = vmax.xlane.f32.xlu0 %v3272_v14 }
 0xb8d   :  { %1459 = vrot.lane.b32.xlu0 %v4705_v48, %s4402_s18 }
 0xb9c   :  { %v3014_v46 = vpop.permute.xlu1 %3013 }
 0xb9d   :  { %v3024_v50 = vsel %vm616_vm2, %v2877_v39, %v3014_v46 }
 0xbc4   :  { %v3018_v15 = vpop.permute.xlu0 %3017 }
 0xbc5   :  { %v3022_v16 = vpop.permute.xlu1 %3021  ;;  %v3025_v19 = vsel %vm1051_vm4, %v3024_v50, %v3018_v15 }
 0xbc6   :  { %v3026_v20 = vsel %vm1053_vm5, %v3025_v19, %v3022_v16 }
 0xbc7   :  { %v3027_v22 = vpack.c.bf16 %v3026_v20, %v3026_v20 }
 0xbc9   :  { %4101 = vmatmul.mubr.msk.bf16.vlgmr.msra.gmra.mrb[40].mxu0 %vm122_vm1, %v3027_v22 }
 0xbca   :  { %4111 = vmatpush3.bf16.xpose.msra.mxu0 %v3138_v3  ;;  %4112 = vmatprep.mubr.msk.bf16.mxu0 %vm4400_vm0, %v4399_v0 }
 0xbcb   :  { %4122 = vmatprep.subr.bf16.mxu0 %v4399_v0 }
 0xbd1   :  { %4113 = vmatmul.mubr.msk.bf16.vlgmr.msra.gmra.mrb[44].mxu0 %vm616_vm2, %v4795_v61 }
 0xbd2   :  { %4123 = vmatpush3.bf16.xpose.msra.mxu0 %v3224_v25  ;;  %4124 = vmatprep.mubr.msk.bf16.mxu0 %vm4400_vm0, %v4399_v0 }
 0xbd3   :  { %4134 = vmatprep.subr.bf16.mxu0 %v4399_v0 }
 0xbd9   :  { %4125 = vmatmul.mubr.msk.bf16.vlgmr.msra.gmra.mrb[48].mxu0 %vm616_vm2, %v4813_v18 }
 0xbda   :  { %4136 = vmatprep.mubr.msk.bf16.mxu0 %vm4400_vm0, %v4399_v0 }
 0xbfe   :  { %v3268_v26 = vpop.xlane.xlu0 %3267 }
 0xbff   :  { %v3278_v27 = vsub.f32 %v3132_v57, %v3268_v26 }
 0xc01   :  { %v3282_v12 = vmul.f32 1.442695, %v3278_v27 }
 0xc03   :  { %4249 = vpow2.f32 %v3282_v12 }
 0xc04   :  { %v3274_v41 = vpop.xlane.xlu0 %3273 }
 0xc05   :  { %v3280_v55 = vsub.f32 %v4989_v53, %v3274_v41 }
 0xc07   :  { %v3286_v56 = vmul.f32 1.442695, %v3280_v55 }
 0xc08   :  { %v1460_v52 = vpop.permute.xlu0 %1459 }
 0xc0d   :  { %v5018_v18 = vpop.eup %4249 }
 0xc0e   :  { %v3290_v37 = vsel %vm1051_vm4, %v5018_v18, 0.0 }
 0xc9c   :  { %v5015_v29 = vpop.f32.mrb[40].mxu0 }
 0xc9d   :  { %v4102_v61 = vpop.f32.mrb[41].mxu0 }
 0xc9e   :  { %v3078_v30 = vpop.f32.mrb[42].mxu0 }
 0xc9f   :  { %v4103_v31 = vpop.f32.mrb[43].mxu0 }
 0xca4   :  { %v3174_v13 = vpop.f32.mrb[44].mxu0 }
 0xca5   :  { %v3175_v8 = vadd.f32 %v3871_v59, %v3174_v13  ;;  %v4114_v32 = vpop.f32.mrb[45].mxu0 }
 0xca6   :  { %v3177_v33 = vpop.f32.mrb[46].mxu0 }
 0xca7   :  { %v4115_v2 = vpop.f32.mrb[47].mxu0  ;;  %v3269_v36 = vsel %vm1051_vm4, %v3175_v8, -inf }
 0xca8   :  { %3270 = vmax.xlane.f32.xlu1 %v3269_v36 }
 0xcac   :  { %3291 = vadd.xlane.f32.xlu1 %v3290_v37  ;;  %v3260_v23 = vpop.f32.mrb[48].mxu0 }
 0xcad   :  { %v3261_v24 = vadd.f32 %v3871_v59, %v3260_v23  ;;  %v4126_v7 = vpop.f32.mrb[49].mxu0 }
 0xcae   :  { %v3263_v39 = vpop.f32.mrb[50].mxu0 }
 0xcaf   :  { %v4127_v40 = vpop.f32.mrb[51].mxu0  ;;  %v3275_v17 = vsel %vm1051_vm4, %v3261_v24, -inf }
 0xcb0   :  { %3276 = vmax.xlane.f32.xlu0 %v3275_v17 }
 0xcbd   :  { %1457 = vrot.lane.b32.xlu1 %v4701_v34, %s4402_s18 }
 0xcc1   :  { %1469 = vrot.lane.b32.xlu1 %v4701_v34, %s4404_s20 }
 0xcc5   :  { %1471 = vrot.lane.b32.xlu1 %v4705_v48, %s4404_s20 }
 0xcc6   :  { %1481 = vrot.lane.b32.xlu0 %v4701_v34, %s4401_s4 }
 0xcc9   :  { %1483 = vrot.lane.b32.xlu1 %v4705_v48, %s4401_s4 }
 0xccd   :  { %1495 = vrot.lane.b32.xlu1 %v4705_v48, %s4403_s19 }
 0xd35   :  { %v3271_v43 = vpop.xlane.xlu1 %3270 }
 0xd36   :  { %v3279_v44 = vsub.f32 %v3175_v8, %v3271_v43 }
 0xd38   :  { %v3284_v45 = vmul.f32 1.442695, %v3279_v44 }
 0xd39   :  { %v3292_v57 = vpop.xlane.xlu1 %3291 }
 0xd3a   :  { %4251 = vpow2.f32 %v3284_v45 }
 0xd3d   :  { %v3277_v1 = vpop.xlane.xlu0 %3276  ;;  %v1458_v58 = vpop.permute.xlu1 %1457 }
 0xd3e   :  { %v3281_v54 = vsub.f32 %v3261_v24, %v3277_v1 }
 0xd40   :  { %v3288_v35 = vmul.f32 1.442695, %v3281_v54 }
 0xd41   :  { %v1470_v5 = vpop.permute.xlu1 %1469  ;;  %v1482_v19 = vpop.permute.xlu0 %1481 }
 0xd42   :  { %4253 = vpow2.f32 %v3288_v35  ;;  %v1805_v61 = vcombine.low %v1458_v58, %v1482_v19  ;;  %v1806_v30 = vcombine.high %v1458_v58, %v1482_v19 }
 0xd43   :  { %4255 = vpow2.f32 %v3286_v56 }
 0xd44   :  { %v5035_v47 = vpop.eup %4251  ;;  %4257 = vrcp.f32 %v3292_v57  ;;  %v1813_v37 = vrot.slane %v1805_v61, %v4539_v21  ;;  %v1820_v23 = vrot.slane %v1806_v30, %v4539_v21 }
 0xd45   :  { %v3293_v49 = vsel %vm1051_vm4, %v5035_v47, 0.0  ;;  %v1472_v6 = vpop.permute.xlu1 %1471 }
 0xd46   :  { %3294 = vadd.xlane.f32.xlu0 %v3293_v49 }
 0xd49   :  { %v1484_v9 = vpop.permute.xlu1 %1483 }
 0xd4a   :  { %v1941_v11 = vcombine.low %v1460_v52, %v1484_v9 }
 0xd4c   :  { %v5039_v51 = vpop.eup %4253  ;;  %v1949_v46 = vrot.slane %v1941_v11, %v4539_v21 }
 0xd4d   :  { %v3299_v48 = vsel %vm1051_vm4, %v5039_v51, 0.0  ;;  %v5046_v59 = vpop.eup %4255  ;;  %v1496_v10 = vpop.permute.xlu1 %1495 }
 0xd4e   :  { %3300 = vadd.xlane.f32.xlu1 %v3299_v48  ;;  %v3296_v4 = vsel %vm1051_vm4, %v5046_v59, 0.0  ;;  %v1957_v62 = vcombine.low %v1472_v6, %v1496_v10  ;;  %v1958_v63 = vcombine.high %v1472_v6, %v1496_v10  ;;  %v4258_v11 = vpop.eup %4257 }
 0xd50   :  { %v1965_v53 = vrot.slane %v1957_v62, %v4539_v21  ;;  %v1972_v14 = vrot.slane %v1958_v63, %v4539_v21 }
 0xd52   :  { %v2005_v15 = vcombine.low %v1949_v46, %v1965_v53  ;;  %v2006_v16 = vcombine.high %v1949_v46, %v1965_v53 }
 0xd54   :  { %v2013_v3 = vrot.slane %v2005_v15, %v4541_v28  ;;  %v2020_v25 = vrot.slane %v2006_v16, %v4541_v28 }
 0xd56   :  { %v3852_v31 = vcombine.low %v2013_v3, %v2020_v25  ;;  %v3854_v13 = vcombine.high %v2013_v3, %v2020_v25 }
 0xd58   :  { %v2468_v24 = vrot.slane %v3852_v31, %v4539_v21  ;;  %v2484_v40 = vrot.slane %v3854_v13, %v4539_v21  ;;  %v3306_v31 = vmul.f32 %v4258_v11, %v5018_v18 }
 0xd5a   :  { %v2533_v48 = vcombine.low %v2468_v24, %v2484_v40  ;;  %v2534_v6 = vcombine.high %v2468_v24, %v2484_v40  ;;  %v3310_v24 = vpack.c.bf16 %v3306_v31, %v3306_v31 }
 0xd5c   :  { %1493 = vrot.lane.b32.xlu0 %v4701_v34, %s4403_s19  ;;  %v1942_v34 = vcombine.high %v1460_v52, %v1484_v9  ;;  %v2548_v25 = vrot.slane %v2534_v6, %v4541_v28 }
 0xd5e   :  { %v1956_v50 = vrot.slane %v1942_v34, %v4539_v21  ;;  %v2541_v34 = vrot.slane %v2533_v48, %v4541_v28 }
 0xd60   :  { %v2021_v20 = vcombine.low %v1956_v50, %v1972_v14  ;;  %v2022_v22 = vcombine.high %v1956_v50, %v1972_v14 }
 0xd62   :  { %v2029_v26 = vrot.slane %v2021_v20, %v4541_v28  ;;  %v2036_v27 = vrot.slane %v2022_v22, %v4541_v28 }
 0xd64   :  { %v3856_v8 = vcombine.low %v2029_v26, %v2036_v27  ;;  %v3858_v32 = vcombine.high %v2029_v26, %v2036_v27 }
 0xd66   :  { %v2500_v17 = vrot.slane %v3856_v8, %v4539_v21  ;;  %v2516_v41 = vrot.slane %v3858_v32, %v4539_v21 }
 0xd68   :  { %v2565_v55 = vcombine.low %v2500_v17, %v2516_v41  ;;  %v2566_v14 = vcombine.high %v2500_v17, %v2516_v41 }
 0xd6a   :  { %v2573_v53 = vrot.slane %v2565_v55, %v4541_v28  ;;  %v2580_v26 = vrot.slane %v2566_v14, %v4541_v28 }
 0xd6c   :  { %v2586_v30 = vcombine.high %v2541_v34, %v2573_v53 }
 0xd7b   :  { %3297 = vadd.xlane.f32.xlu0 %v3296_v4 }
 0xdd3   :  { %v3295_v12 = vpop.xlane.xlu0 %3294 }
 0xdd4   :  { %4259 = vrcp.f32 %v3295_v12  ;;  %v2585_v12 = vcombine.low %v2541_v34, %v2573_v53 }
 0xdd7   :  { %v1494_v33 = vpop.permute.xlu0 %1493 }
 0xdd8   :  { %v1821_v2 = vcombine.low %v1470_v5, %v1494_v33  ;;  %v1822_v36 = vcombine.high %v1470_v5, %v1494_v33 }
 0xdda   :  { %v1829_v7 = vrot.slane %v1821_v2, %v4539_v21  ;;  %v1836_v39 = vrot.slane %v1822_v36, %v4539_v21  ;;  %v2587_v36 = vcombine.low %v2548_v25, %v2580_v26 }
 0xddb   :  { %v3301_v5 = vpop.xlane.xlu1 %3300 }
 0xddc   :  { %v1869_v43 = vcombine.low %v1813_v37, %v1829_v7  ;;  %v1870_v44 = vcombine.high %v1813_v37, %v1829_v7  ;;  %v1885_v45 = vcombine.low %v1820_v23, %v1836_v39  ;;  %v1886_v52 = vcombine.high %v1820_v23, %v1836_v39 }
 0xddd   :  { %4261 = vrcp.f32 %v3301_v5  ;;  %v2588_v37 = vcombine.high %v2548_v25, %v2580_v26  ;;  %v4211_v26 = vld [vmem:[#allocation7 + $0x8] ss:$12 sps:$4 sm:$0xff]  }
 0xdde   :  { %v1877_v1 = vrot.slane %v1869_v43, %v4541_v28  ;;  %v1884_v54 = vrot.slane %v1870_v44, %v4541_v28  ;;  %v1893_v35 = vrot.slane %v1885_v45, %v4541_v28  ;;  %v1900_v49 = vrot.slane %v1886_v52, %v4541_v28  ;;  %v4260_v19 = vpop.eup %4259 }
 0xddf   :  { %v3307_v13 = vmul.f32 %v4260_v19, %v5035_v47 }
 0xde0   :  { %v3844_v56 = vcombine.low %v1877_v1, %v1884_v54  ;;  %v3846_v4 = vcombine.high %v1877_v1, %v1884_v54  ;;  %v3848_v57 = vcombine.low %v1893_v35, %v1900_v49  ;;  %v3850_v58 = vcombine.high %v1893_v35, %v1900_v49 }
 0xde1   :  { %v3311_v7 = vpack.c.bf16 %v3307_v13, %v3307_v13 }
 0xde2   :  { %v2332_v9 = vrot.slane %v3844_v56, %v4539_v21  ;;  %v2348_v10 = vrot.slane %v3846_v4, %v4539_v21  ;;  %v2364_v62 = vrot.slane %v3848_v57, %v4539_v21  ;;  %v2380_v63 = vrot.slane %v3850_v58, %v4539_v21  ;;  %v3868_v58 = vld [vmem:[#allocation8 + $0x4] ss:$0 sm:$0xff] }
 0xde3   :  { %v3076_v5 = vadd.f32 %v3868_v58, %v5015_v29 }
 0xde4   :  { %v2397_v46 = vcombine.low %v2332_v9, %v2348_v10  ;;  %v2429_v50 = vcombine.low %v2364_v62, %v2380_v63  ;;  %v2398_v15 = vcombine.high %v2332_v9, %v2348_v10  ;;  %v2430_v16 = vcombine.high %v2364_v62, %v2380_v63 }
 0xde5   :  { %v5111_v6 = vadd.f32 %v3076_v5, %v4694_v42 }
 0xde6   :  { %v2405_v20 = vrot.slane %v2397_v46, %v4541_v28  ;;  %v2437_v22 = vrot.slane %v2429_v50, %v4541_v28  ;;  %v2412_v3 = vrot.slane %v2398_v15, %v4541_v28  ;;  %v2444_v21 = vrot.slane %v2430_v16, %v4541_v28 }
 0xde7   :  { %v4262_v23 = vpop.eup %4261  ;;  %v3550_v9 = vsel %vm122_vm1, %v5111_v6, 0.0 }
 0xde8   :  { %v2449_v27 = vcombine.low %v2405_v20, %v2437_v22  ;;  %v2450_v61 = vcombine.high %v2405_v20, %v2437_v22  ;;  %v2451_v33 = vcombine.low %v2412_v3, %v2444_v21  ;;  %v2452_v2 = vcombine.high %v2412_v3, %v2444_v21 }
 0xde9   :  { %v3309_v18 = vmul.f32 %v4262_v23, %v5039_v51  ;;  %v3558_v3 = vmul.f32 %v5111_v6, %v5111_v6 }
 0xdea   :  { %v3314_v8 = vpack.c.bf16 %v2585_v12, %v2449_v27  ;;  %v3315_v32 = vpack.c.bf16 %v2586_v30, %v2450_v61  ;;  %v3316_v28 = vpack.c.bf16 %v2587_v36, %v2451_v33  ;;  %v3317_v39 = vpack.c.bf16 %v2588_v37, %v2452_v2  ;;  %v4212_v27 = vld [vmem:[#allocation7 + $0x20] ss:$12 sps:$4 sm:$0xff]   ;;  %v4214_v12 = vld [vmem:[#allocation7 + $0x50] ss:$12 sps:$4 sm:$0xff]  }
 0xdeb   :  { %v3313_v47 = vpack.c.bf16 %v3309_v18, %v3309_v18  ;;  %v3560_v25 = vsel %vm122_vm1, %v3558_v3, 0.0 }
 0xdec   :  { %4129 = vmatpush3.bf16.msra.mxu1 %v3314_v8  ;;  %4135 = vmatpush3.bf16.msra.mxu0 %v3315_v32 }
 0xded   :  { %4140 = vmatprep.subr.bf16.mxu1 %v4399_v0  ;;  %4146 = vmatprep.subr.bf16.mxu0 %v4399_v0 }
 0xdef   :  { %4131 = vmatmul.mubr.msk.bf16.vlgmr.msra.gmra.mrb[48].mxu1 %vm1051_vm4, %v3310_v24  ;;  %4137 = vmatmul.mubr.msk.bf16.vlgmr.msra.gmra.mrb[52].mxu0 %vm1051_vm4, %v3311_v7 }
 0xdf0   :  { %4141 = vmatpush3.bf16.msra.mxu1 %v3316_v28  ;;  %4147 = vmatpush3.bf16.msra.mxu0 %v3317_v39 }
 0xdf1   :  { %4148 = vmatprep.mubr.msk.bf16.mxu0 %vm4400_vm0, %v4399_v0  ;;  %4142 = vmatprep.mubr.msk.bf16.mxu1 %vm4400_vm0, %v4399_v0 }
 0xdf2   :  { %4152 = vmatprep.subr.bf16.mxu1 %v4399_v0  ;;  %4160 = vmatprep.subr.bf16.mxu0 %v4399_v0 }
 0xdf7   :  { %4149 = vmatmul.mubr.msk.bf16.vlgmr.msra.gmra.mrb[56].mxu0 %vm1051_vm4, %v3313_v47 }
 0xdf8   :  { %4164 = vmatprep.mubr.msk.bf16.mxu0 %vm4400_vm0, %v4399_v0  ;;  %4161 = vmatpush3.bf16.msra.mxu0 %v4211_v26 }
 0xdf9   :  { %4162 = vmatprep.subr.bf16.mxu0 %v4399_v0 }
 0xdfc   :  { %4163 = vmatpush3.bf16.msra.mxu0 %v4212_v27 }
 0xe08   :  { %v3298_v40 = vpop.xlane.xlu0 %3297 }
 0xe09   :  { %4263 = vrcp.f32 %v3298_v40 }
 0xe13   :  { %v4264_v17 = vpop.eup %4263 }
 0xe14   :  { %v3308_v51 = vmul.f32 %v4264_v17, %v5046_v59  ;;  %v3881_v17 = vld [vmem:[#allocation8 + $0x9] ss:$0 sm:$0xff] }
 0xe16   :  { %v3312_v41 = vpack.c.bf16 %v3308_v51, %v3308_v51 }
 0xe18   :  { %4143 = vmatmul.mubr.msk.bf16.vlgmr.msra.gmra.mrb[52].mxu1 %vm1051_vm4, %v3312_v41 }
 0xe19   :  { %4153 = vmatpush3.bf16.msra.mxu1 %v4974_v38  ;;  %4156 = vmatprep.mubr.msk.bf16.mxu1 %vm4400_vm0, %v4399_v0 }
 0xe1a   :  { %4154 = vmatprep.subr.bf16.mxu1 %v4399_v0 }
 0xe1d   :  { %4155 = vmatpush3.bf16.msra.mxu1 %v4978_v60 }
 0xe1e   :  { %4168 = vmatprep.subr.bf16.mxu1 %v4399_v0 }
 0xec2   :  { %v3355_v43 = vpop.f32.mrb[48].mxu1  ;;  %v3398_v44 = vpop.f32.mrb[52].mxu0 }
 0xec3   :  { %v4132_v45 = vpop.f32.mrb[49].mxu1  ;;  %3491 = vrot.lane.b32.xlu0 %v3398_v44, %s4393_s29  ;;  %v4138_v59 = vpop.f32.mrb[53].mxu0 }
 0xec4   :  { %v3358_v52 = vpop.f32.mrb[50].mxu1  ;;  %v3401_v1 = vpop.f32.mrb[54].mxu0  ;;  %v3882_v59 = vld [vmem:[#allocation8 + $0xa] ss:$0 sm:$0xff] }
 0xec5   :  { %v4133_v54 = vpop.f32.mrb[51].mxu1  ;;  %v4139_v35 = vpop.f32.mrb[55].mxu0 }
 0xeca   :  { %v3484_v38 = vpop.f32.mrb[56].mxu0 }
 0xecb   :  { %3499 = vrot.lane.b32.xlu0 %v3484_v38, %s4415_s30  ;;  %v4150_v49 = vpop.f32.mrb[57].mxu0 }
 0xecc   :  { %v3487_v48 = vpop.f32.mrb[58].mxu0 }
 0xecd   :  { %v4151_v55 = vpop.f32.mrb[59].mxu0  ;;  %v3883_v48 = vld [vmem:[#allocation8 + $0x5] ss:$0 sm:$0xff] }
 0xeeb   :  { %v3441_v56 = vpop.f32.mrb[52].mxu1 }
 0xeec   :  { %3495 = vrot.lane.b32.xlu1 %v3441_v56, %s4416_s6  ;;  %v4144_v60 = vpop.f32.mrb[53].mxu1 }
 0xeed   :  { %v3444_v4 = vpop.f32.mrb[54].mxu1 }
 0xeee   :  { %v4145_v57 = vpop.f32.mrb[55].mxu1 }
 0xf10   :  { %3551 = vadd.xlane.f32.xlu1 %v3550_v9 }
 0xf35   :  { %v3492_v10 = vpop.permute.xlu0 %3491 }
 0xf36   :  { %v3502_v62 = vsel %vm616_vm2, %v3355_v43, %v3492_v10  ;;  %v3887_v10 = vld [vmem:[#allocation8 + $0x6] ss:$0 sm:$0xff] }
 0xf3d   :  { %v3500_v11 = vpop.permute.xlu0 %3499 }
 0xf5e   :  { %v3496_v63 = vpop.permute.xlu1 %3495 }
 0xf5f   :  { %v3503_v34 = vsel %vm1051_vm4, %v3502_v62, %v3496_v63 }
 0xf60   :  { %v3504_v53 = vsel %vm1053_vm5, %v3503_v34, %v3500_v11 }
 0xf61   :  { %v3505_v14 = vpack.c.bf16 %v3504_v53, %v3504_v53 }
 0xf63   :  { %4157 = vmatmul.mubr.msk.bf16.vlgmr.msra.gmra.mrb[56].mxu1 %vm122_vm1, %v3505_v14 }
 0xf64   :  { %4176 = vmatprep.mubr.msk.bf16.mxu1 %vm4400_vm0, %v4399_v0 }
 0xf9d   :  { %v3552_v61 = vpop.xlane.xlu1 %3551 }
 0xf9e   :  { %v3556_v31 = vmul.f32 0.03125, %v3552_v61 }
 0xfa0   :  { %v3568_v36 = vmul.f32 %v3556_v31, %v3556_v31  ;;  %v3572_v51 = vsub.f32 %v5111_v6, %v3556_v31 }
0x1036   :  { %v3543_v29 = vpop.f32.mrb[56].mxu1 }
0x1037   :  { %v3544_v46 = vadd.f32 %v3868_v58, %v3543_v29  ;;  %v4158_v50 = vpop.f32.mrb[57].mxu1 }
0x1038   :  { %v3546_v15 = vpop.f32.mrb[58].mxu1 }
0x1039   :  { %v3549_v16 = vadd.f32 %v3544_v46, %v4694_v42  ;;  %v4159_v19 = vpop.f32.mrb[59].mxu1  ;;  %v4213_v42 = vld [vmem:[#allocation7 + $0x38] ss:$12 sps:$4 sm:$0xff]  }
0x103b   :  { %v3553_v20 = vsel %vm122_vm1, %v3549_v16, 0.0  ;;  %v3559_v22 = vmul.f32 %v3549_v16, %v3549_v16 }
0x103c   :  { %3554 = vadd.xlane.f32.xlu0 %v3553_v20 }
0x103d   :  { %v3563_v21 = vsel %vm122_vm1, %v3559_v22, 0.0 }
0x103e   :  { %3564 = vadd.xlane.f32.xlu1 %v3563_v21 }
0x1040   :  { %3561 = vadd.xlane.f32.xlu0 %v3560_v25 }
0x104f   :  { %3672 = vrot.lane.b32.xlu1 %v4212_v27, %s4411_s25 }
0x1053   :  { %3674 = vrot.lane.b32.xlu1 %v4213_v42, %s4411_s25 }
0x1056   :  { %3670 = vrot.lane.b32.xlu0 %v4211_v26, %s4411_s25 }
0x105a   :  { %3676 = vrot.lane.b32.xlu0 %v4214_v12, %s4411_s25 }
0x10c9   :  { %v3555_v30 = vpop.xlane.xlu0 %3554 }
0x10ca   :  { %v3557_v13 = vmul.f32 0.03125, %v3555_v30 }
0x10cb   :  { %v3565_v8 = vpop.xlane.xlu1 %3564 }
0x10cc   :  { %v3569_v32 = vmul.f32 %v3557_v13, %v3557_v13  ;;  %v3567_v33 = vmul.f32 0.03125, %v3565_v8  ;;  %v3573_v47 = vsub.f32 %v3549_v16, %v3557_v13 }
0x10cd   :  { %v3562_v2 = vpop.xlane.xlu0 %3561 }
0x10ce   :  { %v3571_v37 = vsub.f32 %v3567_v33, %v3569_v32  ;;  %v3566_v23 = vmul.f32 0.03125, %v3562_v2 }
0x10cf   :  { %v3673_v18 = vpop.permute.xlu1 %3672 }
0x10d0   :  { %v3575_v24 = vadd.f32 1e-05, %v3571_v37  ;;  %v3570_v7 = vsub.f32 %v3566_v23, %v3568_v36  ;;  %v3891_v36 = vld [vmem:[#allocation8 + $0xb] ss:$0 sm:$0xff] }
0x10d1   :  { %v3671_v39 = vpop.permute.xlu0 %3670 }
0x10d2   :  { %4265 = vrsqrt.f32 %v3575_v24  ;;  %v3574_v28 = vadd.f32 1e-05, %v3570_v7  ;;  %4169 = vmatpush3.bf16.msra.mxu1 %v3671_v39  ;;  %v3892_v7 = vld [vmem:[#allocation8 + $0xc] ss:$0 sm:$0xff] }
0x10d3   :  { %4170 = vmatprep.subr.bf16.mxu1 %v4399_v0  ;;  %v3675_v38 = vpop.permute.xlu1 %3674 }
0x10d4   :  { %4267 = vrsqrt.f32 %v3574_v28 }
0x10d5   :  { %v3677_v49 = vpop.permute.xlu0 %3676 }
0x10d6   :  { %4171 = vmatpush3.bf16.msra.mxu1 %v3673_v18 }
0x10d7   :  { %4172 = vmatprep.subr.bf16.mxu1 %v4399_v0 }
0x10da   :  { %4173 = vmatpush3.bf16.msra.mxu1 %v3675_v38 }
0x10db   :  { %4174 = vmatprep.subr.bf16.mxu1 %v4399_v0 }
0x10dc   :  { %v4266_v40 = vpop.eup %4265 }
0x10dd   :  { %v3579_v41 = vmul.f32 %v4266_v40, %v3573_v47 }
0x10de   :  { %v4268_v43 = vpop.eup %4267  ;;  %4175 = vmatpush3.bf16.msra.mxu1 %v3677_v49 }
0x10df   :  { %v3578_v44 = vmul.f32 %v4268_v43, %v3572_v51  ;;  %v3585_v45 = vmul.f32 %v3881_v17, %v3579_v41 }
0x10e1   :  { %v3584_v52 = vmul.f32 %v3881_v17, %v3578_v44  ;;  %v3591_v54 = vadd.f32 %v3882_v59, %v3585_v45 }
0x10e3   :  { %v3590_v1 = vadd.f32 %v3882_v59, %v3584_v52 }
0x10e5   :  { %v3592_v35 = vpack.c.bf16 %v3591_v54, %v3590_v1 }
0x10e7   :  { %4165 = vmatmul.mubr.msk.bf16.vlgmr.msra.gmra.mrb[60].mxu0 %vm122_vm1, %v3592_v35 }
0x11ba   :  { %v3646_v55 = vpop.f32.mrb[60].mxu0 }
0x11bb   :  { %v3647_v56 = vadd.f32 %v3883_v48, %v3646_v55  ;;  %v4166_v60 = vpop.f32.mrb[61].mxu0 }
0x11bc   :  { %v3649_v4 = vpop.f32.mrb[62].mxu0 }
0x11bd   :  { %v3650_v57 = vadd.f32 %v3883_v48, %v3649_v4  ;;  %v4167_v58 = vpop.f32.mrb[63].mxu0  ;;  %v3653_v5 = vmax.f32 %v3647_v56, 0.0 }
0x11bf   :  { %v3654_v6 = vmax.f32 %v3650_v57, 0.0 }
0x11c1   :  { %v3655_v9 = vpack.c.bf16 %v3654_v6, %v3653_v5 }
0x11c3   :  { %4177 = vmatmul.mubr.msk.bf16.vlgmr.msra.gmra.mrb[60].mxu1 %vm3682_vm6, %v3655_v9 }
0x1296   :  { %v3720_v62 = vpop.f32.mrb[60].mxu1 }
0x1297   :  { %v3721_v63 = vadd.f32 %v3887_v10, %v3720_v62  ;;  %v4178_v11 = vpop.f32.mrb[61].mxu1 }
0x1298   :  { %v3723_v34 = vpop.f32.mrb[62].mxu1 }
0x1299   :  { %v3727_v0 = vadd.f32 %v3721_v63, %v3590_v1  ;;  %v3724_v53 = vadd.f32 %v3887_v10, %v3723_v34  ;;  %v4179_v14 = vpop.f32.mrb[63].mxu1 }
0x129b   :  { %v3728_v29 = vadd.f32 %v3724_v53, %v3591_v54  ;;  %v3729_v46 = vsel %vm122_vm1, %v3727_v0, 0.0  ;;  %v3737_v16 = vmul.f32 %v3727_v0, %v3727_v0 }
0x129c   :  { %3730 = vadd.xlane.f32.xlu1 %v3729_v46 }
0x129d   :  { %v3732_v50 = vsel %vm122_vm1, %v3728_v29, 0.0  ;;  %v3738_v15 = vmul.f32 %v3728_v29, %v3728_v29  ;;  %v3739_v20 = vsel %vm122_vm1, %v3737_v16, 0.0 }
0x129e   :  { %3733 = vadd.xlane.f32.xlu0 %v3732_v50 }
0x129f   :  { %v3742_v19 = vsel %vm122_vm1, %v3738_v15, 0.0 }
0x12a0   :  { %3743 = vadd.xlane.f32.xlu1 %v3742_v19 }
0x12a2   :  { %3740 = vadd.xlane.f32.xlu0 %v3739_v20 }
0x1329   :  { %v3731_v22 = vpop.xlane.xlu1 %3730 }
0x132a   :  { %v3735_v21 = vmul.f32 0.03125, %v3731_v22 }
0x132b   :  { %v3734_v3 = vpop.xlane.xlu0 %3733 }
0x132c   :  { %v3736_v25 = vmul.f32 0.03125, %v3734_v3  ;;  %v3747_v61 = vmul.f32 %v3735_v21, %v3735_v21  ;;  %v3751_v37 = vsub.f32 %v3727_v0, %v3735_v21 }
0x132d   :  { %v3744_v26 = vpop.xlane.xlu1 %3743 }
0x132e   :  { %v3748_v27 = vmul.f32 %v3736_v25, %v3736_v25  ;;  %v3746_v42 = vmul.f32 0.03125, %v3744_v26  ;;  %v3752_v33 = vsub.f32 %v3728_v29, %v3736_v25 }
0x132f   :  { %v3741_v12 = vpop.xlane.xlu0 %3740 }
0x1330   :  { %v3750_v30 = vsub.f32 %v3746_v42, %v3748_v27  ;;  %v3745_v31 = vmul.f32 0.03125, %v3741_v12 }
0x1332   :  { %v3754_v13 = vadd.f32 1e-05, %v3750_v30  ;;  %v3749_v8 = vsub.f32 %v3745_v31, %v3747_v61 }
0x1334   :  { %4269 = vrsqrt.f32 %v3754_v13  ;;  %v3753_v32 = vadd.f32 1e-05, %v3749_v8 }
0x1336   :  { %4271 = vrsqrt.f32 %v3753_v32 }
0x133e   :  { %v4270_v2 = vpop.eup %4269 }
0x133f   :  { %v3758_v23 = vmul.f32 %v4270_v2, %v3752_v33 }
0x1340   :  { %v4272_v24 = vpop.eup %4271 }
0x1341   :  { %v3757_v28 = vmul.f32 %v4272_v24, %v3751_v37  ;;  %v3764_v39 = vmul.f32 %v3891_v36, %v3758_v23 }
0x1343   :  { %v3763_v18 = vmul.f32 %v3891_v36, %v3757_v28  ;;  %v3770_v47 = vadd.f32 %v3892_v7, %v3764_v39 }
0x1345   :  { %v3769_v40 = vadd.f32 %v3892_v7, %v3763_v18  ;;  %3772 = vst.msk [vmem:[#allocation10 + $0x8] sm:$0xff] %vm122_vm1, %v3770_v47 }
0x1347   :  { %3771 = vst.msk [vmem:[#allocation10] sm:$0xff] %vm122_vm1, %v3769_v40 }
0x1348   :  { %4372 = shalt.err (!%p4369_p8)
}
0x1349   :  { %s4373_s16 = scalar_lea.hbm %s5163_s5, 256 }
0x134a   :  { %p4374_p9 = scmp.ne.s32.totalorder %s5163_s5, %s4373_s16  ;;  %p4377_p10 = scmp.lt.u32.totalorder %s4373_s16, %s5163_s5 }
0x134c   :  { %p4379_p11 = pnand %p4377_p10, %p4374_p9 }
0x134e   :  { %4382 = shalt.err (!%p4379_p11)
}
0x134f   :  { %3784 = dma.vmem_to_hbm [thread:$0]  %s3779_s12, 256, %s5163_s5, [#allocation4], %s4392_s28, %s4392_s28, %s4393_s29  }
0x1350   :  { %4389 = dma.done.wait [#allocation4], 256  }
0x1351   :  { %4390 = vsyncadd [#allocation4], 4294967040 }
0x1352   :  { %3788 = vsyncpa [#allocation3], 1 }
0x1353   :  { %3789 = vsyncpa [#allocation6], 1 }
0x1354   :  { %3790 = vsyncpa [#allocation9], 1 }
0x1355   :  { %3791 = vsyncpa [#allocation4], 1 }

// kernel: tpu_custom_call.1
= control target key start
LH: loop header
LB: loop body
LE: loop exit
PB: predicated region body
PF: predicated region fallthrough
CT: control target
= control target key end

     0   :  { %10 = vsyncpa [#allocation3], 0  ;;  %s3264_s0 = inlined_call_operand.hbm [shape: f32[8,32], index: 0, kind: input, shape index: {}]   ;;  %s3265_s1 = inlined_call_operand.hbm [shape: f32[32,32], index: 1, kind: input, shape index: {}]   ;;  %s3266_s2 = inlined_call_operand.vmem [shape: f32[2,1,16], index: 2, kind: input, shape index: {}]   ;;  %s3267_s3 = inlined_call_operand.hbm [shape: bf16[64,352], index: 3, kind: input, shape index: {}]   ;;  %s3268_s4 = inlined_call_operand.hbm [shape: f32[16,128], index: 4, kind: input, shape index: {}]   ;;  %s3269_s5 = inlined_call_operand.hbm [shape: f32[16,32], index: 5, kind: output, shape index: {}]  }
   0x1   :  { %11 = vsyncpa [#allocation6], 0 }
   0x2   :  { %12 = vsyncpa [#allocation9], 0 }
   0x3   :  { %13 = vsyncpa [#allocation4], 0  ;;  %s2783_s18 = smov [#allocation5]   ;;  %s2665_s22 = scalar_lea.hbm %s3265_s1, 512 }
   0x4   :  { %s29_s19 = sshll.u32 %s2783_s18, 4  ;;  %p2666_p0 = scmp.ne.s32.totalorder %s3265_s1, %s2665_s22  ;;  %s30_s19 = int_to_ptr.vmem [resolvable:$true] %s29_s19 }
   0x5   :  { %p2669_p1 = scmp.lt.u32.totalorder %s2665_s22, %s3265_s1 }
   0x7   :  { %p2671_p2 = pnand %p2669_p1, %p2666_p0 }
   0x9   :  { %2674 = shalt.err (!%p2671_p2)
}
   0xa   :  { %s2675_s27 = scalar_lea.vmem %s30_s19, 512  ;;  %p2680_p4 = scmp.lt.s32.totalorder %s30_s19, %s30_s19 }
   0xb   :  { %p2676_p3 = scmp.ne.s32.totalorder %s30_s19, %s2675_s27  ;;  %p2681_p5 = scmp.lt.s32.totalorder %s2675_s27, %s2675_s27 }
   0xd   :  { %p2682_p6 = por %p2681_p5, %p2680_p4 }
   0xf   :  { %p2683_p7 = pnand %p2682_p6, %p2676_p3 }
  0x11   :  { %2686 = shalt.err (!%p2683_p7)
}
  0x12   :  { %s2784_s28 = smov 128   ;;  %s2785_s29 = smov 8  }
  0x13   :  { %35 = dma.hbm_to_vmem [thread:$0]  %s3265_s1, 512, %s30_s19, [#allocation6], %s2784_s28, %s2784_s28, %s2785_s29  }
  0x14   :  { %s2786_s7 = smov [#allocation2]   ;;  %s2787_s9 = smov [#allocation7]  }
  0x15   :  { %s20_s8 = sshll.u32 %s2786_s7, 4  ;;  %s43_s10 = sshll.u32 %s2787_s9, 4  ;;  %s21_s8 = int_to_ptr.vmem [resolvable:$true] %s20_s8  ;;  %s44_s10 = int_to_ptr.vmem [resolvable:$true] %s43_s10 }
  0x16   :  { %s2687_s13 = scalar_lea.hbm %s3264_s0, 128 }
  0x17   :  { %p2688_p8 = scmp.ne.s32.totalorder %s3264_s0, %s2687_s13  ;;  %p2691_p9 = scmp.lt.u32.totalorder %s2687_s13, %s3264_s0 }
  0x19   :  { %p2693_p10 = pnand %p2691_p9, %p2688_p8 }
  0x1b   :  { %2696 = shalt.err (!%p2693_p10)
}
  0x1c   :  { %s2697_s1 = scalar_lea.vmem %s21_s8, 128  ;;  %p2702_p12 = scmp.lt.s32.totalorder %s21_s8, %s21_s8 }
  0x1d   :  { %p2698_p11 = scmp.ne.s32.totalorder %s21_s8, %s2697_s1  ;;  %p2703_p13 = scmp.lt.s32.totalorder %s2697_s1, %s2697_s1 }
  0x1f   :  { %p2704_p0 = por %p2703_p13, %p2702_p12 }
  0x21   :  { %p2705_p1 = pnand %p2704_p0, %p2698_p11 }
  0x23   :  { %2708 = shalt.err (!%p2705_p1)
}
  0x24   :  { %23 = dma.hbm_to_vmem [thread:$0]  %s3264_s0, 128, %s21_s8, [#allocation3]  }
  0x25   :  { %s2709_s22 = scalar_lea.hbm %s3267_s3, 1536 }
  0x26   :  { %p2710_p2 = scmp.ne.s32.totalorder %s3267_s3, %s2709_s22  ;;  %p2713_p3 = scmp.lt.u32.totalorder %s2709_s22, %s3267_s3 }
  0x28   :  { %p2715_p4 = pnand %p2713_p3, %p2710_p2 }
  0x2a   :  { %2718 = shalt.err (!%p2715_p4)
}
  0x2b   :  { %s2719_s27 = scalar_lea.vmem %s44_s10, 1536  ;;  %p2724_p6 = scmp.lt.s32.totalorder %s44_s10, %s44_s10 }
  0x2c   :  { %p2720_p5 = scmp.ne.s32.totalorder %s44_s10, %s2719_s27  ;;  %p2725_p7 = scmp.lt.s32.totalorder %s2719_s27, %s2719_s27 }
  0x2e   :  { %p2726_p8 = por %p2725_p7, %p2724_p6 }
  0x30   :  { %p2727_p9 = pnand %p2726_p8, %p2720_p5 }
  0x32   :  { %2730 = shalt.err (!%p2727_p9)
}
  0x33   :  { %s2788_s0 = smov 192   ;;  %s2789_s30 = smov 12  }
  0x34   :  { %49 = dma.hbm_to_vmem [thread:$0]  %s3267_s3, 1536, %s44_s10, [#allocation6], %s2788_s0, %s2788_s0, %s2789_s30  }
  0x35   :  { %s2790_s8 = smov [#allocation8]   ;;  %s2731_s13 = scalar_lea.hbm %s3268_s4, 256 }
  0x36   :  { %s55_s9 = sshll.u32 %s2790_s8, 4  ;;  %p2732_p10 = scmp.ne.s32.totalorder %s3268_s4, %s2731_s13  ;;  %s56_s9 = int_to_ptr.vmem [resolvable:$true] %s55_s9 }
  0x37   :  { %p2735_p11 = scmp.lt.u32.totalorder %s2731_s13, %s3268_s4 }
  0x39   :  { %p2737_p12 = pnand %p2735_p11, %p2732_p10 }
  0x3b   :  { %2740 = shalt.err (!%p2737_p12)
}
  0x3c   :  { %s2741_s1 = scalar_lea.vmem %s56_s9, 256  ;;  %p2746_p0 = scmp.lt.s32.totalorder %s56_s9, %s56_s9 }
  0x3d   :  { %p2742_p13 = scmp.ne.s32.totalorder %s56_s9, %s2741_s1  ;;  %p2747_p1 = scmp.lt.s32.totalorder %s2741_s1, %s2741_s1 }
  0x3f   :  { %p2748_p2 = por %p2747_p1, %p2746_p0 }
  0x41   :  { %p2749_p3 = pnand %p2748_p2, %p2742_p13 }
  0x43   :  { %2752 = shalt.err (!%p2749_p3)
}
  0x44   :  { %61 = dma.hbm_to_vmem [thread:$0]  %s3268_s4, 256, %s56_s9, [#allocation9], %s2784_s28, %s2784_s28, %s2785_s29  }
  0x45   :  { %2775 = dma.done.wait [#allocation3], 128  }
  0x46   :  { %2776 = vsyncadd [#allocation3], 4294967168 }
  0x47   :  { %2777 = dma.done.wait [#allocation6], 2048  }
  0x48   :  { %2778 = vsyncadd [#allocation6], 4294965248 }
  0x49   :  { %2779 = dma.done.wait [#allocation9], 256  }
  0x4a   :  { %2780 = vsyncadd [#allocation9], 4294967040  ;;  %v2791_v0 = vmov 0.0   ;;  %vm2792_vm0 = vmmov 0   ;;  %v2898_v1 = vld [vmem:[#allocation7] ss:$12 sps:$4 sm:$0xff]  }
  0x4b   :  { %2292 = vmatprep.subr.bf16.mxu0 %v2791_v0  ;;  %2296 = vmatprep.mubr.msk.bf16.mxu0 %vm2792_vm0, %v2791_v0  ;;  %v2901_v2 = vld [vmem:[#allocation7 + $0x18] ss:$12 sps:$4 sm:$0xff]   ;;  %vm122_vm1 = vcmask 261120   ;;  %v2160_v5 = vld [vmem:[#allocation8] ss:$0 sm:$0xff]  ;;  %s2793_s4 = smov 80  }
  0x4c   :  { %2300 = vmatprep.subr.bf16.mxu1 %v2791_v0  ;;  %2302 = vmatprep.mubr.msk.bf16.mxu1 %vm2792_vm0, %v2791_v0  ;;  %v2903_v3 = vld [vmem:[#allocation2] sm:$0xff]  ;;  %s2794_s18 = smov 96   ;;  %s2795_s19 = smov 120   ;;  %vm208_vm2 = vcmask 64512   ;;  %vm448_vm3 = vcmask 1043456   ;;  %vm643_vm4 = vcmask 130048  }
  0x4d   :  { %2293 = vmatpush3.bf16.msra.mxu0 %v2898_v1  ;;  %v105_v4 = vpack.c.bf16 %v2903_v3, %v2903_v3  ;;  %s2796_s20 = smov 88   ;;  %s2797_s21 = smov 112   ;;  %vm645_vm5 = vcmask 195584   ;;  %vm2050_vm6 = vcmask 523264  }
  0x4e   :  { %2294 = vmatprep.subr.bf16.mxu0 %v2791_v0  ;;  %s2798_s22 = smov 72   ;;  %s2799_s23 = smov 104  }
  0x4f   :  { %s2800_s24 = smov 56   ;;  %s2801_s25 = smov 64  }
  0x50   :  { %s2802_s26 = smov 48   ;;  %s2803_s27 = smov 40  }
  0x51   :  { %2295 = vmatpush3.bf16.msra.mxu0 %v2901_v2  ;;  %s2804_s0 = smov 32   ;;  %s2805_s30 = smov 16  }
  0x52   :  { %2306 = vmatprep.subr.bf16.mxu0 %v2791_v0  ;;  %s2806_s6 = smov 24  }
  0x54   :  { %2297 = vmatmul.mubr.msk.bf16.vlgmr.msra.gmra.mrb[0].mxu0 %vm122_vm1, %v105_v4 }
  0x55   :  { %2308 = vmatprep.mubr.msk.bf16.mxu0 %vm2792_vm0, %v2791_v0 }
 0x127   :  { %v160_v6 = vpop.f32.mrb[0].mxu0 }
 0x128   :  { %v2913_v7 = vadd.f32 %v2160_v5, %v160_v6  ;;  %v2298_v8 = vpop.f32.mrb[1].mxu0 }
 0x129   :  { %v163_v9 = vpop.f32.mrb[2].mxu0 }
 0x12a   :  { %182 = vrot.lane.b32.xlu1 %v2913_v7, %s2793_s4  ;;  %176 = vrot.lane.b32.xlu0 %v2913_v7, %s2794_s18  ;;  %v2299_v10 = vpop.f32.mrb[3].mxu0  ;;  %v200_v21 = vpack.c.bf16 %v2913_v7, %v2913_v7 }
 0x12e   :  { %167 = vrot.lane.b32.xlu1 %v2913_v7, %s2795_s19  ;;  %179 = vrot.lane.b32.xlu0 %v2913_v7, %s2796_s20 }
 0x132   :  { %170 = vrot.lane.b32.xlu1 %v2913_v7, %s2797_s21  ;;  %185 = vrot.lane.b32.xlu0 %v2913_v7, %s2798_s22 }
 0x136   :  { %173 = vrot.lane.b32.xlu0 %v2913_v7, %s2799_s23 }
 0x19c   :  { %v177_v11 = vpop.permute.xlu0 %176  ;;  %v183_v13 = vpop.permute.xlu1 %182 }
 0x19d   :  { %v204_v12 = vpack.c.bf16 %v177_v11, %v177_v11  ;;  %v206_v17 = vpack.c.bf16 %v183_v13, %v183_v13 }
 0x19f   :  { %v213_v14 = vsel %vm208_vm2, %v204_v12, 0  ;;  %v305_v22 = vsel %vm208_vm2, %v206_v17, 0 }
 0x1a0   :  { %2301 = vmatpush3.bf16.xpose.msra.mxu1 %v213_v14  ;;  %v180_v15 = vpop.permute.xlu0 %179  ;;  %v168_v19 = vpop.permute.xlu1 %167 }
 0x1a1   :  { %v205_v16 = vpack.c.bf16 %v180_v15, %v180_v15  ;;  %2312 = vmatprep.subr.bf16.mxu1 %v2791_v0  ;;  %v201_v24 = vpack.c.bf16 %v168_v19, %v168_v19 }
 0x1a3   :  { %v259_v18 = vsel %vm208_vm2, %v205_v16, 0 }
 0x1a4   :  { %2307 = vmatpush3.bf16.xpose.msra.mxu0 %v259_v18  ;;  %v186_v20 = vpop.permute.xlu0 %185  ;;  %v171_v25 = vpop.permute.xlu1 %170 }
 0x1a5   :  { %2318 = vmatprep.subr.bf16.mxu0 %v2791_v0  ;;  %v207_v23 = vpack.c.bf16 %v186_v20, %v186_v20  ;;  %v202_v27 = vpack.c.bf16 %v171_v25, %v171_v25 }
 0x1a7   :  { %2303 = vmatmul.mubr.msk.bf16.vlgmr.msra.gmra.mrb[0].mxu1 %vm208_vm2, %v200_v21  ;;  %v351_v26 = vsel %vm208_vm2, %v207_v23, 0 }
 0x1a8   :  { %2313 = vmatpush3.bf16.xpose.msra.mxu1 %v305_v22  ;;  %2314 = vmatprep.mubr.msk.bf16.mxu1 %vm2792_vm0, %v2791_v0  ;;  %v174_v28 = vpop.permute.xlu0 %173 }
 0x1a9   :  { %2324 = vmatprep.subr.bf16.mxu1 %v2791_v0  ;;  %v203_v29 = vpack.c.bf16 %v174_v28, %v174_v28 }
 0x1ab   :  { %2309 = vmatmul.mubr.msk.bf16.vlgmr.msra.gmra.mrb[4].mxu0 %vm208_vm2, %v201_v24 }
 0x1ac   :  { %2319 = vmatpush3.bf16.xpose.msra.mxu0 %v351_v26  ;;  %2320 = vmatprep.mubr.msk.bf16.mxu0 %vm2792_vm0, %v2791_v0 }
 0x1ad   :  { %2330 = vmatprep.subr.bf16.mxu0 %v2791_v0 }
 0x1af   :  { %2315 = vmatmul.mubr.msk.bf16.vlgmr.msra.gmra.mrb[4].mxu1 %vm208_vm2, %v202_v27 }
 0x1b0   :  { %2326 = vmatprep.mubr.msk.bf16.mxu1 %vm2792_vm0, %v2791_v0 }
 0x1b3   :  { %2321 = vmatmul.mubr.msk.bf16.vlgmr.msra.gmra.mrb[8].mxu0 %vm208_vm2, %v203_v29 }
 0x1b4   :  { %2332 = vmatprep.mubr.msk.bf16.mxu0 %vm2792_vm0, %v2791_v0 }
 0x27a   :  { %v249_v30 = vpop.f32.mrb[0].mxu1 }
 0x27b   :  { %v2304_v31 = vpop.f32.mrb[1].mxu1  ;;  %v393_v32 = vsel %vm208_vm2, %v249_v30, -inf }
 0x27c   :  { %394 = vmax.xlane.f32.xlu1 %v393_v32  ;;  %v252_v33 = vpop.f32.mrb[2].mxu1 }
 0x27d   :  { %v2305_v34 = vpop.f32.mrb[3].mxu1 }
 0x27e   :  { %v295_v35 = vpop.f32.mrb[4].mxu0 }
 0x27f   :  { %v2310_v36 = vpop.f32.mrb[5].mxu0  ;;  %v396_v37 = vsel %vm208_vm2, %v295_v35, -inf }
 0x280   :  { %397 = vmax.xlane.f32.xlu0 %v396_v37  ;;  %v298_v38 = vpop.f32.mrb[6].mxu0 }
 0x281   :  { %v2311_v39 = vpop.f32.mrb[7].mxu0 }
 0x282   :  { %v341_v40 = vpop.f32.mrb[4].mxu1 }
 0x283   :  { %v2316_v41 = vpop.f32.mrb[5].mxu1  ;;  %v399_v42 = vsel %vm208_vm2, %v341_v40, -inf }
 0x284   :  { %v344_v43 = vpop.f32.mrb[6].mxu1  ;;  %400 = vmax.xlane.f32.xlu0 %v399_v42 }
 0x285   :  { %v2317_v44 = vpop.f32.mrb[7].mxu1 }
 0x286   :  { %v387_v45 = vpop.f32.mrb[8].mxu0 }
 0x287   :  { %v2322_v46 = vpop.f32.mrb[9].mxu0  ;;  %v402_v47 = vsel %vm208_vm2, %v387_v45, -inf }
 0x288   :  { %403 = vmax.xlane.f32.xlu1 %v402_v47  ;;  %v390_v48 = vpop.f32.mrb[10].mxu0 }
 0x289   :  { %v2323_v49 = vpop.f32.mrb[11].mxu0 }
 0x299   :  { %191 = vrot.lane.b32.xlu1 %v2913_v7, %s2800_s24 }
 0x29a   :  { %188 = vrot.lane.b32.xlu0 %v2913_v7, %s2801_s25 }
 0x309   :  { %v395_v50 = vpop.xlane.xlu1 %394 }
 0x30a   :  { %v405_v51 = vsub.f32 %v249_v30, %v395_v50 }
 0x30c   :  { %v409_v52 = vmul.f32 1.442695, %v405_v51 }
 0x30d   :  { %v398_v53 = vpop.xlane.xlu0 %397 }
 0x30e   :  { %2607 = vpow2.f32 %v409_v52  ;;  %v406_v54 = vsub.f32 %v295_v35, %v398_v53 }
 0x310   :  { %v411_v55 = vmul.f32 1.442695, %v406_v54 }
 0x311   :  { %v401_v56 = vpop.xlane.xlu0 %400 }
 0x312   :  { %2609 = vpow2.f32 %v411_v55  ;;  %v407_v57 = vsub.f32 %v341_v40, %v401_v56 }
 0x314   :  { %v413_v58 = vmul.f32 1.442695, %v407_v57 }
 0x315   :  { %v189_v59 = vpop.permute.xlu0 %188  ;;  %v404_v60 = vpop.xlane.xlu1 %403 }
 0x316   :  { %2611 = vpow2.f32 %v413_v58  ;;  %v441_v61 = vpack.c.bf16 %v189_v59, %v189_v59  ;;  %v408_v62 = vsub.f32 %v387_v45, %v404_v60 }
 0x318   :  { %v2608_v63 = vpop.eup %2607  ;;  %v450_v4 = vsel %vm448_vm3, %v441_v61, 0  ;;  %v415_v5 = vmul.f32 1.442695, %v408_v62  ;;  %v2996_v61 = vld [vmem:[#allocation7 + $0x4] ss:$12 sps:$4 sm:$0xff]  }
 0x319   :  { %2325 = vmatpush3.bf16.msra.mxu1 %v450_v4  ;;  %v192_v6 = vpop.permute.xlu1 %191  ;;  %v417_v8 = vsel %vm208_vm2, %v2608_v63, 0.0  ;;  %v3000_v62 = vld [vmem:[#allocation7 + $0x1c] ss:$12 sps:$4 sm:$0xff]  }
 0x31a   :  { %2613 = vpow2.f32 %v415_v5  ;;  %v442_v9 = vpack.c.bf16 %v192_v6, %v192_v6  ;;  %418 = vadd.xlane.f32.xlu0 %v417_v8  ;;  %2336 = vmatprep.subr.bf16.mxu1 %v2791_v0 }
 0x31c   :  { %v2610_v10 = vpop.eup %2609  ;;  %v496_v11 = vsel %vm448_vm3, %v442_v9, 0 }
 0x31d   :  { %2331 = vmatpush3.bf16.msra.mxu0 %v496_v11  ;;  %v420_v12 = vsel %vm208_vm2, %v2610_v10, 0.0 }
 0x31e   :  { %421 = vadd.xlane.f32.xlu1 %v420_v12  ;;  %2342 = vmatprep.subr.bf16.mxu0 %v2791_v0 }
 0x320   :  { %v2612_v13 = vpop.eup %2611 }
 0x321   :  { %v423_v14 = vsel %vm208_vm2, %v2612_v13, 0.0 }
 0x322   :  { %424 = vadd.xlane.f32.xlu0 %v423_v14  ;;  %v798_v14 = vld [vmem:[#allocation5] sm:$0xff] }
 0x324   :  { %v2614_v15 = vpop.eup %2613 }
 0x325   :  { %v426_v16 = vsel %vm208_vm2, %v2614_v15, 0.0 }
 0x326   :  { %427 = vadd.xlane.f32.xlu1 %v426_v16 }
 0x337   :  { %194 = vrot.lane.b32.xlu1 %v2913_v7, %s2802_s26 }
 0x338   :  { %197 = vrot.lane.b32.xlu0 %v2913_v7, %s2803_s27 }
 0x33b   :  { %652 = vrot.lane.b32.xlu1 %v2898_v1, %s2804_s0 }
 0x3a7   :  { %v419_v17 = vpop.xlane.xlu0 %418 }
 0x3a8   :  { %2615 = vrcp.f32 %v419_v17 }
 0x3ab   :  { %v422_v18 = vpop.xlane.xlu1 %421 }
 0x3ac   :  { %2617 = vrcp.f32 %v422_v18 }
 0x3af   :  { %v425_v19 = vpop.xlane.xlu0 %424 }
 0x3b0   :  { %2619 = vrcp.f32 %v425_v19 }
 0x3b2   :  { %v2616_v20 = vpop.eup %2615 }
 0x3b3   :  { %v433_v21 = vmul.f32 %v2616_v20, %v2608_v63  ;;  %v428_v22 = vpop.xlane.xlu1 %427  ;;  %v198_v23 = vpop.permute.xlu0 %197  ;;  %v2172_v63 = vld [vmem:[#allocation8 + $0x1] ss:$0 sm:$0xff] }
 0x3b4   :  { %2621 = vrcp.f32 %v428_v22  ;;  %v444_v27 = vpack.c.bf16 %v198_v23, %v198_v23 }
 0x3b5   :  { %v437_v24 = vpack.c.bf16 %v433_v21, %v433_v21 }
 0x3b6   :  { %v2618_v25 = vpop.eup %2617  ;;  %v588_v33 = vsel %vm448_vm3, %v444_v27, 0 }
 0x3b7   :  { %v434_v26 = vmul.f32 %v2618_v25, %v2610_v10  ;;  %2327 = vmatmul.mubr.msk.bf16.vlgmr.msra.gmra.mrb[8].mxu1 %vm208_vm2, %v437_v24  ;;  %v195_v28 = vpop.permute.xlu1 %194  ;;  %v800_v24 = vld [vmem:[#allocation5 + $0x10] sm:$0xff]  ;;  %v801_v25 = vld [vmem:[#allocation5 + $0x18] sm:$0xff] }
 0x3b8   :  { %v443_v29 = vpack.c.bf16 %v195_v28, %v195_v28  ;;  %2338 = vmatprep.mubr.msk.bf16.mxu1 %vm2792_vm0, %v2791_v0  ;;  %v803_v27 = vpack.c.bf16 %v801_v25, %v800_v24 }
 0x3b9   :  { %v438_v7 = vpack.c.bf16 %v434_v26, %v434_v26 }
 0x3ba   :  { %v2620_v30 = vpop.eup %2619  ;;  %v542_v31 = vsel %vm448_vm3, %v443_v29, 0 }
 0x3bb   :  { %v435_v32 = vmul.f32 %v2620_v30, %v2612_v13  ;;  %2333 = vmatmul.mubr.msk.bf16.vlgmr.msra.gmra.mrb[12].mxu0 %vm208_vm2, %v438_v7  ;;  %2337 = vmatpush3.bf16.msra.mxu1 %v542_v31  ;;  %v653_v38 = vpop.permute.xlu1 %652  ;;  %v2174_v7 = vld [vmem:[#allocation8 + $0x7] ss:$0 sm:$0xff]  ;;  %v2175_v31 = vld [vmem:[#allocation8 + $0x8] ss:$0 sm:$0xff] }
 0x3bc   :  { %2343 = vmatpush3.bf16.msra.mxu0 %v588_v33  ;;  %2344 = vmatprep.mubr.msk.bf16.mxu0 %vm2792_vm0, %v2791_v0 }
 0x3bd   :  { %v439_v34 = vpack.c.bf16 %v435_v32, %v435_v32  ;;  %2348 = vmatprep.subr.bf16.mxu1 %v2791_v0  ;;  %2356 = vmatprep.subr.bf16.mxu0 %v2791_v0 }
 0x3be   :  { %v2622_v35 = vpop.eup %2621 }
 0x3bf   :  { %v436_v36 = vmul.f32 %v2622_v35, %v2614_v15  ;;  %2339 = vmatmul.mubr.msk.bf16.vlgmr.msra.gmra.mrb[12].mxu1 %vm208_vm2, %v439_v34  ;;  %v799_v15 = vld [vmem:[#allocation5 + $0x8] sm:$0xff]  ;;  %v2180_v35 = vld [vmem:[#allocation8 + $0x3] ss:$0 sm:$0xff] }
 0x3c0   :  { %2352 = vmatprep.mubr.msk.bf16.mxu1 %vm2792_vm0, %v2791_v0  ;;  %2349 = vmatpush3.bf16.msra.mxu1 %v653_v38  ;;  %v802_v16 = vpack.c.bf16 %v799_v15, %v798_v14 }
 0x3c1   :  { %v440_v37 = vpack.c.bf16 %v436_v36, %v436_v36  ;;  %2350 = vmatprep.subr.bf16.mxu1 %v2791_v0 }
 0x3c3   :  { %2345 = vmatmul.mubr.msk.bf16.vlgmr.msra.gmra.mrb[16].mxu0 %vm208_vm2, %v440_v37 }
 0x3c4   :  { %2360 = vmatprep.mubr.msk.bf16.mxu0 %vm2792_vm0, %v2791_v0  ;;  %2357 = vmatpush3.bf16.msra.mxu0 %v2996_v61 }
 0x3c5   :  { %2358 = vmatprep.subr.bf16.mxu0 %v2791_v0 }
 0x3c8   :  { %2359 = vmatpush3.bf16.msra.mxu0 %v3000_v62 }
 0x3c9   :  { %2372 = vmatprep.subr.bf16.mxu0 %v2791_v0 }
 0x48a   :  { %v486_v39 = vpop.f32.mrb[8].mxu1 }
 0x48b   :  { %v2328_v40 = vpop.f32.mrb[9].mxu1 }
 0x48c   :  { %v489_v41 = vpop.f32.mrb[10].mxu1 }
 0x48d   :  { %v2329_v42 = vpop.f32.mrb[11].mxu1 }
 0x48e   :  { %v532_v43 = vpop.f32.mrb[12].mxu0 }
 0x48f   :  { %631 = vrot.lane.b32.xlu0 %v532_v43, %s2785_s29  ;;  %v2334_v44 = vpop.f32.mrb[13].mxu0 }
 0x490   :  { %v535_v45 = vpop.f32.mrb[14].mxu0 }
 0x491   :  { %v2335_v46 = vpop.f32.mrb[15].mxu0 }
 0x492   :  { %v578_v47 = vpop.f32.mrb[12].mxu1 }
 0x493   :  { %635 = vrot.lane.b32.xlu1 %v578_v47, %s2805_s30  ;;  %v2340_v48 = vpop.f32.mrb[13].mxu1 }
 0x494   :  { %v581_v1 = vpop.f32.mrb[14].mxu1 }
 0x495   :  { %v2341_v49 = vpop.f32.mrb[15].mxu1  ;;  %v2176_v1 = vld [vmem:[#allocation8 + $0x2] ss:$0 sm:$0xff] }
 0x496   :  { %v624_v50 = vpop.f32.mrb[16].mxu0 }
 0x497   :  { %654 = vrot.lane.b32.xlu1 %v2901_v2, %s2804_s0  ;;  %639 = vrot.lane.b32.xlu0 %v624_v50, %s2806_s6  ;;  %v2346_v51 = vpop.f32.mrb[17].mxu0 }
 0x498   :  { %v627_v52 = vpop.f32.mrb[18].mxu0 }
 0x499   :  { %v2347_v53 = vpop.f32.mrb[19].mxu0 }
 0x501   :  { %v632_v54 = vpop.permute.xlu0 %631 }
 0x502   :  { %v642_v56 = vsel %vm208_vm2, %v486_v39, %v632_v54 }
 0x505   :  { %v636_v55 = vpop.permute.xlu1 %635 }
 0x506   :  { %v644_v57 = vsel %vm643_vm4, %v642_v56, %v636_v55 }
 0x509   :  { %v655_v58 = vpop.permute.xlu1 %654  ;;  %v640_v59 = vpop.permute.xlu0 %639 }
 0x50a   :  { %v646_v60 = vsel %vm645_vm5, %v644_v57, %v640_v59  ;;  %2351 = vmatpush3.bf16.msra.mxu1 %v655_v58 }
 0x50b   :  { %v647_v2 = vpack.c.bf16 %v646_v60, %v646_v60 }
 0x50d   :  { %2353 = vmatmul.mubr.msk.bf16.vlgmr.msra.gmra.mrb[16].mxu1 %vm122_vm1, %v647_v2 }
 0x50e   :  { %2368 = vmatprep.mubr.msk.bf16.mxu1 %vm122_vm1, %v802_v16 }
 0x5e0   :  { %v695_v4 = vpop.f32.mrb[16].mxu1 }
 0x5e1   :  { %v696_v5 = vadd.f32 %v2172_v63, %v695_v4  ;;  %v2354_v6 = vpop.f32.mrb[17].mxu1 }
 0x5e2   :  { %v698_v8 = vpop.f32.mrb[18].mxu1 }
 0x5e3   :  { %v701_v9 = vadd.f32 %v696_v5, %v2903_v3  ;;  %v2355_v10 = vpop.f32.mrb[19].mxu1 }
 0x5e5   :  { %v702_v11 = vsel %vm122_vm1, %v701_v9, 0.0  ;;  %v707_v12 = vmul.f32 %v701_v9, %v701_v9 }
 0x5e6   :  { %703 = vadd.xlane.f32.xlu0 %v702_v11 }
 0x5e7   :  { %v708_v13 = vsel %vm122_vm1, %v707_v12, 0.0 }
 0x5e8   :  { %709 = vadd.xlane.f32.xlu1 %v708_v13 }
 0x5f9   :  { %810 = vrot.lane.b32.xlu1 %v3000_v62, %s2794_s18 }
 0x5fc   :  { %808 = vrot.lane.b32.xlu0 %v2996_v61, %s2794_s18 }
 0x673   :  { %v704_v3 = vpop.xlane.xlu0 %703 }
 0x674   :  { %v706_v17 = vmul.f32 0.03125, %v704_v3 }
 0x675   :  { %v710_v18 = vpop.xlane.xlu1 %709 }
 0x676   :  { %v712_v19 = vmul.f32 %v706_v17, %v706_v17  ;;  %v711_v20 = vmul.f32 0.03125, %v710_v18  ;;  %v714_v28 = vsub.f32 %v701_v9, %v706_v17  ;;  %v2183_v17 = vld [vmem:[%s3266_s2] ss:$0 sm:$0xff] }
 0x677   :  { %v809_v21 = vpop.permute.xlu0 %808 }
 0x678   :  { %v713_v22 = vsub.f32 %v711_v20, %v712_v19  ;;  %2364 = vmatprep.subr.bf16.mxu1 %v809_v21 }
 0x679   :  { %2365 = vmatpush3.bf16.msra.mxu1 %v809_v21  ;;  %v811_v23 = vpop.permute.xlu1 %810 }
 0x67a   :  { %v715_v26 = vadd.f32 1e-05, %v713_v22  ;;  %2366 = vmatprep.subr.bf16.mxu1 %v811_v23 }
 0x67c   :  { %2623 = vrsqrt.f32 %v715_v26 }
 0x67d   :  { %2367 = vmatpush3.bf16.msra.mxu1 %v811_v23 }
 0x67e   :  { %2378 = vmatprep.subr.bf16.mxu1 %v2791_v0 }
 0x680   :  { %2369 = vmatmul.mubr.msk.bf16.vlgmr.msra.gmra.mrb[20].mxu1 %vm122_vm1, %v803_v27 }
 0x681   :  { %2380 = vmatprep.mubr.msk.bf16.mxu1 %vm2792_vm0, %v2791_v0 }
 0x686   :  { %v2624_v29 = vpop.eup %2623 }
 0x687   :  { %v717_v30 = vmul.f32 %v2624_v29, %v714_v28 }
 0x689   :  { %v722_v32 = vmul.f32 %v2174_v7, %v717_v30 }
 0x68b   :  { %v3016_v33 = vadd.f32 %v2175_v31, %v722_v32 }
 0x68d   :  { %v728_v34 = vpack.c.bf16 %v3016_v33, %v3016_v33 }
 0x68f   :  { %2361 = vmatmul.mubr.msk.bf16.vlgmr.msra.gmra.mrb[20].mxu0 %vm122_vm1, %v728_v34 }
 0x690   :  { %2374 = vmatprep.mubr.msk.bf16.mxu0 %vm2792_vm0, %v2791_v0 }
 0x753   :  { %v2370_v36 = vpop.f32.mrb[20].mxu1 }
 0x754   :  { %v3023_v37 = vadd.f32 %v2370_v36, %v2180_v35  ;;  %v854_v38 = vpop.f32.mrb[21].mxu1 }
 0x755   :  { %v2371_v39 = vpop.f32.mrb[22].mxu1  ;;  %v855_v42 = vadd.f32 %v2180_v35, %v854_v38 }
 0x756   :  { %v3025_v40 = vadd.f32 %v2371_v39, %v2180_v35  ;;  %v857_v41 = vpop.f32.mrb[23].mxu1 }
 0x757   :  { %v858_v43 = vadd.f32 %v2180_v35, %v857_v41 }
 0x758   :  { %v1452_v44 = vpack.c.bf16 %v3025_v40, %v3023_v37  ;;  %v3031_v45 = vpack.i.bf16 %v3025_v40, %v3023_v37 }
 0x759   :  { %v3033_v46 = vpack.i.bf16 %v858_v43, %v855_v42  ;;  %v962_v47 = vpack.c.bf16 %v858_v43, %v855_v42 }
 0x75b   :  { %2535 = vrot.lane.b32.xlu1 %v3033_v46, %s2797_s21  ;;  %2530 = vrot.lane.b32.xlu0 %v3033_v46, %s2795_s19  ;;  %v976_v48 = vsel %vm208_vm2, %v962_v47, 0 }
 0x75c   :  { %2373 = vmatpush3.bf16.xpose.msra.mxu0 %v976_v48 }
 0x75d   :  { %2384 = vmatprep.subr.bf16.mxu0 %v2791_v0 }
 0x75f   :  { %2540 = vrot.lane.b32.xlu1 %v3033_v46, %s2799_s23 }
 0x762   :  { %v782_v49 = vpop.f32.mrb[20].mxu0 }
 0x763   :  { %v783_v50 = vadd.f32 %v2176_v1, %v782_v49  ;;  %v2362_v51 = vpop.f32.mrb[21].mxu0 }
 0x764   :  { %v785_v52 = vpop.f32.mrb[22].mxu0 }
 0x765   :  { %v3043_v53 = vpack.c.bf16 %v783_v50, %v783_v50  ;;  %795 = vrot.lane.b32.xlu1 %v783_v50, %s2799_s23  ;;  %789 = vrot.lane.b32.xlu0 %v783_v50, %s2795_s19  ;;  %v2363_v54 = vpop.f32.mrb[23].mxu0 }
 0x767   :  { %2375 = vmatmul.mubr.msk.bf16.vlgmr.msra.gmra.mrb[24].mxu0 %vm208_vm2, %v3043_v53 }
 0x768   :  { %2386 = vmatprep.mubr.msk.bf16.mxu0 %vm2792_vm0, %v2791_v0 }
 0x769   :  { %792 = vrot.lane.b32.xlu0 %v783_v50, %s2797_s21 }
 0x7cd   :  { %v2536_v55 = vpop.permute.xlu1 %2535  ;;  %v2531_v56 = vpop.permute.xlu0 %2530 }
 0x7ce   :  { %v2538_v57 = vunpack.i.h.bf16 %v2536_v55  ;;  %v2537_v58 = vunpack.i.l.bf16 %v2536_v55  ;;  %v2533_v59 = vunpack.i.h.bf16 %v2531_v56  ;;  %v2532_v60 = vunpack.i.l.bf16 %v2531_v56 }
 0x7d0   :  { %v964_v2 = vpack.c.bf16 %v2538_v57, %v2537_v58  ;;  %v963_v63 = vpack.c.bf16 %v2533_v59, %v2532_v60 }
 0x7d1   :  { %v2541_v4 = vpop.permute.xlu1 %2540 }
 0x7d2   :  { %v2543_v5 = vunpack.i.h.bf16 %v2541_v4  ;;  %v2542_v6 = vunpack.i.l.bf16 %v2541_v4  ;;  %v1022_v8 = vsel %vm208_vm2, %v963_v63, 0  ;;  %v1068_v9 = vsel %vm208_vm2, %v964_v2, 0 }
 0x7d3   :  { %2379 = vmatpush3.bf16.xpose.msra.mxu1 %v1022_v8  ;;  %2385 = vmatpush3.bf16.xpose.msra.mxu0 %v1068_v9 }
 0x7d4   :  { %2390 = vmatprep.subr.bf16.mxu1 %v2791_v0  ;;  %2396 = vmatprep.subr.bf16.mxu0 %v2791_v0  ;;  %v965_v10 = vpack.c.bf16 %v2543_v5, %v2542_v6 }
 0x7d6   :  { %v1114_v13 = vsel %vm208_vm2, %v965_v10, 0 }
 0x7d7   :  { %v790_v11 = vpop.permute.xlu0 %789  ;;  %v796_v16 = vpop.permute.xlu1 %795 }
 0x7d8   :  { %v3056_v12 = vpack.c.bf16 %v790_v11, %v790_v11  ;;  %v3070_v3 = vpack.c.bf16 %v796_v16, %v796_v16 }
 0x7da   :  { %2381 = vmatmul.mubr.msk.bf16.vlgmr.msra.gmra.mrb[24].mxu1 %vm208_vm2, %v3056_v12 }
 0x7db   :  { %2391 = vmatpush3.bf16.xpose.msra.mxu1 %v1114_v13  ;;  %v793_v14 = vpop.permute.xlu0 %792  ;;  %2392 = vmatprep.mubr.msk.bf16.mxu1 %vm2792_vm0, %v2791_v0 }
 0x7dc   :  { %v3063_v15 = vpack.c.bf16 %v793_v14, %v793_v14  ;;  %2402 = vmatprep.subr.bf16.mxu1 %v2791_v0 }
 0x7de   :  { %2387 = vmatmul.mubr.msk.bf16.vlgmr.msra.gmra.mrb[28].mxu0 %vm208_vm2, %v3063_v15 }
 0x7df   :  { %2398 = vmatprep.mubr.msk.bf16.mxu0 %vm2792_vm0, %v2791_v0 }
 0x7e2   :  { %2393 = vmatmul.mubr.msk.bf16.vlgmr.msra.gmra.mrb[28].mxu1 %vm208_vm2, %v3070_v3 }
 0x7e3   :  { %2404 = vmatprep.mubr.msk.bf16.mxu1 %vm2792_vm0, %v2791_v0 }
 0x83a   :  { %v1012_v18 = vpop.f32.mrb[24].mxu0 }
 0x83b   :  { %v1013_v19 = vadd.f32 %v2183_v17, %v1012_v18  ;;  %v2376_v20 = vpop.f32.mrb[25].mxu0 }
 0x83c   :  { %v1015_v21 = vpop.f32.mrb[26].mxu0 }
 0x83d   :  { %v2377_v22 = vpop.f32.mrb[27].mxu0  ;;  %v1156_v23 = vsel %vm643_vm4, %v1013_v19, -inf }
 0x83e   :  { %1157 = vmax.xlane.f32.xlu0 %v1156_v23 }
 0x8ad   :  { %v1058_v24 = vpop.f32.mrb[24].mxu1 }
 0x8ae   :  { %v1059_v25 = vadd.f32 %v2183_v17, %v1058_v24  ;;  %v2382_v26 = vpop.f32.mrb[25].mxu1 }
 0x8af   :  { %v1061_v27 = vpop.f32.mrb[26].mxu1 }
 0x8b0   :  { %v2383_v28 = vpop.f32.mrb[27].mxu1  ;;  %v1159_v29 = vsel %vm643_vm4, %v1059_v25, -inf }
 0x8b1   :  { %1160 = vmax.xlane.f32.xlu1 %v1159_v29  ;;  %v1104_v7 = vpop.f32.mrb[28].mxu0 }
 0x8b2   :  { %v1105_v30 = vadd.f32 %v2183_v17, %v1104_v7  ;;  %v2388_v31 = vpop.f32.mrb[29].mxu0 }
 0x8b3   :  { %v1107_v32 = vpop.f32.mrb[30].mxu0 }
 0x8b4   :  { %v2389_v34 = vpop.f32.mrb[31].mxu0  ;;  %v1162_v35 = vsel %vm643_vm4, %v1105_v30, -inf }
 0x8b5   :  { %v1150_v36 = vpop.f32.mrb[28].mxu1  ;;  %1163 = vmax.xlane.f32.xlu0 %v1162_v35 }
 0x8b6   :  { %v1151_v38 = vadd.f32 %v2183_v17, %v1150_v36  ;;  %v2394_v39 = vpop.f32.mrb[29].mxu1 }
 0x8b7   :  { %v1153_v41 = vpop.f32.mrb[30].mxu1 }
 0x8b8   :  { %v2395_v42 = vpop.f32.mrb[31].mxu1  ;;  %v1165_v43 = vsel %vm643_vm4, %v1151_v38, -inf }
 0x8b9   :  { %1166 = vmax.xlane.f32.xlu0 %v1165_v43  ;;  %v1463_v42 = vsel %vm208_vm2, %v1452_v44, 0 }
 0x8c2   :  { %2545 = vrot.lane.b32.xlu1 %v3033_v46, %s2794_s18 }
 0x8cb   :  { %v1158_v47 = vpop.xlane.xlu0 %1157 }
 0x8cc   :  { %v1168_v48 = vsub.f32 %v1013_v19, %v1158_v47 }
 0x8ce   :  { %v1172_v1 = vmul.f32 1.442695, %v1168_v48 }
 0x8d0   :  { %2625 = vpow2.f32 %v1172_v1 }
 0x8da   :  { %v2626_v49 = vpop.eup %2625 }
 0x8db   :  { %v1180_v50 = vsel %vm643_vm4, %v2626_v49, 0.0 }
 0x8e6   :  { %1181 = vadd.xlane.f32.xlu1 %v1180_v50 }
 0x93e   :  { %v1161_v51 = vpop.xlane.xlu1 %1160 }
 0x93f   :  { %v1169_v52 = vsub.f32 %v1059_v25, %v1161_v51 }
 0x941   :  { %v1174_v54 = vmul.f32 1.442695, %v1169_v52 }
 0x942   :  { %v2546_v55 = vpop.permute.xlu1 %2545  ;;  %v1164_v56 = vpop.xlane.xlu0 %1163 }
 0x943   :  { %2627 = vpow2.f32 %v1174_v54  ;;  %v2548_v57 = vunpack.i.h.bf16 %v2546_v55  ;;  %v2547_v58 = vunpack.i.l.bf16 %v2546_v55  ;;  %v1170_v59 = vsub.f32 %v1105_v30, %v1164_v56 }
 0x945   :  { %v1204_v60 = vpack.c.bf16 %v2548_v57, %v2547_v58  ;;  %v1176_v2 = vmul.f32 1.442695, %v1170_v59 }
 0x946   :  { %v1167_v63 = vpop.xlane.xlu0 %1166 }
 0x947   :  { %2629 = vpow2.f32 %v1176_v2  ;;  %v1171_v4 = vsub.f32 %v1151_v38, %v1167_v63  ;;  %2397 = vmatpush3.bf16.msra.mxu0 %v1204_v60 }
 0x948   :  { %2408 = vmatprep.subr.bf16.mxu0 %v2791_v0 }
 0x949   :  { %v1178_v5 = vmul.f32 1.442695, %v1171_v4 }
 0x94b   :  { %2631 = vpow2.f32 %v1178_v5  ;;  %v3144_v5 = vld [vmem:[%s3266_s2 + $0x1] ss:$0 sm:$0xff]  ;;  %s2807_s2 = smov [#allocation10]  }
 0x94c   :  { %s2146_s12 = sshll.u32 %s2807_s2, 4  ;;  %s2147_s12 = int_to_ptr.vmem [resolvable:$true] %s2146_s12 }
 0x94d   :  { %v2628_v6 = vpop.eup %2627  ;;  %s2753_s13 = scalar_lea.vmem %s2147_s12, 256  ;;  %p2758_p5 = scmp.lt.s32.totalorder %s2147_s12, %s2147_s12 }
 0x94e   :  { %v1183_v8 = vsel %vm643_vm4, %v2628_v6, 0.0  ;;  %p2754_p4 = scmp.ne.s32.totalorder %s2147_s12, %s2753_s13  ;;  %p2759_p6 = scmp.lt.s32.totalorder %s2753_s13, %s2753_s13 }
 0x94f   :  { %1184 = vadd.xlane.f32.xlu0 %v1183_v8 }
 0x950   :  { %p2760_p7 = por %p2759_p6, %p2758_p5 }
 0x951   :  { %v2630_v9 = vpop.eup %2629 }
 0x952   :  { %v1186_v10 = vsel %vm643_vm4, %v2630_v9, 0.0  ;;  %p2761_p8 = pnand %p2760_p7, %p2754_p4 }
 0x953   :  { %1187 = vadd.xlane.f32.xlu1 %v1186_v10 }
 0x955   :  { %v2632_v11 = vpop.eup %2631 }
 0x956   :  { %v1189_v13 = vsel %vm643_vm4, %v2632_v11, 0.0 }
 0x957   :  { %1190 = vadd.xlane.f32.xlu0 %v1189_v13 }
 0x964   :  { %2555 = vrot.lane.b32.xlu1 %v3033_v46, %s2793_s4 }
 0x968   :  { %2560 = vrot.lane.b32.xlu1 %v3033_v46, %s2798_s22 }
 0x96c   :  { %1402 = vrot.lane.b32.xlu1 %v3000_v62, %s2804_s0 }
 0x96d   :  { %2550 = vrot.lane.b32.xlu0 %v3033_v46, %s2796_s20 }
 0x971   :  { %1400 = vrot.lane.b32.xlu0 %v2996_v61, %s2804_s0 }
 0x973   :  { %v1182_v14 = vpop.xlane.xlu1 %1181 }
 0x974   :  { %2633 = vrcp.f32 %v1182_v14 }
 0x97e   :  { %v2634_v16 = vpop.eup %2633 }
 0x97f   :  { %v1196_v17 = vmul.f32 %v2634_v16, %v2626_v49 }
 0x981   :  { %v1200_v18 = vpack.c.bf16 %v1196_v17, %v1196_v17 }
 0x983   :  { %2399 = vmatmul.mubr.msk.bf16.vlgmr.msra.gmra.mrb[32].mxu0 %vm643_vm4, %v1200_v18 }
 0x984   :  { %2410 = vmatprep.mubr.msk.bf16.mxu0 %vm2792_vm0, %v2791_v0 }
 0x9dc   :  { %v1185_v19 = vpop.xlane.xlu0 %1184 }
 0x9dd   :  { %2635 = vrcp.f32 %v1185_v19 }
 0x9e0   :  { %v1188_v20 = vpop.xlane.xlu1 %1187 }
 0x9e1   :  { %2637 = vrcp.f32 %v1188_v20 }
 0x9e4   :  { %v2556_v62 = vpop.permute.xlu1 %2555  ;;  %v1191_v21 = vpop.xlane.xlu0 %1190 }
 0x9e5   :  { %v2558_v46 = vunpack.i.h.bf16 %v2556_v62  ;;  %v2557_v22 = vunpack.i.l.bf16 %v2556_v62  ;;  %2639 = vrcp.f32 %v1191_v21 }
 0x9e7   :  { %v2636_v61 = vpop.eup %2635  ;;  %v1206_v23 = vpack.c.bf16 %v2558_v46, %v2557_v22 }
 0x9e8   :  { %v2561_v24 = vpop.permute.xlu1 %2560  ;;  %v2551_v25 = vpop.permute.xlu0 %2550  ;;  %v1197_v28 = vmul.f32 %v2636_v61, %v2628_v6 }
 0x9e9   :  { %v2553_v26 = vunpack.i.h.bf16 %v2551_v25  ;;  %v2552_v27 = vunpack.i.l.bf16 %v2551_v25  ;;  %2409 = vmatpush3.bf16.msra.mxu0 %v1206_v23  ;;  %v2563_v7 = vunpack.i.h.bf16 %v2561_v24  ;;  %v2562_v30 = vunpack.i.l.bf16 %v2561_v24 }
 0x9ea   :  { %2420 = vmatprep.subr.bf16.mxu0 %v2791_v0  ;;  %v1201_v34 = vpack.c.bf16 %v1197_v28, %v1197_v28 }
 0x9eb   :  { %v2638_v29 = vpop.eup %2637  ;;  %v1205_v31 = vpack.c.bf16 %v2553_v26, %v2552_v27  ;;  %v1207_v38 = vpack.c.bf16 %v2563_v7, %v2562_v30 }
 0x9ec   :  { %v1198_v32 = vmul.f32 %v2638_v29, %v2630_v9  ;;  %v3124_v49 = vpop.permute.xlu0 %1400  ;;  %v3128_v37 = vpop.permute.xlu1 %1402 }
 0x9ed   :  { %2403 = vmatpush3.bf16.msra.mxu1 %v1205_v31 }
 0x9ee   :  { %v1202_v35 = vpack.c.bf16 %v1198_v32, %v1198_v32  ;;  %2414 = vmatprep.subr.bf16.mxu1 %v2791_v0 }
 0x9ef   :  { %v2640_v36 = vpop.eup %2639 }
 0x9f0   :  { %2405 = vmatmul.mubr.msk.bf16.vlgmr.msra.gmra.mrb[32].mxu1 %vm643_vm4, %v1201_v34  ;;  %2411 = vmatmul.mubr.msk.bf16.vlgmr.msra.gmra.mrb[36].mxu0 %vm643_vm4, %v1202_v35  ;;  %v1199_v39 = vmul.f32 %v2640_v36, %v2632_v11 }
 0x9f1   :  { %2415 = vmatpush3.bf16.msra.mxu1 %v1207_v38  ;;  %2416 = vmatprep.mubr.msk.bf16.mxu1 %vm2792_vm0, %v2791_v0 }
 0x9f2   :  { %2428 = vmatprep.subr.bf16.mxu1 %v2791_v0  ;;  %2424 = vmatprep.mubr.msk.bf16.mxu0 %vm2792_vm0, %v2791_v0  ;;  %v1203_v41 = vpack.c.bf16 %v1199_v39, %v1199_v39 }
 0x9f3   :  { %2421 = vmatpush3.bf16.msra.mxu0 %v3124_v49 }
 0x9f4   :  { %2422 = vmatprep.subr.bf16.mxu0 %v2791_v0 }
 0x9f7   :  { %2423 = vmatpush3.bf16.msra.mxu0 %v3128_v37 }
 0x9f8   :  { %2417 = vmatmul.mubr.msk.bf16.vlgmr.msra.gmra.mrb[36].mxu1 %vm643_vm4, %v1203_v41  ;;  %2434 = vmatprep.subr.bf16.mxu0 %v2791_v0 }
 0x9f9   :  { %2430 = vmatprep.mubr.msk.bf16.mxu1 %vm2792_vm0, %v2791_v0 }
 0x9fa   :  { %2429 = vmatpush3.bf16.xpose.msra.mxu1 %v1463_v42 }
 0x9fb   :  { %2440 = vmatprep.subr.bf16.mxu1 %v2791_v0 }
 0xa01   :  { %2431 = vmatmul.mubr.msk.bf16.vlgmr.msra.gmra.mrb[40].mxu1 %vm208_vm2, %v3043_v53 }
 0xa02   :  { %2442 = vmatprep.mubr.msk.bf16.mxu1 %vm2792_vm0, %v2791_v0 }
 0xa56   :  { %v1245_v43 = vpop.f32.mrb[32].mxu0 }
 0xa57   :  { %v2400_v47 = vpop.f32.mrb[33].mxu0 }
 0xa58   :  { %v1248_v48 = vpop.f32.mrb[34].mxu0 }
 0xa59   :  { %v2401_v1 = vpop.f32.mrb[35].mxu0 }
 0xac3   :  { %v1288_v40 = vpop.f32.mrb[32].mxu1  ;;  %v1331_v44 = vpop.f32.mrb[36].mxu0 }
 0xac4   :  { %1381 = vrot.lane.b32.xlu0 %v1288_v40, %s2785_s29  ;;  %v2406_v53 = vpop.f32.mrb[33].mxu1  ;;  %1385 = vrot.lane.b32.xlu1 %v1331_v44, %s2805_s30  ;;  %v2412_v50 = vpop.f32.mrb[37].mxu0 }
 0xac5   :  { %v1291_v51 = vpop.f32.mrb[34].mxu1  ;;  %v1334_v52 = vpop.f32.mrb[38].mxu0 }
 0xac6   :  { %v2407_v54 = vpop.f32.mrb[35].mxu1  ;;  %v2413_v55 = vpop.f32.mrb[39].mxu0 }
 0xac8   :  { %2565 = vrot.lane.b32.xlu1 %v3031_v45, %s2795_s19 }
 0xacb   :  { %v1374_v56 = vpop.f32.mrb[36].mxu1 }
 0xacc   :  { %1389 = vrot.lane.b32.xlu0 %v1374_v56, %s2806_s6  ;;  %v2418_v57 = vpop.f32.mrb[37].mxu1  ;;  %2575 = vrot.lane.b32.xlu1 %v3031_v45, %s2799_s23 }
 0xacd   :  { %v1377_v58 = vpop.f32.mrb[38].mxu1 }
 0xace   :  { %v2419_v59 = vpop.f32.mrb[39].mxu1 }
 0xad0   :  { %2570 = vrot.lane.b32.xlu0 %v3031_v45, %s2797_s21 }
 0xad4   :  { %v1499_v60 = vpop.f32.mrb[40].mxu1 }
 0xad5   :  { %v2432_v2 = vpop.f32.mrb[41].mxu1  ;;  %v1500_v6 = vadd.f32 %v3144_v5, %v1499_v60 }
 0xad6   :  { %v1502_v63 = vpop.f32.mrb[42].mxu1 }
 0xad7   :  { %v2433_v4 = vpop.f32.mrb[43].mxu1  ;;  %v1634_v8 = vsel %vm643_vm4, %v1500_v6, -inf }
 0xaef   :  { %1635 = vmax.xlane.f32.xlu0 %v1634_v8 }
 0xb36   :  { %v1386_v9 = vpop.permute.xlu1 %1385  ;;  %v1382_v10 = vpop.permute.xlu0 %1381 }
 0xb37   :  { %v1392_v13 = vsel %vm208_vm2, %v1245_v43, %v1382_v10 }
 0xb38   :  { %v1393_v17 = vsel %vm643_vm4, %v1392_v13, %v1386_v9 }
 0xb3a   :  { %v2566_v11 = vpop.permute.xlu1 %2565 }
 0xb3b   :  { %v2568_v14 = vunpack.i.h.bf16 %v2566_v11  ;;  %v2567_v16 = vunpack.i.l.bf16 %v2566_v11 }
 0xb3d   :  { %v1453_v18 = vpack.c.bf16 %v2568_v14, %v2567_v16 }
 0xb3e   :  { %v1390_v19 = vpop.permute.xlu0 %1389  ;;  %v2576_v62 = vpop.permute.xlu1 %2575 }
 0xb3f   :  { %v1394_v20 = vsel %vm645_vm5, %v1393_v17, %v1390_v19  ;;  %v2578_v46 = vunpack.i.h.bf16 %v2576_v62  ;;  %v2577_v22 = vunpack.i.l.bf16 %v2576_v62  ;;  %v1506_v23 = vsel %vm208_vm2, %v1453_v18, 0 }
 0xb40   :  { %v1395_v21 = vpack.c.bf16 %v1394_v20, %v1394_v20 }
 0xb41   :  { %v1455_v27 = vpack.c.bf16 %v2578_v46, %v2577_v22 }
 0xb42   :  { %v2571_v61 = vpop.permute.xlu0 %2570  ;;  %2425 = vmatmul.mubr.msk.bf16.vlgmr.msra.gmra.mrb[40].mxu0 %vm122_vm1, %v1395_v21 }
 0xb43   :  { %v2573_v24 = vunpack.i.h.bf16 %v2571_v61  ;;  %v2572_v25 = vunpack.i.l.bf16 %v2571_v61  ;;  %2435 = vmatpush3.bf16.xpose.msra.mxu0 %v1506_v23  ;;  %2436 = vmatprep.mubr.msk.bf16.mxu0 %vm2792_vm0, %v2791_v0  ;;  %v1592_v29 = vsel %vm208_vm2, %v1455_v27, 0 }
 0xb44   :  { %2446 = vmatprep.subr.bf16.mxu0 %v2791_v0 }
 0xb45   :  { %v1454_v26 = vpack.c.bf16 %v2573_v24, %v2572_v25 }
 0xb47   :  { %v1549_v28 = vsel %vm208_vm2, %v1454_v26, 0 }
 0xb48   :  { %2441 = vmatpush3.bf16.xpose.msra.mxu1 %v1549_v28 }
 0xb49   :  { %2452 = vmatprep.subr.bf16.mxu1 %v2791_v0 }
 0xb4a   :  { %2437 = vmatmul.mubr.msk.bf16.vlgmr.msra.gmra.mrb[44].mxu0 %vm208_vm2, %v3056_v12 }
 0xb4b   :  { %2447 = vmatpush3.bf16.xpose.msra.mxu0 %v1592_v29  ;;  %2448 = vmatprep.mubr.msk.bf16.mxu0 %vm2792_vm0, %v2791_v0 }
 0xb4c   :  { %2458 = vmatprep.subr.bf16.mxu0 %v2791_v0 }
 0xb4f   :  { %2443 = vmatmul.mubr.msk.bf16.vlgmr.msra.gmra.mrb[44].mxu1 %vm208_vm2, %v3063_v15 }
 0xb50   :  { %2454 = vmatprep.mubr.msk.bf16.mxu1 %vm2792_vm0, %v2791_v0 }
 0xb52   :  { %2449 = vmatmul.mubr.msk.bf16.vlgmr.msra.gmra.mrb[48].mxu0 %vm208_vm2, %v3070_v3 }
 0xb53   :  { %2460 = vmatprep.mubr.msk.bf16.mxu0 %vm2792_vm0, %v2791_v0 }
 0xb7c   :  { %v1636_v12 = vpop.xlane.xlu0 %1635 }
 0xb7d   :  { %v1646_v7 = vsub.f32 %v1500_v6, %v1636_v12 }
 0xb7f   :  { %v1650_v30 = vmul.f32 1.442695, %v1646_v7 }
 0xb81   :  { %2641 = vpow2.f32 %v1650_v30 }
 0xb8b   :  { %v2642_v42 = vpop.eup %2641 }
 0xb8c   :  { %v1658_v40 = vsel %vm643_vm4, %v2642_v42, 0.0 }
 0xc15   :  { %v3172_v31 = vpop.f32.mrb[40].mxu0 }
 0xc16   :  { %v2426_v32 = vpop.f32.mrb[41].mxu0 }
 0xc17   :  { %v1446_v34 = vpop.f32.mrb[42].mxu0 }
 0xc18   :  { %v2427_v35 = vpop.f32.mrb[43].mxu0 }
 0xc1d   :  { %v1542_v36 = vpop.f32.mrb[44].mxu0 }
 0xc1e   :  { %v1543_v15 = vadd.f32 %v3144_v5, %v1542_v36  ;;  %v2438_v38 = vpop.f32.mrb[45].mxu0 }
 0xc1f   :  { %v1545_v39 = vpop.f32.mrb[46].mxu0 }
 0xc20   :  { %v2439_v41 = vpop.f32.mrb[47].mxu0  ;;  %v1637_v3 = vsel %vm643_vm4, %v1543_v15, -inf }
 0xc21   :  { %1638 = vmax.xlane.f32.xlu1 %v1637_v3 }
 0xc22   :  { %v1585_v43 = vpop.f32.mrb[44].mxu1 }
 0xc23   :  { %v1586_v47 = vadd.f32 %v3144_v5, %v1585_v43  ;;  %v2444_v48 = vpop.f32.mrb[45].mxu1 }
 0xc24   :  { %v1588_v1 = vpop.f32.mrb[46].mxu1 }
 0xc25   :  { %v2445_v44 = vpop.f32.mrb[47].mxu1  ;;  %1659 = vadd.xlane.f32.xlu1 %v1658_v40  ;;  %v1628_v53 = vpop.f32.mrb[48].mxu0  ;;  %v1640_v50 = vsel %vm643_vm4, %v1586_v47, -inf }
 0xc26   :  { %v1629_v51 = vadd.f32 %v3144_v5, %v1628_v53  ;;  %1641 = vmax.xlane.f32.xlu0 %v1640_v50  ;;  %v2450_v52 = vpop.f32.mrb[49].mxu0 }
 0xc27   :  { %v1631_v54 = vpop.f32.mrb[50].mxu0 }
 0xc28   :  { %v2451_v55 = vpop.f32.mrb[51].mxu0  ;;  %v1643_v56 = vsel %vm643_vm4, %v1629_v51, -inf }
 0xc2a   :  { %1644 = vmax.xlane.f32.xlu0 %v1643_v56 }
 0xcae   :  { %v1639_v57 = vpop.xlane.xlu1 %1638 }
 0xcaf   :  { %v1647_v58 = vsub.f32 %v1543_v15, %v1639_v57 }
 0xcb1   :  { %v1652_v59 = vmul.f32 1.442695, %v1647_v58 }
 0xcb2   :  { %v1660_v16 = vpop.xlane.xlu1 %1659 }
 0xcb3   :  { %2643 = vpow2.f32 %v1652_v59  ;;  %v1642_v60 = vpop.xlane.xlu0 %1641  ;;  %v2192_v59 = vld [vmem:[#allocation8 + $0x4] ss:$0 sm:$0xff] }
 0xcb4   :  { %v1648_v2 = vsub.f32 %v1586_v47, %v1642_v60  ;;  %v1444_v60 = vadd.f32 %v2192_v59, %v3172_v31 }
 0xcb6   :  { %v1654_v63 = vmul.f32 1.442695, %v1648_v2  ;;  %v3217_v2 = vadd.f32 %v1444_v60, %v3016_v33 }
 0xcb7   :  { %v1645_v4 = vpop.xlane.xlu0 %1644 }
 0xcb8   :  { %2645 = vpow2.f32 %v1654_v63  ;;  %v1649_v6 = vsub.f32 %v1629_v51, %v1645_v4  ;;  %v1918_v63 = vsel %vm122_vm1, %v3217_v2, 0.0 }
 0xcba   :  { %v1656_v8 = vmul.f32 1.442695, %v1649_v6 }
 0xcbc   :  { %2647 = vpow2.f32 %v1656_v8 }
 0xcbd   :  { %v2644_v5 = vpop.eup %2643  ;;  %2649 = vrcp.f32 %v1660_v16 }
 0xcbe   :  { %v1661_v9 = vsel %vm643_vm4, %v2644_v5, 0.0 }
 0xcbf   :  { %1662 = vadd.xlane.f32.xlu0 %v1661_v9 }
 0xcc2   :  { %v2646_v10 = vpop.eup %2645 }
 0xcc3   :  { %v1664_v11 = vsel %vm643_vm4, %v2646_v10, 0.0 }
 0xcc4   :  { %1665 = vadd.xlane.f32.xlu1 %v1664_v11 }
 0xcc6   :  { %v2648_v13 = vpop.eup %2647 }
 0xcc7   :  { %v1667_v14 = vsel %vm643_vm4, %v2648_v13, 0.0  ;;  %v2650_v19 = vpop.eup %2649 }
 0xcc8   :  { %1668 = vadd.xlane.f32.xlu0 %v1667_v14  ;;  %v1674_v22 = vmul.f32 %v2650_v19, %v2642_v42 }
 0xcca   :  { %v1678_v12 = vpack.c.bf16 %v1674_v22, %v1674_v22  ;;  %v2603_v22 = vld [vmem:[#allocation7 + $0x8] ss:$12 sps:$4 sm:$0xff]  }
 0xcd5   :  { %2580 = vrot.lane.b32.xlu1 %v3031_v45, %s2794_s18 }
 0xcd9   :  { %2590 = vrot.lane.b32.xlu1 %v3031_v45, %s2793_s4 }
 0xcdd   :  { %2595 = vrot.lane.b32.xlu1 %v3031_v45, %s2798_s22 }
 0xcde   :  { %2585 = vrot.lane.b32.xlu0 %v3031_v45, %s2796_s20 }
 0xd4c   :  { %v1663_v17 = vpop.xlane.xlu0 %1662 }
 0xd4d   :  { %2651 = vrcp.f32 %v1663_v17 }
 0xd51   :  { %v1666_v18 = vpop.xlane.xlu1 %1665 }
 0xd52   :  { %2653 = vrcp.f32 %v1666_v18 }
 0xd55   :  { %v2581_v20 = vpop.permute.xlu1 %2580  ;;  %v1669_v62 = vpop.xlane.xlu0 %1668 }
 0xd56   :  { %v2583_v21 = vunpack.i.h.bf16 %v2581_v20  ;;  %v2582_v46 = vunpack.i.l.bf16 %v2581_v20  ;;  %2655 = vrcp.f32 %v1669_v62  ;;  %v1926_v62 = vmul.f32 %v3217_v2, %v3217_v2 }
 0xd57   :  { %v2652_v61 = vpop.eup %2651 }
 0xd58   :  { %v1682_v23 = vpack.c.bf16 %v2583_v21, %v2582_v46  ;;  %v1675_v29 = vmul.f32 %v2652_v61, %v2644_v5  ;;  %v1928_v46 = vsel %vm122_vm1, %v1926_v62, 0.0  ;;  %v2604_v61 = vld [vmem:[#allocation7 + $0x20] ss:$12 sps:$4 sm:$0xff]  }
 0xd59   :  { %v2591_v24 = vpop.permute.xlu1 %2590  ;;  %v2586_v25 = vpop.permute.xlu0 %2585 }
 0xd5a   :  { %v2593_v26 = vunpack.i.h.bf16 %v2591_v24  ;;  %v2592_v27 = vunpack.i.l.bf16 %v2591_v24  ;;  %v2588_v45 = vunpack.i.h.bf16 %v2586_v25  ;;  %v2587_v28 = vunpack.i.l.bf16 %v2586_v25  ;;  %2453 = vmatpush3.bf16.msra.mxu1 %v1682_v23  ;;  %v2606_v23 = vld [vmem:[#allocation7 + $0x50] ss:$12 sps:$4 sm:$0xff]  }
 0xd5b   :  { %2464 = vmatprep.subr.bf16.mxu1 %v2791_v0  ;;  %v1679_v38 = vpack.c.bf16 %v1675_v29, %v1675_v29 }
 0xd5c   :  { %v2654_v7 = vpop.eup %2653  ;;  %v1684_v30 = vpack.c.bf16 %v2593_v26, %v2592_v27  ;;  %v1683_v32 = vpack.c.bf16 %v2588_v45, %v2587_v28 }
 0xd5d   :  { %v2596_v34 = vpop.permute.xlu1 %2595  ;;  %2455 = vmatmul.mubr.msk.bf16.vlgmr.msra.gmra.mrb[48].mxu1 %vm643_vm4, %v1678_v12  ;;  %v1676_v15 = vmul.f32 %v2654_v7, %v2646_v10 }
 0xd5e   :  { %v2598_v35 = vunpack.i.h.bf16 %v2596_v34  ;;  %v2597_v36 = vunpack.i.l.bf16 %v2596_v34  ;;  %2459 = vmatpush3.bf16.msra.mxu0 %v1683_v32  ;;  %2465 = vmatpush3.bf16.msra.mxu1 %v1684_v30 }
 0xd5f   :  { %2470 = vmatprep.subr.bf16.mxu0 %v2791_v0  ;;  %2466 = vmatprep.mubr.msk.bf16.mxu1 %vm2792_vm0, %v2791_v0  ;;  %v1680_v42 = vpack.c.bf16 %v1676_v15, %v1676_v15 }
 0xd60   :  { %v2656_v39 = vpop.eup %2655  ;;  %v1685_v41 = vpack.c.bf16 %v2598_v35, %v2597_v36  ;;  %2476 = vmatprep.subr.bf16.mxu1 %v2791_v0 }
 0xd61   :  { %2461 = vmatmul.mubr.msk.bf16.vlgmr.msra.gmra.mrb[52].mxu0 %vm643_vm4, %v1679_v38  ;;  %v1677_v3 = vmul.f32 %v2656_v39, %v2648_v13 }
 0xd62   :  { %2471 = vmatpush3.bf16.msra.mxu0 %v1685_v41  ;;  %2472 = vmatprep.mubr.msk.bf16.mxu0 %vm2792_vm0, %v2791_v0 }
 0xd63   :  { %2484 = vmatprep.subr.bf16.mxu0 %v2791_v0  ;;  %v1681_v43 = vpack.c.bf16 %v1677_v3, %v1677_v3  ;;  %v2205_v3 = vld [vmem:[#allocation8 + $0x9] ss:$0 sm:$0xff] }
 0xd65   :  { %2467 = vmatmul.mubr.msk.bf16.vlgmr.msra.gmra.mrb[52].mxu1 %vm643_vm4, %v1680_v42 }
 0xd66   :  { %2477 = vmatpush3.bf16.msra.mxu1 %v3124_v49  ;;  %2480 = vmatprep.mubr.msk.bf16.mxu1 %vm2792_vm0, %v2791_v0 }
 0xd67   :  { %2478 = vmatprep.subr.bf16.mxu1 %v2791_v0 }
 0xd69   :  { %2473 = vmatmul.mubr.msk.bf16.vlgmr.msra.gmra.mrb[56].mxu0 %vm643_vm4, %v1681_v43 }
 0xd6a   :  { %2479 = vmatpush3.bf16.msra.mxu1 %v3128_v37  ;;  %2488 = vmatprep.mubr.msk.bf16.mxu0 %vm2792_vm0, %v2791_v0 }
 0xd6b   :  { %2492 = vmatprep.subr.bf16.mxu1 %v2791_v0  ;;  %2485 = vmatpush3.bf16.msra.mxu0 %v2603_v22 }
 0xd6c   :  { %2486 = vmatprep.subr.bf16.mxu0 %v2791_v0 }
 0xd6f   :  { %2487 = vmatpush3.bf16.msra.mxu0 %v2604_v61 }
 0xe30   :  { %v1723_v47 = vpop.f32.mrb[48].mxu1 }
 0xe31   :  { %v2456_v48 = vpop.f32.mrb[49].mxu1 }
 0xe32   :  { %v1726_v1 = vpop.f32.mrb[50].mxu1 }
 0xe33   :  { %v2457_v40 = vpop.f32.mrb[51].mxu1 }
 0xe34   :  { %v1766_v49 = vpop.f32.mrb[52].mxu0  ;;  %v2206_v40 = vld [vmem:[#allocation8 + $0xa] ss:$0 sm:$0xff] }
 0xe35   :  { %1859 = vrot.lane.b32.xlu0 %v1766_v49, %s2785_s29  ;;  %v2462_v44 = vpop.f32.mrb[53].mxu0 }
 0xe36   :  { %v1769_v53 = vpop.f32.mrb[54].mxu0 }
 0xe37   :  { %v2463_v50 = vpop.f32.mrb[55].mxu0 }
 0xe38   :  { %v1809_v51 = vpop.f32.mrb[52].mxu1 }
 0xe39   :  { %1863 = vrot.lane.b32.xlu1 %v1809_v51, %s2805_s30  ;;  %v2468_v52 = vpop.f32.mrb[53].mxu1 }
 0xe3a   :  { %v1812_v37 = vpop.f32.mrb[54].mxu1 }
 0xe3b   :  { %v2469_v54 = vpop.f32.mrb[55].mxu1  ;;  %v2207_v37 = vld [vmem:[#allocation8 + $0x5] ss:$0 sm:$0xff] }
 0xe3c   :  { %v1852_v55 = vpop.f32.mrb[56].mxu0 }
 0xe3d   :  { %1867 = vrot.lane.b32.xlu0 %v1852_v55, %s2806_s6  ;;  %v2474_v56 = vpop.f32.mrb[57].mxu0 }
 0xe3e   :  { %v1855_v57 = vpop.f32.mrb[58].mxu0 }
 0xe3f   :  { %v2475_v58 = vpop.f32.mrb[59].mxu0 }
 0xe5d   :  { %1919 = vadd.xlane.f32.xlu1 %v1918_v63 }
 0xea7   :  { %v1860_v4 = vpop.permute.xlu0 %1859 }
 0xea8   :  { %v1870_v8 = vsel %vm208_vm2, %v1723_v47, %v1860_v4  ;;  %v2211_v4 = vld [vmem:[#allocation8 + $0x6] ss:$0 sm:$0xff] }
 0xeab   :  { %v1864_v6 = vpop.permute.xlu1 %1863 }
 0xeac   :  { %v1871_v5 = vsel %vm643_vm4, %v1870_v8, %v1864_v6 }
 0xeaf   :  { %v1868_v9 = vpop.permute.xlu0 %1867 }
 0xeb0   :  { %v1872_v10 = vsel %vm645_vm5, %v1871_v5, %v1868_v9 }
 0xeb1   :  { %v1873_v11 = vpack.c.bf16 %v1872_v10, %v1872_v10 }
 0xeb3   :  { %2481 = vmatmul.mubr.msk.bf16.vlgmr.msra.gmra.mrb[56].mxu1 %vm122_vm1, %v1873_v11 }
 0xeb4   :  { %2500 = vmatprep.mubr.msk.bf16.mxu1 %vm2792_vm0, %v2791_v0 }
 0xeea   :  { %v1920_v24 = vpop.xlane.xlu1 %1919 }
 0xeeb   :  { %v1924_v26 = vmul.f32 0.03125, %v1920_v24 }
 0xeed   :  { %v1936_v7 = vmul.f32 %v1924_v26, %v1924_v26  ;;  %v1940_v42 = vsub.f32 %v3217_v2, %v1924_v26 }
 0xf86   :  { %v1911_v31 = vpop.f32.mrb[56].mxu1 }
 0xf87   :  { %v1912_v13 = vadd.f32 %v2192_v59, %v1911_v31  ;;  %v2482_v14 = vpop.f32.mrb[57].mxu1 }
 0xf88   :  { %v1914_v16 = vpop.f32.mrb[58].mxu1 }
 0xf89   :  { %v1917_v17 = vadd.f32 %v1912_v13, %v3016_v33  ;;  %v2483_v18 = vpop.f32.mrb[59].mxu1  ;;  %v2605_v33 = vld [vmem:[#allocation7 + $0x38] ss:$12 sps:$4 sm:$0xff]  }
 0xf8b   :  { %v1921_v19 = vsel %vm122_vm1, %v1917_v17, 0.0  ;;  %v1927_v20 = vmul.f32 %v1917_v17, %v1917_v17 }
 0xf8c   :  { %1922 = vadd.xlane.f32.xlu0 %v1921_v19 }
 0xf8d   :  { %v1931_v21 = vsel %vm122_vm1, %v1927_v20, 0.0 }
 0xf8e   :  { %1932 = vadd.xlane.f32.xlu1 %v1931_v21 }
 0xf90   :  { %1929 = vadd.xlane.f32.xlu0 %v1928_v46 }
 0xf9f   :  { %2040 = vrot.lane.b32.xlu1 %v2604_v61, %s2801_s25 }
 0xfa3   :  { %2042 = vrot.lane.b32.xlu1 %v2605_v33, %s2801_s25 }
 0xfa6   :  { %2038 = vrot.lane.b32.xlu0 %v2603_v22, %s2801_s25 }
 0xfaa   :  { %2044 = vrot.lane.b32.xlu0 %v2606_v23, %s2801_s25 }
0x1019   :  { %v1923_v25 = vpop.xlane.xlu0 %1922 }
0x101a   :  { %v1925_v27 = vmul.f32 0.03125, %v1923_v25 }
0x101b   :  { %v1933_v45 = vpop.xlane.xlu1 %1932 }
0x101c   :  { %v1937_v28 = vmul.f32 %v1925_v27, %v1925_v27  ;;  %v1935_v29 = vmul.f32 0.03125, %v1933_v45  ;;  %v1941_v39 = vsub.f32 %v1917_v17, %v1925_v27 }
0x101d   :  { %v1930_v12 = vpop.xlane.xlu0 %1929 }
0x101e   :  { %v1939_v30 = vsub.f32 %v1935_v29, %v1937_v28  ;;  %v1934_v32 = vmul.f32 0.03125, %v1930_v12 }
0x101f   :  { %v2041_v38 = vpop.permute.xlu1 %2040 }
0x1020   :  { %v1943_v34 = vadd.f32 1e-05, %v1939_v30  ;;  %v1938_v35 = vsub.f32 %v1934_v32, %v1936_v7  ;;  %v2215_v7 = vld [vmem:[#allocation8 + $0xb] ss:$0 sm:$0xff] }
0x1021   :  { %v2039_v15 = vpop.permute.xlu0 %2038 }
0x1022   :  { %2657 = vrsqrt.f32 %v1943_v34  ;;  %v1942_v36 = vadd.f32 1e-05, %v1938_v35  ;;  %2493 = vmatpush3.bf16.msra.mxu1 %v2039_v15  ;;  %v2216_v35 = vld [vmem:[#allocation8 + $0xc] ss:$0 sm:$0xff] }
0x1023   :  { %2494 = vmatprep.subr.bf16.mxu1 %v2791_v0  ;;  %v2043_v51 = vpop.permute.xlu1 %2042 }
0x1024   :  { %2659 = vrsqrt.f32 %v1942_v36 }
0x1025   :  { %v2045_v52 = vpop.permute.xlu0 %2044 }
0x1026   :  { %2495 = vmatpush3.bf16.msra.mxu1 %v2041_v38 }
0x1027   :  { %2496 = vmatprep.subr.bf16.mxu1 %v2791_v0 }
0x102a   :  { %2497 = vmatpush3.bf16.msra.mxu1 %v2043_v51 }
0x102b   :  { %2498 = vmatprep.subr.bf16.mxu1 %v2791_v0 }
0x102c   :  { %v2658_v41 = vpop.eup %2657 }
0x102d   :  { %v1947_v43 = vmul.f32 %v2658_v41, %v1941_v39 }
0x102e   :  { %v2660_v47 = vpop.eup %2659  ;;  %2499 = vmatpush3.bf16.msra.mxu1 %v2045_v52 }
0x102f   :  { %v1946_v48 = vmul.f32 %v2660_v47, %v1940_v42  ;;  %v1953_v1 = vmul.f32 %v2205_v3, %v1947_v43 }
0x1031   :  { %v1952_v49 = vmul.f32 %v2205_v3, %v1946_v48  ;;  %v1959_v53 = vadd.f32 %v2206_v40, %v1953_v1 }
0x1033   :  { %v1958_v44 = vadd.f32 %v2206_v40, %v1952_v49 }
0x1035   :  { %v1960_v50 = vpack.c.bf16 %v1959_v53, %v1958_v44 }
0x1037   :  { %2489 = vmatmul.mubr.msk.bf16.vlgmr.msra.gmra.mrb[60].mxu0 %vm122_vm1, %v1960_v50 }
0x110a   :  { %v2014_v54 = vpop.f32.mrb[60].mxu0 }
0x110b   :  { %v2015_v55 = vadd.f32 %v2207_v37, %v2014_v54  ;;  %v2490_v56 = vpop.f32.mrb[61].mxu0 }
0x110c   :  { %v2017_v57 = vpop.f32.mrb[62].mxu0 }
0x110d   :  { %v2018_v58 = vadd.f32 %v2207_v37, %v2017_v57  ;;  %v2491_v59 = vpop.f32.mrb[63].mxu0  ;;  %v2021_v60 = vmax.f32 %v2015_v55, 0.0 }
0x110f   :  { %v2022_v2 = vmax.f32 %v2018_v58, 0.0 }
0x1111   :  { %v2023_v63 = vpack.c.bf16 %v2022_v2, %v2021_v60 }
0x1113   :  { %2501 = vmatmul.mubr.msk.bf16.vlgmr.msra.gmra.mrb[60].mxu1 %vm2050_vm6, %v2023_v63 }
0x11e6   :  { %v2088_v6 = vpop.f32.mrb[60].mxu1 }
0x11e7   :  { %v2089_v8 = vadd.f32 %v2211_v4, %v2088_v6  ;;  %v2502_v5 = vpop.f32.mrb[61].mxu1 }
0x11e8   :  { %v2091_v9 = vpop.f32.mrb[62].mxu1 }
0x11e9   :  { %v2095_v0 = vadd.f32 %v2089_v8, %v1958_v44  ;;  %v2092_v10 = vadd.f32 %v2211_v4, %v2091_v9  ;;  %v2503_v11 = vpop.f32.mrb[63].mxu1 }
0x11eb   :  { %v2096_v31 = vadd.f32 %v2092_v10, %v1959_v53  ;;  %v2097_v13 = vsel %vm122_vm1, %v2095_v0, 0.0  ;;  %v2105_v17 = vmul.f32 %v2095_v0, %v2095_v0 }
0x11ec   :  { %2098 = vadd.xlane.f32.xlu1 %v2097_v13 }
0x11ed   :  { %v2100_v14 = vsel %vm122_vm1, %v2096_v31, 0.0  ;;  %v2106_v16 = vmul.f32 %v2096_v31, %v2096_v31  ;;  %v2107_v19 = vsel %vm122_vm1, %v2105_v17, 0.0 }
0x11ee   :  { %2101 = vadd.xlane.f32.xlu0 %v2100_v14 }
0x11ef   :  { %v2110_v18 = vsel %vm122_vm1, %v2106_v16, 0.0 }
0x11f0   :  { %2111 = vadd.xlane.f32.xlu1 %v2110_v18 }
0x11f2   :  { %2108 = vadd.xlane.f32.xlu0 %v2107_v19 }
0x1279   :  { %v2099_v20 = vpop.xlane.xlu1 %2098 }
0x127a   :  { %v2103_v21 = vmul.f32 0.03125, %v2099_v20 }
0x127b   :  { %v2102_v62 = vpop.xlane.xlu0 %2101 }
0x127c   :  { %v2104_v46 = vmul.f32 0.03125, %v2102_v62  ;;  %v2115_v24 = vmul.f32 %v2103_v21, %v2103_v21  ;;  %v2119_v30 = vsub.f32 %v2095_v0, %v2103_v21 }
0x127d   :  { %v2112_v22 = vpop.xlane.xlu1 %2111 }
0x127e   :  { %v2116_v61 = vmul.f32 %v2104_v46, %v2104_v46  ;;  %v2114_v33 = vmul.f32 0.03125, %v2112_v22  ;;  %v2120_v29 = vsub.f32 %v2096_v31, %v2104_v46 }
0x127f   :  { %v2109_v23 = vpop.xlane.xlu0 %2108 }
0x1280   :  { %v2118_v25 = vsub.f32 %v2114_v33, %v2116_v61  ;;  %v2113_v26 = vmul.f32 0.03125, %v2109_v23 }
0x1282   :  { %v2122_v27 = vadd.f32 1e-05, %v2118_v25  ;;  %v2117_v45 = vsub.f32 %v2113_v26, %v2115_v24 }
0x1284   :  { %2661 = vrsqrt.f32 %v2122_v27  ;;  %v2121_v28 = vadd.f32 1e-05, %v2117_v45 }
0x1286   :  { %2663 = vrsqrt.f32 %v2121_v28 }
0x128e   :  { %v2662_v12 = vpop.eup %2661 }
0x128f   :  { %v2126_v32 = vmul.f32 %v2662_v12, %v2120_v29 }
0x1290   :  { %v2664_v34 = vpop.eup %2663 }
0x1291   :  { %v2125_v36 = vmul.f32 %v2664_v34, %v2119_v30  ;;  %v2132_v15 = vmul.f32 %v2215_v7, %v2126_v32 }
0x1293   :  { %v2131_v38 = vmul.f32 %v2215_v7, %v2125_v36  ;;  %v2138_v39 = vadd.f32 %v2216_v35, %v2132_v15 }
0x1295   :  { %v2137_v41 = vadd.f32 %v2216_v35, %v2131_v38  ;;  %2140 = vst.msk [vmem:[#allocation10 + $0x8] sm:$0xff] %vm122_vm1, %v2138_v39 }
0x1297   :  { %2139 = vst.msk [vmem:[#allocation10] sm:$0xff] %vm122_vm1, %v2137_v41 }
0x1298   :  { %2764 = shalt.err (!%p2761_p8)
}
0x1299   :  { %s2765_s16 = scalar_lea.hbm %s3269_s5, 256 }
0x129a   :  { %p2766_p9 = scmp.ne.s32.totalorder %s3269_s5, %s2765_s16  ;;  %p2769_p10 = scmp.lt.u32.totalorder %s2765_s16, %s3269_s5 }
0x129c   :  { %p2771_p11 = pnand %p2769_p10, %p2766_p9 }
0x129e   :  { %2774 = shalt.err (!%p2771_p11)
}
0x129f   :  { %2152 = dma.vmem_to_hbm [thread:$0]  %s2147_s12, 256, %s3269_s5, [#allocation4], %s2784_s28, %s2784_s28, %s2785_s29  }
0x12a0   :  { %2781 = dma.done.wait [#allocation4], 256  }
0x12a1   :  { %2782 = vsyncadd [#allocation4], 4294967040 }
0x12a2   :  { %2156 = vsyncpa [#allocation3], 1 }
0x12a3   :  { %2157 = vsyncpa [#allocation6], 1 }
0x12a4   :  { %2158 = vsyncpa [#allocation9], 1 }
0x12a5   :  { %2159 = vsyncpa [#allocation4], 1 }

</bundles_post_ra>
